<compile_context>
chip_gen: v7x
topology: tpu7x:2x2x1
jax: 0.10.0
libtpu: 0.0.40
codegen_flags: <defaults>
</compile_context>

<pallas_src>
import functools

import jax
import jax.numpy as jnp
from jax import lax
from jax.experimental import pallas as pl
from jax.experimental.pallas import tpu as pltpu

LN_EPS = 1e-5  # torch.nn.LayerNorm default


def _round_up(v, m):
    return (v + m - 1) // m * m


# Rows of the stacked weight tensor [9, CP, CP].
_EW0A, _EW0B, _EW0C, _EW1, _EW2, _NW0A, _NW0B, _NW1, _NW2 = range(9)
# Rows of the stacked bias / LayerNorm tensor [10, CP].
_EB0, _EB1, _EB2, _ELNW, _ELNB, _NB0, _NB1, _NB2, _NLNW, _NLNB = range(10)


def mp_layer_kernel(
    c_true, mm_dtype,
    # inputs
    x_ref, e_ref, idx_ref, dstr_ref, w_ref, b_ref,
    # outputs
    x_out_ref, e_out_ref,
    # scratch (persist across grid steps)
    xab_s, agg_s,
):
    f32 = jnp.float32
    t = pl.program_id(0)
    n_tiles = pl.num_programs(0)

    Np = agg_s.shape[0]
    TE, CP = e_ref.shape
    inv_c = 1.0 / float(c_true)

    b = b_ref[...]                                              # [10, CP] f32
    # Mask of the true channel lanes (padded lanes excluded from LN statistics).
    cmask = (lax.broadcasted_iota(jnp.int32, (1, CP), 1) < c_true).astype(f32)

    def layernorm(h, w_row, b_row):
        # Two-pass (masked) mean/variance over the TRUE channel count.
        # Padded lanes of w_row / b_row are 0, so padded output lanes stay 0.
        mu = jnp.sum(h, axis=-1, keepdims=True) * inv_c
        d = (h - mu) * cmask
        var = jnp.sum(d * d, axis=-1, keepdims=True) * inv_c
        return d * lax.rsqrt(var + LN_EPS) * w_row + b_row

    # ---- one-time init: reassociated node projections + zero accumulator ----
    @pl.when(t == 0)
    def _():
        x_mm = x_ref[...].astype(mm_dtype)
        xab_s[0:Np, :] = jnp.dot(x_mm, w_ref[_EW0A],
                                 preferred_element_type=f32).astype(mm_dtype)
        xab_s[Np:2 * Np, :] = jnp.dot(x_mm, w_ref[_EW0B],
                                      preferred_element_type=f32).astype(mm_dtype)
        agg_s[...] = jnp.zeros_like(agg_s)

    # ---- edge updater on this edge tile --------------------------------------
    idx = idx_ref[...]                                          # [TE, 2] int32
    iota_g = lax.broadcasted_iota(jnp.int32, (TE, 2 * Np), 1)
    # Fused two-hot gather: col 0 = src index, col 1 = dst index pre-offset by Np
    # (padded edges hold -1 -> all-zero row -> gathers nothing).
    g = ((iota_g == idx[:, 0:1]) | (iota_g == idx[:, 1:2])).astype(mm_dtype)

    e_tile = e_ref[...]                                         # [TE, CP] f32
    # h = x_src@W0a + x_dst@W0b + e@W0c + b0   (gather reassociated onto xab_s)
    h = (jnp.dot(g, xab_s[...], preferred_element_type=f32)
         + jnp.dot(e_tile.astype(mm_dtype), w_ref[_EW0C], preferred_element_type=f32)
         + b[_EB0:_EB0 + 1])
    h = jnp.maximum(h, 0.0)
    h = jnp.maximum(jnp.dot(h.astype(mm_dtype), w_ref[_EW1],
                            preferred_element_type=f32) + b[_EB1:_EB1 + 1], 0.0)
    h = jnp.dot(h.astype(mm_dtype), w_ref[_EW2],
                preferred_element_type=f32) + b[_EB2:_EB2 + 1]
    e_new = e_tile + layernorm(h, b[_ELNW:_ELNW + 1], b[_ELNB:_ELNB + 1])
    e_out_ref[...] = e_new

    # ---- EdgeAggregation(aggr='add'): scatter-add via pre-transposed one-hot --
    iota_s = lax.broadcasted_iota(jnp.int32, (Np, TE), 0)
    s_dst = (dstr_ref[...] == iota_s).astype(mm_dtype)          # [Np, TE]
    agg_s[...] += jnp.dot(s_dst, e_new.astype(mm_dtype), preferred_element_type=f32)

    # ---- node updater (once every edge tile has been aggregated) -------------
    @pl.when(t == n_tiles - 1)
    def _():
        x = x_ref[...]
        h2 = (jnp.dot(x.astype(mm_dtype), w_ref[_NW0A], preferred_element_type=f32)
              + jnp.dot(agg_s[...].astype(mm_dtype), w_ref[_NW0B],
                        preferred_element_type=f32)
              + b[_NB0:_NB0 + 1])
        h2 = jnp.maximum(h2, 0.0)
        h2 = jnp.maximum(jnp.dot(h2.astype(mm_dtype), w_ref[_NW1],
                                 preferred_element_type=f32) + b[_NB1:_NB1 + 1], 0.0)
        h2 = jnp.dot(h2.astype(mm_dtype), w_ref[_NW2],
                     preferred_element_type=f32) + b[_NB2:_NB2 + 1]
        x_out_ref[...] = x + layernorm(h2, b[_NLNW:_NLNW + 1], b[_NLNB:_NLNB + 1])


def message_passing_layer(x, e, edge_index, params, *, edge_tile=512,
                          matmul_dtype=jnp.bfloat16, stream_buffers=2,
                          vmem_limit_bytes=None):
    """Pallas MessagePassingLayer forward.  x: [N,C], e: [E,C], edge_index: [2,E]."""
    f32 = jnp.float32
    N, C = x.shape
    E = e.shape[0]

    LANE = 128
    CP = _round_up(C, LANE)                       # lane-dense channel dim
    Np = _round_up(N, 16)                         # 16: bf16 sublane packing of xab halves
    TE = max(LANE, _round_up(min(edge_tile, max(E, 1)), LANE))
    Ep = _round_up(E, TE)
    n_tiles = Ep // TE

    pad2 = lambda a, r, c: jnp.pad(a.astype(f32),
                                   ((0, r - a.shape[0]), (0, c - a.shape[1])))
    x_p = pad2(x, Np, CP)
    e_p = pad2(e, Ep, CP)

    src = edge_index[0].astype(jnp.int32)
    dst = edge_index[1].astype(jnp.int32)
    pad_i = lambda v, fill: jnp.pad(v, (0, Ep - E), constant_values=fill)
    # Gather columns: src in [0, Np), dst pre-offset by Np into [Np, 2Np);
    # padded edges hold -1 (matches nothing -> gathers / scatters zeros).
    idx = jnp.stack([pad_i(src, -1), pad_i(dst + Np, -1)], axis=1)   # [Ep, 2]
    dst_row = pad_i(dst, -1).reshape(1, Ep)                          # [1, Ep]

    padw = lambda w: pad2(w, CP, CP)
    padb = lambda v: jnp.pad(v.astype(f32), (0, CP - C))

    ep_, np_ = params["edge"], params["node"]
    # First Linear of each MLP split along its concatenated input dim.
    w_stack = jnp.stack([
        padw(ep_["w0"][:C]), padw(ep_["w0"][C:2 * C]), padw(ep_["w0"][2 * C:]),
        padw(ep_["w1"]), padw(ep_["w2"]),
        padw(np_["w0"][:C]), padw(np_["w0"][C:]),
        padw(np_["w1"]), padw(np_["w2"]),
    ]).astype(matmul_dtype)                                          # [9, CP, CP]
    b_stack = jnp.stack([
        padb(ep_["b0"]), padb(ep_["b1"]), padb(ep_["b2"]),
        padb(ep_["ln_w"]), padb(ep_["ln_b"]),
        padb(np_["b0"]), padb(np_["b1"]), padb(np_["b2"]),
        padb(np_["ln_w"]), padb(np_["ln_b"]),
    ])                                                               # [10, CP] f32

    def resident(shape):
        # Constant index map -> single-buffer (no wasted double-buffer VMEM).
        return pl.BlockSpec(shape, lambda *_: (0,) * len(shape),
                            pipeline_mode=pl.Buffered(1))

    streamed = pl.Buffered(stream_buffers)
    in_specs = [
        resident((Np, CP)),                                               # x
        pl.BlockSpec((TE, CP), lambda t: (t, 0), pipeline_mode=streamed),  # e tile
        pl.BlockSpec((TE, 2), lambda t: (t, 0), pipeline_mode=streamed),   # [src, dst+Np]
        pl.BlockSpec((1, TE), lambda t: (0, t), pipeline_mode=streamed),   # dst row (scatter)
        resident((9, CP, CP)),                                            # weight stack
        resident((10, CP)),                                               # bias/LN stack
    ]
    out_shape = (jax.ShapeDtypeStruct((Np, CP), f32),    # x_out (padded)
                 jax.ShapeDtypeStruct((Ep, CP), f32))    # e_out (padded)
    out_specs = (pl.BlockSpec((Np, CP), lambda t: (0, 0)),
                 pl.BlockSpec((TE, CP), lambda t: (t, 0)))

    if vmem_limit_bytes is None:
        try:
            cap = int(pltpu.get_tpu_info().vmem_capacity_bytes)
        except Exception:
            cap = 128 * 1024 * 1024
        # ~3/4 of capacity, capped at 96 MiB (-> ~48 MiB on v7x, 96 MiB v5e/v6e).
        vmem_limit_bytes = min(96 * 1024 * 1024, cap * 3 // 4)

    flops_per_tile = (2 * TE * (2 * Np) * CP          # fused two-hot gather matmul
                      + 3 * 2 * TE * CP * CP          # edge MLP (3 Linears)
                      + 2 * Np * TE * CP)             # scatter-add matmul
    flops = n_tiles * flops_per_tile + 12 * Np * CP * CP   # xa/xb init + node MLP
    bytes_accessed = (x_p.size + e_p.size + idx.size + dst_row.size
                      + b_stack.size + Np * CP + Ep * CP) * 4 \
                     + w_stack.size * jnp.dtype(matmul_dtype).itemsize
    cost = pl.CostEstimate(flops=int(flops), transcendentals=int(Ep + Np),
                           bytes_accessed=int(bytes_accessed))

    grid_spec = pltpu.PrefetchScalarGridSpec(
        num_scalar_prefetch=0,
        grid=(n_tiles,),
        in_specs=in_specs,
        out_specs=out_specs,
        scratch_shapes=[
            pltpu.VMEM((2 * Np, CP), matmul_dtype),   # [x@W0a ; x@W0b]
            pltpu.VMEM((Np, CP), f32),                # edge_agg accumulator (f32)
        ],
    )

    x_out, e_out = pl.pallas_call(
        functools.partial(mp_layer_kernel, C, matmul_dtype),
        out_shape=out_shape,
        grid_spec=grid_spec,
        compiler_params=pltpu.CompilerParams(
            # the edge axis accumulates into shared scratch -> sequential
            dimension_semantics=("arbitrary",),
            vmem_limit_bytes=int(vmem_limit_bytes),
        ),
        cost_estimate=cost,
    )(x_p, e_p, idx, dst_row, w_stack, b_stack)
    return x_out[:N, :C], e_out[:E, :C]


# ---------------------- deterministic parameter init ------------------------
def _init_linear(key, fan_in, fan_out):
    kw, kb = jax.random.split(key)
    bound = 1.0 / (fan_in ** 0.5)
    w = jax.random.uniform(kw, (fan_in, fan_out), jnp.float32, -bound, bound)
    b = jax.random.uniform(kb, (fan_out,), jnp.float32, -bound, bound)
    return w, b


def init_mlp_params(key, in_c, c):
    # MLP(input=in_c, hidden=[c, c], output=c) + LayerNorm(c)   (1 hidden layer)
    k0, k1, k2 = jax.random.split(key, 3)
    w0, b0 = _init_linear(k0, in_c, c)
    w1, b1 = _init_linear(k1, c, c)
    w2, b2 = _init_linear(k2, c, c)
    return dict(w0=w0, b0=b0, w1=w1, b1=b1, w2=w2, b2=b2,
                ln_w=jnp.ones((c,), jnp.float32),
                ln_b=jnp.zeros((c,), jnp.float32))


# ---------------------------- pure-JAX reference ----------------------------
def _mm_dot(a, w, mm_dtype):
    if mm_dtype is None:
        return jnp.dot(a, w, precision=jax.lax.Precision.HIGHEST)
    return jnp.dot(a.astype(mm_dtype), w.astype(mm_dtype),
                   preferred_element_type=jnp.float32)


def _mlp_ref(h, p, mm_dtype):
    h = jnp.maximum(_mm_dot(h, p["w0"], mm_dtype) + p["b0"], 0.0)
    h = jnp.maximum(_mm_dot(h, p["w1"], mm_dtype) + p["b1"], 0.0)
    h = _mm_dot(h, p["w2"], mm_dtype) + p["b2"]
    mu = h.mean(-1, keepdims=True)
    var = ((h - mu) ** 2).mean(-1, keepdims=True)
    return (h - mu) / jnp.sqrt(var + LN_EPS) * p["ln_w"] + p["ln_b"]


def reference(x, e, edge_index, params, mm_dtype=None):
    """MessagePassingLayer forward.  mm_dtype=None -> true f32 reference;
    mm_dtype=jnp.bfloat16 mirrors the kernel's MXU-operand precision policy."""
    src, dst = edge_index[0], edge_index[1]
    e_new = e + _mlp_ref(jnp.concatenate([x[src], x[dst], e], axis=1),
                         params["edge"], mm_dtype)
    agg_in = e_new if mm_dtype is None else e_new.astype(mm_dtype).astype(jnp.float32)
    edge_agg = jax.ops.segment_sum(agg_in, dst, num_segments=x.shape[0])
    x_new = x + _mlp_ref(jnp.concatenate([x, edge_agg], axis=1),
                         params["node"], mm_dtype)
    return x_new, e_new


if __name__ == "__main__":
    key = jax.random.PRNGKey(0)
    # Small deterministic problem: 48 nodes, 360 edges, 32 channels,
    # n_mlp_hidden_layers = 1.  edge_tile=128 -> 3 grid steps so the cross-tile
    # accumulator and padded-edge paths are exercised (default tile is 512).
    N, E, C = 48, 360, 32
    kx, ke, kei, kpe, kpn = jax.random.split(key, 5)

    x = jax.random.normal(kx, (N, C), jnp.float32)
    e = jax.random.normal(ke, (E, C), jnp.float32)
    edge_index = jax.random.randint(kei, (2, E), 0, N, dtype=jnp.int32)
    params = {"edge": init_mlp_params(kpe, 3 * C, C),
              "node": init_mlp_params(kpn, 2 * C, C)}

    x_out, e_out = message_passing_layer(x, e, edge_index, params, edge_tile=128)
    jax.block_until_ready((x_out, e_out))

    # Tight-ish check vs a reference that mirrors the kernel's bf16-MXU / f32-accum
    # policy, plus a loose sanity check vs the exact f32 reference.
    x_mir, e_mir = reference(x, e, edge_index, params, mm_dtype=jnp.bfloat16)
    x_f32, e_f32 = reference(x, e, edge_index, params, mm_dtype=None)
    assert jnp.allclose(e_out, e_mir, atol=3e-2, rtol=3e-2), "e mismatch (bf16 mirror)"
    assert jnp.allclose(x_out, x_mir, atol=3e-2, rtol=3e-2), "x mismatch (bf16 mirror)"
    assert jnp.allclose(e_out, e_f32, atol=1.5e-1, rtol=1.5e-1), "e mismatch (f32)"
    assert jnp.allclose(x_out, x_f32, atol=1.5e-1, rtol=1.5e-1), "x mismatch (f32)"
    print("KERNEL_OK")
</pallas_src>

<mosaic_0001>
module attributes {stable_mosaic.version = 11 : i64} {
  func.func @mp_layer_kernel(%arg0: i32, %arg1: memref<48x128xf32, #tpu.memory_space<vmem>>, %arg2: memref<128x128xf32, #tpu.memory_space<vmem>>, %arg3: memref<128x2xi32, #tpu.memory_space<vmem>>, %arg4: memref<1x128xi32, #tpu.memory_space<vmem>>, %arg5: memref<9x128x128xbf16, #tpu.memory_space<vmem>>, %arg6: memref<10x128xf32, #tpu.memory_space<vmem>>, %arg7: memref<48x128xf32, #tpu.memory_space<vmem>>, %arg8: memref<128x128xf32, #tpu.memory_space<vmem>>, %arg9: memref<96x128xbf16, #tpu.memory_space<vmem>>, %arg10: memref<48x128xf32, #tpu.memory_space<vmem>>) attributes {dimension_semantics = [#tpu.dimension_semantics<arbitrary>], iteration_bounds = array<i64: 3>, scalar_prefetch = 0 : i64, scratch_operands = 2 : i64, tpu.core_type = #tpu.core_type<tc>, window_params = [{pipeline_mode = #tpu.pipeline_mode<synchronous>, transform_indices = @transform_0, window_bounds = array<i64: 48, 128>}, {pipeline_mode = #tpu.pipeline_mode<double_buffered>, transform_indices = @transform_1, window_bounds = array<i64: 128, 128>}, {pipeline_mode = #tpu.pipeline_mode<double_buffered>, transform_indices = @transform_2, window_bounds = array<i64: 128, 2>}, {pipeline_mode = #tpu.pipeline_mode<double_buffered>, transform_indices = @transform_3, window_bounds = array<i64: 1, 128>}, {pipeline_mode = #tpu.pipeline_mode<synchronous>, transform_indices = @transform_4, window_bounds = array<i64: 9, 128, 128>}, {pipeline_mode = #tpu.pipeline_mode<synchronous>, transform_indices = @transform_5, window_bounds = array<i64: 10, 128>}, {pipeline_mode = #tpu.pipeline_mode<synchronous>, transform_indices = @transform_6, window_bounds = array<i64: 48, 128>}, {transform_indices = @transform_7, window_bounds = array<i64: 128, 128>}]} {
    %c0 = arith.constant 0 : index
    %c0_0 = arith.constant 0 : index
    %0 = vector.load %arg6[%c0, %c0_0] : memref<10x128xf32, #tpu.memory_space<vmem>>, vector<10x128xf32>
    %1 = tpu.iota {dimensions = array<i32: 1>} : vector<1x128xi32>
    %c32_i32 = arith.constant 32 : i32
    %2 = vector.broadcast %c32_i32 : i32 to vector<1x128xi32>
    %3 = arith.cmpi slt, %1, %2 : vector<1x128xi32>
    %4 = arith.extui %3 : vector<1x128xi1> to vector<1x128xi32>
    %5 = arith.sitofp %4 : vector<1x128xi32> to vector<1x128xf32>
    %c0_i32 = arith.constant 0 : i32
    %6 = arith.cmpi eq, %arg0, %c0_i32 : i32
    %7 = arith.extui %6 : i1 to i32
    %c0_i32_1 = arith.constant 0 : i32
    %8 = arith.cmpi ne, %7, %c0_i32_1 : i32
    scf.if %8 {
      %c0_34 = arith.constant 0 : index
      %c0_35 = arith.constant 0 : index
      %91 = vector.load %arg1[%c0_34, %c0_35] : memref<48x128xf32, #tpu.memory_space<vmem>>, vector<48x128xf32>
      %92 = arith.truncf %91 : vector<48x128xf32> to vector<48x128xbf16>
      %c0_36 = arith.constant 0 : index
      %c0_37 = arith.constant 0 : index
      %c0_38 = arith.constant 0 : index
      %93 = vector.load %arg5[%c0_36, %c0_37, %c0_38] : memref<9x128x128xbf16, #tpu.memory_space<vmem>>, vector<1x128x128xbf16>
      %94 = vector.shape_cast %93 : vector<1x128x128xbf16> to vector<128x128xbf16>
      %cst_39 = arith.constant dense<0.000000e+00> : vector<48x128xf32>
      %95 = tpu.matmul %92, %94, %cst_39 {dimension_numbers = #tpu.dot_dimension_numbers<[1], [0], [0], [1], [0, 0, 1, 1], [], []>} : vector<48x128xbf16>, vector<128x128xbf16>, vector<48x128xf32> -> vector<48x128xf32>
      %96 = arith.truncf %95 : vector<48x128xf32> to vector<48x128xbf16>
      %c0_40 = arith.constant 0 : index
      %c0_41 = arith.constant 0 : index
      %97 = vector.load %arg9[%c0_40, %c0_41] : memref<96x128xbf16, #tpu.memory_space<vmem>>, vector<48x128xbf16>
      tpu.vector_store %arg9[%c0_40, %c0_41], %96 {strides = array<i32>} : memref<96x128xbf16, #tpu.memory_space<vmem>>, vector<48x128xbf16>,
      %c1 = arith.constant 1 : index
      %c0_42 = arith.constant 0 : index
      %c0_43 = arith.constant 0 : index
      %98 = vector.load %arg5[%c1, %c0_42, %c0_43] : memref<9x128x128xbf16, #tpu.memory_space<vmem>>, vector<1x128x128xbf16>
      %99 = vector.shape_cast %98 : vector<1x128x128xbf16> to vector<128x128xbf16>
      %cst_44 = arith.constant dense<0.000000e+00> : vector<48x128xf32>
      %100 = tpu.matmul %92, %99, %cst_44 {dimension_numbers = #tpu.dot_dimension_numbers<[1], [0], [0], [1], [0, 0, 1, 1], [], []>} : vector<48x128xbf16>, vector<128x128xbf16>, vector<48x128xf32> -> vector<48x128xf32>
      %101 = arith.truncf %100 : vector<48x128xf32> to vector<48x128xbf16>
      %c48 = arith.constant 48 : index
      %c0_45 = arith.constant 0 : index
      %102 = vector.load %arg9[%c48, %c0_45] : memref<96x128xbf16, #tpu.memory_space<vmem>>, vector<48x128xbf16>
      tpu.vector_store %arg9[%c48, %c0_45], %101 {strides = array<i32>} : memref<96x128xbf16, #tpu.memory_space<vmem>>, vector<48x128xbf16>,
      %cst_46 = arith.constant 0.000000e+00 : f32
      %103 = vector.broadcast %cst_46 : f32 to vector<48x128xf32>
      %c0_47 = arith.constant 0 : index
      %c0_48 = arith.constant 0 : index
      %104 = vector.load %arg10[%c0_47, %c0_48] : memref<48x128xf32, #tpu.memory_space<vmem>>, vector<48x128xf32>
      tpu.vector_store %arg10[%c0_47, %c0_48], %103 {strides = array<i32>} : memref<48x128xf32, #tpu.memory_space<vmem>>, vector<48x128xf32>,
    } else {
    }
    %c0_2 = arith.constant 0 : index
    %c0_3 = arith.constant 0 : index
    %9 = vector.load %arg3[%c0_2, %c0_3] : memref<128x2xi32, #tpu.memory_space<vmem>>, vector<128x2xi32>
    %10 = tpu.iota {dimensions = array<i32: 1>} : vector<128x96xi32>
    %11 = vector.extract_strided_slice %9 {offsets = [0, 0], sizes = [128, 1], strides = [1, 1]} : vector<128x2xi32> to vector<128x1xi32>
    %12 = vector.broadcast %11 : vector<128x1xi32> to vector<128x96xi32>
    %13 = arith.cmpi eq, %10, %12 : vector<128x96xi32>
    %14 = vector.extract_strided_slice %9 {offsets = [0, 1], sizes = [128, 1], strides = [1, 1]} : vector<128x2xi32> to vector<128x1xi32>
    %15 = vector.broadcast %14 : vector<128x1xi32> to vector<128x96xi32>
    %16 = arith.cmpi eq, %10, %15 : vector<128x96xi32>
    %17 = arith.ori %13, %16 : vector<128x96xi1>
    %18 = arith.extui %17 : vector<128x96xi1> to vector<128x96xi32>
    %19 = arith.sitofp %18 : vector<128x96xi32> to vector<128x96xf32>
    %20 = arith.truncf %19 : vector<128x96xf32> to vector<128x96xbf16>
    %c0_4 = arith.constant 0 : index
    %c0_5 = arith.constant 0 : index
    %21 = vector.load %arg2[%c0_4, %c0_5] : memref<128x128xf32, #tpu.memory_space<vmem>>, vector<128x128xf32>
    %c0_6 = arith.constant 0 : index
    %c0_7 = arith.constant 0 : index
    %22 = vector.load %arg9[%c0_6, %c0_7] : memref<96x128xbf16, #tpu.memory_space<vmem>>, vector<96x128xbf16>
    %cst = arith.constant dense<0.000000e+00> : vector<128x128xf32>
    %23 = tpu.matmul %20, %22, %cst {dimension_numbers = #tpu.dot_dimension_numbers<[1], [0], [0], [1], [0, 0, 1, 1], [], []>} : vector<128x96xbf16>, vector<96x128xbf16>, vector<128x128xf32> -> vector<128x128xf32>
    %24 = arith.truncf %21 : vector<128x128xf32> to vector<128x128xbf16>
    %c2 = arith.constant 2 : index
    %c0_8 = arith.constant 0 : index
    %c0_9 = arith.constant 0 : index
    %25 = vector.load %arg5[%c2, %c0_8, %c0_9] : memref<9x128x128xbf16, #tpu.memory_space<vmem>>, vector<1x128x128xbf16>
    %26 = vector.shape_cast %25 : vector<1x128x128xbf16> to vector<128x128xbf16>
    %cst_10 = arith.constant dense<0.000000e+00> : vector<128x128xf32>
    %27 = tpu.matmul %24, %26, %cst_10 {dimension_numbers = #tpu.dot_dimension_numbers<[1], [0], [0], [1], [0, 0, 1, 1], [], []>} : vector<128x128xbf16>, vector<128x128xbf16>, vector<128x128xf32> -> vector<128x128xf32>
    %28 = arith.addf %23, %27 : vector<128x128xf32>
    %29 = vector.extract_strided_slice %0 {offsets = [0, 0], sizes = [1, 128], strides = [1, 1]} : vector<10x128xf32> to vector<1x128xf32>
    %30 = vector.broadcast %29 : vector<1x128xf32> to vector<128x128xf32>
    %31 = arith.addf %28, %30 : vector<128x128xf32>
    %cst_11 = arith.constant 0.000000e+00 : f32
    %32 = vector.broadcast %cst_11 : f32 to vector<128x128xf32>
    %33 = arith.maximumf %31, %32 : vector<128x128xf32>
    %34 = arith.truncf %33 : vector<128x128xf32> to vector<128x128xbf16>
    %c3 = arith.constant 3 : index
    %c0_12 = arith.constant 0 : index
    %c0_13 = arith.constant 0 : index
    %35 = vector.load %arg5[%c3, %c0_12, %c0_13] : memref<9x128x128xbf16, #tpu.memory_space<vmem>>, vector<1x128x128xbf16>
    %36 = vector.shape_cast %35 : vector<1x128x128xbf16> to vector<128x128xbf16>
    %cst_14 = arith.constant dense<0.000000e+00> : vector<128x128xf32>
    %37 = tpu.matmul %34, %36, %cst_14 {dimension_numbers = #tpu.dot_dimension_numbers<[1], [0], [0], [1], [0, 0, 1, 1], [], []>} : vector<128x128xbf16>, vector<128x128xbf16>, vector<128x128xf32> -> vector<128x128xf32>
    %38 = vector.extract_strided_slice %0 {offsets = [1, 0], sizes = [1, 128], strides = [1, 1]} : vector<10x128xf32> to vector<1x128xf32>
    %39 = vector.broadcast %38 : vector<1x128xf32> to vector<128x128xf32>
    %40 = arith.addf %37, %39 : vector<128x128xf32>
    %cst_15 = arith.constant 0.000000e+00 : f32
    %41 = vector.broadcast %cst_15 : f32 to vector<128x128xf32>
    %42 = arith.maximumf %40, %41 : vector<128x128xf32>
    %43 = arith.truncf %42 : vector<128x128xf32> to vector<128x128xbf16>
    %c4 = arith.constant 4 : index
    %c0_16 = arith.constant 0 : index
    %c0_17 = arith.constant 0 : index
    %44 = vector.load %arg5[%c4, %c0_16, %c0_17] : memref<9x128x128xbf16, #tpu.memory_space<vmem>>, vector<1x128x128xbf16>
    %45 = vector.shape_cast %44 : vector<1x128x128xbf16> to vector<128x128xbf16>
    %cst_18 = arith.constant dense<0.000000e+00> : vector<128x128xf32>
    %46 = tpu.matmul %43, %45, %cst_18 {dimension_numbers = #tpu.dot_dimension_numbers<[1], [0], [0], [1], [0, 0, 1, 1], [], []>} : vector<128x128xbf16>, vector<128x128xbf16>, vector<128x128xf32> -> vector<128x128xf32>
    %47 = vector.extract_strided_slice %0 {offsets = [2, 0], sizes = [1, 128], strides = [1, 1]} : vector<10x128xf32> to vector<1x128xf32>
    %48 = vector.broadcast %47 : vector<1x128xf32> to vector<128x128xf32>
    %49 = arith.addf %46, %48 : vector<128x128xf32>
    %50 = vector.extract_strided_slice %0 {offsets = [3, 0], sizes = [1, 128], strides = [1, 1]} : vector<10x128xf32> to vector<1x128xf32>
    %51 = vector.extract_strided_slice %0 {offsets = [4, 0], sizes = [1, 128], strides = [1, 1]} : vector<10x128xf32> to vector<1x128xf32>
    %cst_19 = arith.constant dense<0.000000e+00> : vector<128xf32>
    %52 = vector.multi_reduction <add>, %49, %cst_19 [1] : vector<128x128xf32> to vector<128xf32>
    %53 = vector.shape_cast %52 : vector<128xf32> to vector<128x1xf32>
    %cst_20 = arith.constant 3.125000e-02 : f32
    %54 = vector.broadcast %cst_20 : f32 to vector<128x1xf32>
    %55 = arith.mulf %53, %54 : vector<128x1xf32>
    %56 = vector.broadcast %55 : vector<128x1xf32> to vector<128x128xf32>
    %57 = arith.subf %49, %56 : vector<128x128xf32>
    %58 = vector.broadcast %5 : vector<1x128xf32> to vector<128x128xf32>
    %59 = arith.mulf %57, %58 : vector<128x128xf32>
    %60 = arith.mulf %59, %59 : vector<128x128xf32>
    %cst_21 = arith.constant dense<0.000000e+00> : vector<128xf32>
    %61 = vector.multi_reduction <add>, %60, %cst_21 [1] : vector<128x128xf32> to vector<128xf32>
    %62 = vector.shape_cast %61 : vector<128xf32> to vector<128x1xf32>
    %cst_22 = arith.constant 3.125000e-02 : f32
    %63 = vector.broadcast %cst_22 : f32 to vector<128x1xf32>
    %64 = arith.mulf %62, %63 : vector<128x1xf32>
    %cst_23 = arith.constant 9.99999974E-6 : f32
    %65 = vector.broadcast %cst_23 : f32 to vector<128x1xf32>
    %66 = arith.addf %64, %65 : vector<128x1xf32>
    %67 = math.rsqrt %66 : vector<128x1xf32>
    %68 = vector.broadcast %67 : vector<128x1xf32> to vector<128x128xf32>
    %69 = arith.mulf %59, %68 : vector<128x128xf32>
    %70 = vector.broadcast %50 : vector<1x128xf32> to vector<128x128xf32>
    %71 = arith.mulf %69, %70 : vector<128x128xf32>
    %72 = vector.broadcast %51 : vector<1x128xf32> to vector<128x128xf32>
    %73 = arith.addf %71, %72 : vector<128x128xf32>
    %74 = arith.addf %21, %73 : vector<128x128xf32>
    %c0_24 = arith.constant 0 : index
    %c0_25 = arith.constant 0 : index
    %75 = vector.load %arg8[%c0_24, %c0_25] : memref<128x128xf32, #tpu.memory_space<vmem>>, vector<128x128xf32>
    tpu.vector_store %arg8[%c0_24, %c0_25], %74 {strides = array<i32>} : memref<128x128xf32, #tpu.memory_space<vmem>>, vector<128x128xf32>,
    %76 = tpu.iota {dimensions = array<i32: 0>} : vector<48x128xi32>
    %c0_26 = arith.constant 0 : index
    %c0_27 = arith.constant 0 : index
    %77 = vector.load %arg4[%c0_26, %c0_27] : memref<1x128xi32, #tpu.memory_space<vmem>>, vector<1x128xi32>
    %78 = vector.broadcast %77 : vector<1x128xi32> to vector<48x128xi32>
    %79 = arith.cmpi eq, %78, %76 : vector<48x128xi32>
    %80 = arith.extui %79 : vector<48x128xi1> to vector<48x128xi32>
    %81 = arith.sitofp %80 : vector<48x128xi32> to vector<48x128xf32>
    %82 = arith.truncf %81 : vector<48x128xf32> to vector<48x128xbf16>
    %c0_28 = arith.constant 0 : index
    %c0_29 = arith.constant 0 : index
    %83 = vector.load %arg10[%c0_28, %c0_29] : memref<48x128xf32, #tpu.memory_space<vmem>>, vector<48x128xf32>
    %84 = arith.truncf %74 : vector<128x128xf32> to vector<128x128xbf16>
    %cst_30 = arith.constant dense<0.000000e+00> : vector<48x128xf32>
    %85 = tpu.matmul %82, %84, %cst_30 {dimension_numbers = #tpu.dot_dimension_numbers<[1], [0], [0], [1], [0, 0, 1, 1], [], []>} : vector<48x128xbf16>, vector<128x128xbf16>, vector<48x128xf32> -> vector<48x128xf32>
    %86 = arith.addf %83, %85 : vector<48x128xf32>
    %c0_31 = arith.constant 0 : index
    %c0_32 = arith.constant 0 : index
    %87 = vector.load %arg10[%c0_31, %c0_32] : memref<48x128xf32, #tpu.memory_space<vmem>>, vector<48x128xf32>
    tpu.vector_store %arg10[%c0_31, %c0_32], %86 {strides = array<i32>} : memref<48x128xf32, #tpu.memory_space<vmem>>, vector<48x128xf32>,
    %c2_i32 = arith.constant 2 : i32
    %88 = arith.cmpi eq, %arg0, %c2_i32 : i32
    %89 = arith.extui %88 : i1 to i32
    %c0_i32_33 = arith.constant 0 : i32
    %90 = arith.cmpi ne, %89, %c0_i32_33 : i32
    scf.if %90 {
      %c0_34 = arith.constant 0 : index
      %c0_35 = arith.constant 0 : index
      %91 = vector.load %arg1[%c0_34, %c0_35] : memref<48x128xf32, #tpu.memory_space<vmem>>, vector<48x128xf32>
      %92 = arith.truncf %91 : vector<48x128xf32> to vector<48x128xbf16>
      %c5 = arith.constant 5 : index
      %c0_36 = arith.constant 0 : index
      %c0_37 = arith.constant 0 : index
      %93 = vector.load %arg5[%c5, %c0_36, %c0_37] : memref<9x128x128xbf16, #tpu.memory_space<vmem>>, vector<1x128x128xbf16>
      %94 = vector.shape_cast %93 : vector<1x128x128xbf16> to vector<128x128xbf16>
      %cst_38 = arith.constant dense<0.000000e+00> : vector<48x128xf32>
      %95 = tpu.matmul %92, %94, %cst_38 {dimension_numbers = #tpu.dot_dimension_numbers<[1], [0], [0], [1], [0, 0, 1, 1], [], []>} : vector<48x128xbf16>, vector<128x128xbf16>, vector<48x128xf32> -> vector<48x128xf32>
      %c0_39 = arith.constant 0 : index
      %c0_40 = arith.constant 0 : index
      %96 = vector.load %arg10[%c0_39, %c0_40] : memref<48x128xf32, #tpu.memory_space<vmem>>, vector<48x128xf32>
      %97 = arith.truncf %96 : vector<48x128xf32> to vector<48x128xbf16>
      %c6 = arith.constant 6 : index
      %c0_41 = arith.constant 0 : index
      %c0_42 = arith.constant 0 : index
      %98 = vector.load %arg5[%c6, %c0_41, %c0_42] : memref<9x128x128xbf16, #tpu.memory_space<vmem>>, vector<1x128x128xbf16>
      %99 = vector.shape_cast %98 : vector<1x128x128xbf16> to vector<128x128xbf16>
      %cst_43 = arith.constant dense<0.000000e+00> : vector<48x128xf32>
      %100 = tpu.matmul %97, %99, %cst_43 {dimension_numbers = #tpu.dot_dimension_numbers<[1], [0], [0], [1], [0, 0, 1, 1], [], []>} : vector<48x128xbf16>, vector<128x128xbf16>, vector<48x128xf32> -> vector<48x128xf32>
      %101 = arith.addf %95, %100 : vector<48x128xf32>
      %102 = vector.extract_strided_slice %0 {offsets = [5, 0], sizes = [1, 128], strides = [1, 1]} : vector<10x128xf32> to vector<1x128xf32>
      %103 = vector.broadcast %102 : vector<1x128xf32> to vector<48x128xf32>
      %104 = arith.addf %101, %103 : vector<48x128xf32>
      %cst_44 = arith.constant 0.000000e+00 : f32
      %105 = vector.broadcast %cst_44 : f32 to vector<48x128xf32>
      %106 = arith.maximumf %104, %105 : vector<48x128xf32>
      %107 = arith.truncf %106 : vector<48x128xf32> to vector<48x128xbf16>
      %c7 = arith.constant 7 : index
      %c0_45 = arith.constant 0 : index
      %c0_46 = arith.constant 0 : index
      %108 = vector.load %arg5[%c7, %c0_45, %c0_46] : memref<9x128x128xbf16, #tpu.memory_space<vmem>>, vector<1x128x128xbf16>
      %109 = vector.shape_cast %108 : vector<1x128x128xbf16> to vector<128x128xbf16>
      %cst_47 = arith.constant dense<0.000000e+00> : vector<48x128xf32>
      %110 = tpu.matmul %107, %109, %cst_47 {dimension_numbers = #tpu.dot_dimension_numbers<[1], [0], [0], [1], [0, 0, 1, 1], [], []>} : vector<48x128xbf16>, vector<128x128xbf16>, vector<48x128xf32> -> vector<48x128xf32>
      %111 = vector.extract_strided_slice %0 {offsets = [6, 0], sizes = [1, 128], strides = [1, 1]} : vector<10x128xf32> to vector<1x128xf32>
      %112 = vector.broadcast %111 : vector<1x128xf32> to vector<48x128xf32>
      %113 = arith.addf %110, %112 : vector<48x128xf32>
      %cst_48 = arith.constant 0.000000e+00 : f32
      %114 = vector.broadcast %cst_48 : f32 to vector<48x128xf32>
      %115 = arith.maximumf %113, %114 : vector<48x128xf32>
      %116 = arith.truncf %115 : vector<48x128xf32> to vector<48x128xbf16>
      %c8 = arith.constant 8 : index
      %c0_49 = arith.constant 0 : index
      %c0_50 = arith.constant 0 : index
      %117 = vector.load %arg5[%c8, %c0_49, %c0_50] : memref<9x128x128xbf16, #tpu.memory_space<vmem>>, vector<1x128x128xbf16>
      %118 = vector.shape_cast %117 : vector<1x128x128xbf16> to vector<128x128xbf16>
      %cst_51 = arith.constant dense<0.000000e+00> : vector<48x128xf32>
      %119 = tpu.matmul %116, %118, %cst_51 {dimension_numbers = #tpu.dot_dimension_numbers<[1], [0], [0], [1], [0, 0, 1, 1], [], []>} : vector<48x128xbf16>, vector<128x128xbf16>, vector<48x128xf32> -> vector<48x128xf32>
      %120 = vector.extract_strided_slice %0 {offsets = [7, 0], sizes = [1, 128], strides = [1, 1]} : vector<10x128xf32> to vector<1x128xf32>
      %121 = vector.broadcast %120 : vector<1x128xf32> to vector<48x128xf32>
      %122 = arith.addf %119, %121 : vector<48x128xf32>
      %123 = vector.extract_strided_slice %0 {offsets = [8, 0], sizes = [1, 128], strides = [1, 1]} : vector<10x128xf32> to vector<1x128xf32>
      %124 = vector.extract_strided_slice %0 {offsets = [9, 0], sizes = [1, 128], strides = [1, 1]} : vector<10x128xf32> to vector<1x128xf32>
      %cst_52 = arith.constant dense<0.000000e+00> : vector<48xf32>
      %125 = vector.multi_reduction <add>, %122, %cst_52 [1] : vector<48x128xf32> to vector<48xf32>
      %126 = vector.shape_cast %125 : vector<48xf32> to vector<48x1xf32>
      %cst_53 = arith.constant 3.125000e-02 : f32
      %127 = vector.broadcast %cst_53 : f32 to vector<48x1xf32>
      %128 = arith.mulf %126, %127 : vector<48x1xf32>
      %129 = vector.broadcast %128 : vector<48x1xf32> to vector<48x128xf32>
      %130 = arith.subf %122, %129 : vector<48x128xf32>
      %131 = vector.broadcast %5 : vector<1x128xf32> to vector<48x128xf32>
      %132 = arith.mulf %130, %131 : vector<48x128xf32>
      %133 = arith.mulf %132, %132 : vector<48x128xf32>
      %cst_54 = arith.constant dense<0.000000e+00> : vector<48xf32>
      %134 = vector.multi_reduction <add>, %133, %cst_54 [1] : vector<48x128xf32> to vector<48xf32>
      %135 = vector.shape_cast %134 : vector<48xf32> to vector<48x1xf32>
      %cst_55 = arith.constant 3.125000e-02 : f32
      %136 = vector.broadcast %cst_55 : f32 to vector<48x1xf32>
      %137 = arith.mulf %135, %136 : vector<48x1xf32>
      %cst_56 = arith.constant 9.99999974E-6 : f32
      %138 = vector.broadcast %cst_56 : f32 to vector<48x1xf32>
      %139 = arith.addf %137, %138 : vector<48x1xf32>
      %140 = math.rsqrt %139 : vector<48x1xf32>
      %141 = vector.broadcast %140 : vector<48x1xf32> to vector<48x128xf32>
      %142 = arith.mulf %132, %141 : vector<48x128xf32>
      %143 = vector.broadcast %123 : vector<1x128xf32> to vector<48x128xf32>
      %144 = arith.mulf %142, %143 : vector<48x128xf32>
      %145 = vector.broadcast %124 : vector<1x128xf32> to vector<48x128xf32>
      %146 = arith.addf %144, %145 : vector<48x128xf32>
      %147 = arith.addf %91, %146 : vector<48x128xf32>
      %c0_57 = arith.constant 0 : index
      %c0_58 = arith.constant 0 : index
      %148 = vector.load %arg7[%c0_57, %c0_58] : memref<48x128xf32, #tpu.memory_space<vmem>>, vector<48x128xf32>
      tpu.vector_store %arg7[%c0_57, %c0_58], %147 {strides = array<i32>} : memref<48x128xf32, #tpu.memory_space<vmem>>, vector<48x128xf32>,
    } else {
    }
    return
  }
  func.func @transform_0(%arg0: i32) -> (i32, i32) {
    %c0_i32 = arith.constant 0 : i32
    %c0_i32_0 = arith.constant 0 : i32
    %c0_i32_1 = arith.constant 0 : i32
    return %c0_i32, %c0_i32_0 : i32, i32
  }
  func.func @transform_1(%arg0: i32) -> (i32, i32) {
    %c0_i32 = arith.constant 0 : i32
    %c0_i32_0 = arith.constant 0 : i32
    return %arg0, %c0_i32 : i32, i32
  }
  func.func @transform_2(%arg0: i32) -> (i32, i32) {
    %c0_i32 = arith.constant 0 : i32
    %c0_i32_0 = arith.constant 0 : i32
    return %arg0, %c0_i32 : i32, i32
  }
  func.func @transform_3(%arg0: i32) -> (i32, i32) {
    %c0_i32 = arith.constant 0 : i32
    %c0_i32_0 = arith.constant 0 : i32
    return %c0_i32, %arg0 : i32, i32
  }
  func.func @transform_4(%arg0: i32) -> (i32, i32, i32) {
    %c0_i32 = arith.constant 0 : i32
    %c0_i32_0 = arith.constant 0 : i32
    %c0_i32_1 = arith.constant 0 : i32
    %c0_i32_2 = arith.constant 0 : i32
    return %c0_i32, %c0_i32_0, %c0_i32_1 : i32, i32, i32
  }
  func.func @transform_5(%arg0: i32) -> (i32, i32) {
    %c0_i32 = arith.constant 0 : i32
    %c0_i32_0 = arith.constant 0 : i32
    %c0_i32_1 = arith.constant 0 : i32
    return %c0_i32, %c0_i32_0 : i32, i32
  }
  func.func @transform_6(%arg0: i32) -> (i32, i32) {
    %c0_i32 = arith.constant 0 : i32
    %c0_i32_0 = arith.constant 0 : i32
    %c0_i32_1 = arith.constant 0 : i32
    return %c0_i32, %c0_i32_0 : i32, i32
  }
  func.func @transform_7(%arg0: i32) -> (i32, i32) {
    %c0_i32 = arith.constant 0 : i32
    %c0_i32_0 = arith.constant 0 : i32
    return %arg0, %c0_i32 : i32, i32
  }
}

</mosaic_0001>

<bundles_post_ra>
// kernel: tpu_custom_call.1
= control target key start
LH: loop header
LB: loop body
LE: loop exit
PB: predicated region body
PF: predicated region fallthrough
CT: control target
= control target key end

     0   :  { %s4966_s0 = inlined_call_operand.hbm [shape: f32[48,128], index: 0, kind: input, shape index: {}]   ;;  %s4967_s1 = inlined_call_operand.hbm [shape: f32[384,128], index: 1, kind: input, shape index: {}]   ;;  %s4968_s2 = inlined_call_operand.hbm [shape: s32[384,2], index: 2, kind: input, shape index: {}]   ;;  %s4969_s3 = inlined_call_operand.hbm [shape: s32[1,384], index: 3, kind: input, shape index: {}]   ;;  %s4970_s4 = inlined_call_operand.hbm [shape: bf16[9,128,128], index: 4, kind: input, shape index: {}]   ;;  %s4971_s5 = inlined_call_operand.hbm [shape: f32[10,128], index: 5, kind: input, shape index: {}]   ;;  %s4972_s6 = inlined_call_operand.hbm [shape: f32[48,128], index: 6, kind: output, shape index: {0}]   ;;  %s4973_s7 = inlined_call_operand.hbm [shape: f32[384,128], index: 7, kind: output, shape index: {1}]  }
   0x1   :  { %4995 = sst [smem:[#allocation30_spill]] %s4967_s1 }
   0x2   :  { %4996 = sst [smem:[#allocation31_spill]] %s4970_s4 }
   0x3   :  { %4997 = sst [smem:[#allocation32_spill]] %s4972_s6 }
   0x4   :  { %4998 = sst [smem:[#allocation33_spill]] %s4973_s7 }
   0x5   :  { %13 = vsyncpa [#allocation5], 0 }
   0x6   :  { %14 = vsyncpa [#allocation8], 0 }
   0x7   :  { %16 = vsyncpa [#allocation8 + $0x1], 0 }
   0x8   :  { %17 = vsyncpa [#allocation11], 0 }
   0x9   :  { %19 = vsyncpa [#allocation11 + $0x1], 0 }
   0xa   :  { %20 = vsyncpa [#allocation14], 0 }
   0xb   :  { %21 = vsyncpa [#allocation6], 0 }
   0xc   :  { %22 = vsyncpa [#allocation17], 0 }
   0xd   :  { %24 = vsyncpa [#allocation17 + $0x1], 0  ;;  %s4067_s24 = smov 0   ;;  %s4069_s25 = smov 0  }
   0xe   :  { %s4071_s26 = smov 0   ;;  %s4073_s27 = smov 0  }
   0xf LB: > { %4999 = sst [smem:[#allocation25_spill]] %s3990_s24  ;;  %s4088_s28 = sadd.s32 4294967295, %s4002_s27   ;;  %s4002_s27 = sphi %s4073_s27, %s5044_s27   ;;  %s3998_s26 = sphi %s4071_s26, %s5048_s26   ;;  %s3994_s25 = sphi %s4069_s25, %s5047_s25   ;;  %s3990_s24 = sphi %s4067_s24, %s5046_s24  }
  0x10   : > { %s2824_s29 = sadd.s32 4294967294, %s4002_s27   ;;  %p71_p0 = scmp.ne.s32.totalorder %s3994_s25, %s3990_s24 }
  0x11   : > { %p4974_p1 = scmp.eq.s32.totalorder %s4088_s28, 0  ;;  %p216_p3 = scmp.eq.s32.totalorder %s2824_s29, 2 }
  0x12   : > { %p2825_p5 = scmp.ge.s32.totalorder %s4002_s27, 1  ;;  %p223_p7 = scmp.lt.s32.totalorder %s4002_s27, 4 }
  0x13   : > { %p4097_p4 = por %p4974_p1, %p71_p0  ;;  %p4102_p6 = por %p216_p3, %p71_p0 }
  0x14   : > { %p4108_p9 = pnand %p2825_p5, %p223_p7  ;;  %s4004_s10 = smov [#allocation12]  }
  0x15   : > { %s5000_s30 = scalar_select %p4097_p4, 1, 0 }
  0x16   : > { %s5001_s8 = scalar_select %p4102_p6, 1, 0 }
  0x17   : > { %s5003_s9 = scalar_select %p4108_p9, 1, 0 }
  0x18   : > { %5002 = sst [smem:[#allocation26_spill]] %s5001_s8  ;;  %s248_s11 = sshll.u32 %s4004_s10, 4  ;;  %s249_s11 = int_to_ptr.vmem [resolvable:$true] %s248_s11 }
  0x19   : > { %p3481_p10 = pneg %p4108_p9  ;;  %s4121_s13 = sadd.s32 1, %s4002_s27  }
  0x1a   : > { %5005 = sst [smem:[#allocation27_spill]] %s4121_s13  ;;  %s58_s14 = sadd.s32 1, %s3998_s26 }
  0x1b   : > { %p4116_p11 = pnand %p3481_p10, %p4974_p1  ;;  %s55_s15 = ssub.s32 %s4002_s27, %s4121_s13 }
  0x1c   : > { %s5006_s4 = sld [smem:[#allocation31_spill]] }
  0x1d   : > { %s5004_s12 = scalar_select %p4116_p11, 1, 0 }
  0x1e   : > { %p4134_p13 = pneg %p4116_p11 }
  0x20   : > { %s5007_s21 = scalar_select %p4134_p13, 1, 0 }
  0x22   : > { %s3716_s18 = scalar_lea.hbm %s5006_s4, 9216 }
  0x23   : > { %p3717_p12 = scmp.ne.s32.totalorder %s5006_s4, %s3716_s18  ;;  %p3723_p5 = scmp.lt.u32.totalorder %s3716_s18, %s5006_s4 }
  0x25   : > { %p3719_p0 = pnand %p4134_p13, %p3717_p12 }
  0x27   : > { %p3720_p3 = pneg %p3719_p0 }
  0x29   : > { %p3725_p7 = pnand %p3723_p5, %p3720_p3 }
  0x2b   : > { %3728 = shalt.err (!%p3725_p7)
}
  0x2c   : > { %s3729_s29 = scalar_lea.vmem %s249_s11, 9216  ;;  %p3737_p2 = scmp.lt.s32.totalorder %s249_s11, %s249_s11 }
  0x2d   : > { %p3730_p10 = scmp.ne.s32.totalorder %s249_s11, %s3729_s29  ;;  %p3738_p6 = scmp.lt.s32.totalorder %s3729_s29, %s3729_s29 }
  0x2f   : > { %p3732_p8 = pnand %p3730_p10, %p4134_p13  ;;  %p3739_p4 = por %p3738_p6, %p3737_p2 }
  0x31   : > { %p3733_p1 = pneg %p3732_p8 }
  0x33   : > { %p3740_p9 = pnand %p3739_p4, %p3733_p1 }
  0x35   : > { %3743 = shalt.err (!%p3740_p9)
}
  0x36   : > { %s4005_s10 = smov 64   ;;  %s4006_s16 = smov 4  }
  0x37   : > { %3487 = dma.hbm_to_vmem [thread:$0]  (!%p4116_p11), %s5006_s4, 9216, %s249_s11, [#allocation11], %s4005_s10, %s4005_s10, %s4006_s16  }
  0x38   : > { %p56_p1 = scmp.eq.s32.totalorder %s55_s15, 0  ;;  %p65_p2 = scmp.ne.s32.totalorder %s3998_s26, %s3994_s25 }
  0x39   : > { %p66_p4 = scmp.eq.s32.totalorder %s4002_s27, 0  ;;  %p5009_p8 = scmp.eq.s32.totalorder %s4088_s28, 2 }
  0x3a   : > { %s4154_s19 = scalar_select %p56_p1, %s3998_s26, %s58_s14  }
  0x3b   : > { %p67_p6 = por %p66_p4, %p65_p2  ;;  %p4158_p9 = por %p5009_p8, %p65_p2 }
  0x3c   : > { %5008 = sst [smem:[#allocation28_spill]] %s4154_s19  ;;  %p3508_p12 = scmp.lt.s32.totalorder %s4002_s27, 3 }
  0x3d   : > { %s5010_s20 = scalar_select %p4158_p9, 1, 0 }
  0x3e   : > { %s4979_s23 = sand.u32 1, %s3998_s26   ;;  %s2963_s13 = sshll.u32 %s4002_s27, 11 }
  0x3f   : > { %5011 = sst [smem:[#allocation29_spill]] %s5010_s20  ;;  %s2830_s29 = sshll.u32 %s4979_s23, 7 }
  0x40   : > { %s5012_s1 = sld [smem:[#allocation30_spill]]  ;;  %s279_s14 = scalar_lea.vmem [#allocation7], %s2830_s29 }
  0x41   : > { %s286_s10 = sshll.u32 %s279_s14, 4  ;;  %p4175_p0 = pnand %p3508_p12, %p67_p6  ;;  %s4173_s10 = int_to_ptr.vmem [resolvable:$true] %s286_s10 }
  0x42   : > { %s4182_s22 = scalar_lea.hbm %s4968_s2, %s2963_s13  ;;  %s300_s17 = scalar_lea.vmem [#allocation9], %s2830_s29 }
  0x43   : > { %s5013_s16 = scalar_select %p4175_p0, 1, 0 }
  0x44   : > { %s4184_s11 = sshll.u32 %s300_s17, 4  ;;  %s5014_s4 = sand.u32 1, %s4002_s27   ;;  %s4222_s11 = int_to_ptr.vmem [resolvable:$true] %s4184_s11 }
  0x45   : > { %s4188_s19 = scalar_lea.sflag [#allocation8], %s5014_s4  ;;  %p4194_p5 = pneg %p4175_p0 }
  0x46   : > { %s4171_s15 = scalar_lea.hbm %s5012_s1, %s2963_s13  ;;  %s3749_s29 = scalar_lea.hbm %s5012_s1, 6144 }
  0x47   : > { %s3744_s14 = scalar_lea.hbm %s4171_s15, 2048  ;;  %p3750_p1 = scmp.lt.u32.totalorder %s4171_s15, %s5012_s1 }
  0x48   : > { %p3745_p3 = scmp.ne.s32.totalorder %s4171_s15, %s3744_s14  ;;  %p3751_p2 = scmp.lt.u32.totalorder %s3749_s29, %s3744_s14 }
  0x49   : > { %s5015_s8 = scalar_select %p4194_p5, 1, 0 }
  0x4a   : > { %p3747_p7 = pnand %p4194_p5, %p3745_p3  ;;  %p3752_p4 = por %p3751_p2, %p3750_p1 }
  0x4b   : > { %p3753_p6 = scmp.lt.u32.totalorder %s3744_s14, %s4171_s15 }
  0x4c   : > { %p3748_p10 = pneg %p3747_p7 }
  0x4d   : > { %p3754_p8 = por %p3753_p6, %p3752_p4 }
  0x4f   : > { %p3755_p12 = pnand %p3754_p8, %p3748_p10 }
  0x51   : > { %3758 = shalt.err (!%p3755_p12)
}
  0x52   : > { %s3759_s4 = scalar_lea.vmem %s4173_s10, 2048  ;;  %s4007_s23 = smov [#allocation7]  }
  0x53   : > { %p3760_p3 = scmp.ne.s32.totalorder %s4173_s10, %s3759_s4  ;;  %s3764_s13 = sshll.u32 %s4007_s23, 4  ;;  %s3765_s13 = int_to_ptr.vmem [resolvable:$false] %s3764_s13 }
  0x54   : > { %s3766_s18 = scalar_lea.vmem %s3765_s13, 4096  ;;  %p3767_p11 = scmp.lt.s32.totalorder %s4173_s10, %s3765_s13 }
  0x55   : > { %p3762_p7 = pnand %p3760_p3, %p4194_p5  ;;  %p3768_p13 = scmp.lt.s32.totalorder %s3766_s18, %s3759_s4 }
  0x57   : > { %p3763_p9 = pneg %p3762_p7  ;;  %p3769_p1 = por %p3768_p13, %p3767_p11 }
  0x59   : > { %p3770_p2 = pnand %p3769_p1, %p3763_p9 }
  0x5b   : > { %3773 = shalt.err (!%p3770_p2)
}
  0x5c   : > { %s4008_s14 = smov 128   ;;  %s4009_s29 = smov 8  }
  0x5d   : > { %3494 = dma.hbm_to_vmem [thread:$0]  (!%p4175_p0), %s4171_s15, 2048, %s4173_s10, %s4188_s19, %s4008_s14, %s4008_s14, %s4009_s29  }
  0x5e   : > { %s4010_s17 = smov [#allocation4]   ;;  %s4011_s23 = smov [#allocation13]  }
  0x5f   : > { %s235_s4 = sshll.u32 %s4010_s17, 4  ;;  %s261_s13 = sshll.u32 %s4011_s23, 4  ;;  %s236_s4 = int_to_ptr.vmem [resolvable:$true] %s235_s4  ;;  %s262_s13 = int_to_ptr.vmem [resolvable:$true] %s261_s13 }
  0x60   : > { %s3774_s24 = scalar_lea.hbm %s4966_s0, 768  ;;  %p5016_p13 = scmp.ne.s32.totalorder %s5007_s21, 0 }
  0x61   : > { %p3775_p11 = scmp.ne.s32.totalorder %s4966_s0, %s3774_s24  ;;  %p3781_p4 = scmp.lt.u32.totalorder %s3774_s24, %s4966_s0 }
  0x63   : > { %p3777_p9 = pnand %p3775_p11, %p5016_p13 }
  0x65   : > { %p3778_p10 = pneg %p3777_p9 }
  0x67   : > { %p3783_p6 = pnand %p3781_p4, %p3778_p10 }
  0x69   : > { %3786 = shalt.err (!%p3783_p6)
}
  0x6a   : > { %s3787_s10 = scalar_lea.vmem %s236_s4, 768  ;;  %p3795_p7 = scmp.lt.s32.totalorder %s236_s4, %s236_s4 }
  0x6b   : > { %p3788_p8 = scmp.ne.s32.totalorder %s236_s4, %s3787_s10  ;;  %p3796_p1 = scmp.lt.s32.totalorder %s3787_s10, %s3787_s10 }
  0x6d   : > { %p3790_p12 = pnand %p3788_p8, %p5016_p13  ;;  %p3797_p2 = por %p3796_p1, %p3795_p7 }
  0x6f   : > { %p3791_p3 = pneg %p3790_p12 }
  0x71   : > { %p3798_p0 = pnand %p3797_p2, %p3791_p3 }
  0x73   : > { %3801 = shalt.err (!%p3798_p0)
}
  0x74   : > { %p5017_p11 = scmp.ne.s32.totalorder %s5004_s12, 0  ;;  %s3802_s20 = scalar_lea.hbm %s4971_s5, 256 }
  0x75   : > { %p3803_p9 = scmp.ne.s32.totalorder %s4971_s5, %s3802_s20  ;;  %p3809_p4 = scmp.lt.u32.totalorder %s3802_s20, %s4971_s5 }
  0x76   : > { %3484 = dma.hbm_to_vmem [thread:$0]  (!%p5017_p11), %s4966_s0, 768, %s236_s4, [#allocation5], %s4008_s14, %s4008_s14, %s4009_s29  }
  0x77   : > { %p3805_p0 = pnand %p3803_p9, %p5016_p13 }
  0x79   : > { %p3806_p10 = pneg %p3805_p0 }
  0x7b   : > { %p3811_p6 = pnand %p3809_p4, %p3806_p10 }
  0x7d   : > { %3814 = shalt.err (!%p3811_p6)
}
  0x7e   : > { %s3815_s10 = scalar_lea.vmem %s262_s13, 256  ;;  %p3823_p7 = scmp.lt.s32.totalorder %s262_s13, %s262_s13 }
  0x7f   : > { %p3816_p8 = scmp.ne.s32.totalorder %s262_s13, %s3815_s10  ;;  %p3824_p1 = scmp.lt.s32.totalorder %s3815_s10, %s3815_s10 }
  0x81   : > { %p3818_p12 = pnand %p3816_p8, %p5016_p13  ;;  %p3825_p2 = por %p3824_p1, %p3823_p7 }
  0x83   : > { %p3819_p3 = pneg %p3818_p12 }
  0x85   : > { %p3826_p5 = pnand %p3825_p2, %p3819_p3 }
  0x87   : > { %3829 = shalt.err (!%p3826_p5)
}
  0x88   : > { %3490 = dma.hbm_to_vmem [thread:$0]  (!%p5017_p11), %s4971_s5, 256, %s262_s13, [#allocation14], %s4008_s14, %s4008_s14, %s4009_s29  }
  0x89   : > { %s3830_s21 = scalar_lea.hbm %s4182_s22, 2048  ;;  %p5018_p9 = scmp.ne.s32.totalorder %s5015_s8, 0 }
  0x8a   : > { %p3831_p13 = scmp.ne.s32.totalorder %s4182_s22, %s3830_s21  ;;  %s3835_s12 = scalar_lea.hbm %s4968_s2, 6144 }
  0x8b   : > { %p3836_p5 = scmp.lt.u32.totalorder %s4182_s22, %s4968_s2  ;;  %p3837_p4 = scmp.lt.u32.totalorder %s3835_s12, %s3830_s21 }
  0x8c   : > { %p3833_p0 = pnand %p3831_p13, %p5018_p9  ;;  %p3839_p8 = scmp.lt.u32.totalorder %s3830_s21, %s4182_s22 }
  0x8d   : > { %p3838_p6 = por %p3837_p4, %p3836_p5 }
  0x8e   : > { %p3834_p10 = pneg %p3833_p0 }
  0x8f   : > { %p3840_p12 = por %p3839_p8, %p3838_p6 }
  0x91   : > { %p3841_p3 = pnand %p3840_p12, %p3834_p10 }
  0x93   : > { %3844 = shalt.err (!%p3841_p3)
}
  0x94   : > { %s3845_s13 = scalar_lea.vmem %s4222_s11, 2048  ;;  %s4012_s17 = smov [#allocation9]  }
  0x95   : > { %p3846_p11 = scmp.ne.s32.totalorder %s4222_s11, %s3845_s13  ;;  %s3850_s23 = sshll.u32 %s4012_s17, 4  ;;  %s3851_s23 = int_to_ptr.vmem [resolvable:$false] %s3850_s23 }
  0x96   : > { %s3852_s18 = scalar_lea.vmem %s3851_s23, 4096  ;;  %p3853_p2 = scmp.lt.s32.totalorder %s4222_s11, %s3851_s23 }
  0x97   : > { %p3848_p7 = pnand %p3846_p11, %p5018_p9  ;;  %p3854_p13 = scmp.lt.s32.totalorder %s3852_s18, %s3845_s13 }
  0x99   : > { %p3849_p1 = pneg %p3848_p7  ;;  %p3855_p0 = por %p3854_p13, %p3853_p2 }
  0x9b   : > { %p3856_p5 = pnand %p3855_p0, %p3849_p1 }
  0x9d   : > { %3859 = shalt.err (!%p3856_p5)
}
  0x9e   : > { %p5019_p10 = scmp.ne.s32.totalorder %s5013_s16, 0  ;;  %s2836_s15 = sshll.u32 %s4002_s27, 4 }
  0x9f   : > { %s4295_s1 = scalar_lea.hbm %s4969_s3, %s2836_s15  ;;  %s5020_s21 = sand.u32 1, %s3998_s26  }
  0xa0   : > { %3497 = dma.hbm_to_vmem [thread:$0]  (!%p5019_p10), %s4182_s22, 2048, %s4222_s11, %s4188_s19, %s4008_s14, %s4008_s14, %s4009_s29  }
  0xa1   : > { %s320_s6 = scalar_lea.vmem [#allocation10], %s5020_s21  ;;  %s5021_s12 = sand.u32 1, %s4002_s27  }
  0xa2   : > { %s327_s7 = sshll.u32 %s320_s6, 4  ;;  %s318_s24 = scalar_lea.sflag [#allocation11], %s5021_s12  ;;  %s328_s7 = int_to_ptr.vmem [resolvable:$true] %s327_s7 }
  0xa3   : > { %s3860_s20 = scalar_lea.hbm %s4295_s1, 16  ;;  %s3865_s11 = scalar_lea.hbm %s4969_s3, 48 }
  0xa4   : > { %p3861_p4 = scmp.ne.s32.totalorder %s4295_s1, %s3860_s20  ;;  %p3866_p12 = scmp.lt.u32.totalorder %s4295_s1, %s4969_s3 }
  0xa5   : > { %p3867_p3 = scmp.lt.u32.totalorder %s3865_s11, %s3860_s20  ;;  %p3869_p7 = scmp.lt.u32.totalorder %s3860_s20, %s4295_s1 }
  0xa6   : > { %p3863_p6 = pnand %p3861_p4, %p5018_p9 }
  0xa7   : > { %p3868_p11 = por %p3867_p3, %p3866_p12 }
  0xa8   : > { %p3864_p8 = pneg %p3863_p6 }
  0xa9   : > { %p3870_p1 = por %p3869_p7, %p3868_p11 }
  0xab   : > { %p3871_p2 = pnand %p3870_p1, %p3864_p8 }
  0xad   : > { %3874 = shalt.err (!%p3871_p2)
}
  0xae   : > { %s3875_s13 = scalar_lea.vmem %s328_s7, 16  ;;  %s4013_s17 = smov [#allocation10]  }
  0xaf   : > { %p3876_p13 = scmp.ne.s32.totalorder %s328_s7, %s3875_s13  ;;  %s3880_s23 = sshll.u32 %s4013_s17, 4  ;;  %s3881_s23 = int_to_ptr.vmem [resolvable:$false] %s3880_s23 }
  0xb0   : > { %s3882_s18 = scalar_lea.vmem %s3881_s23, 32  ;;  %p3883_p4 = scmp.lt.s32.totalorder %s328_s7, %s3881_s23 }
  0xb1   : > { %p3878_p0 = pnand %p3876_p13, %p5018_p9  ;;  %p3884_p6 = scmp.lt.s32.totalorder %s3882_s18, %s3875_s13 }
  0xb3   : > { %p3879_p5 = pneg %p3878_p0  ;;  %p3885_p10 = por %p3884_p6, %p3883_p4 }
  0xb5   : > { %p3886_p3 = pnand %p3885_p10, %p3879_p5 }
  0xb7   : > { %3889 = shalt.err (!%p3886_p3)
}
  0xb8   : > { %p5022_p12 = scmp.ne.s32.totalorder %s5013_s16, 0  ;;  %p5023_p8 = scmp.ne.s32.totalorder %s5003_s9, 0 }
  0xb9   : > { %p5024_p11 = scmp.eq.s32.totalorder (!%p5023_p8), %s4088_s28, 0 }
  0xba   : > { %3500 = dma.hbm_to_vmem [thread:$0]  (!%p5022_p12), %s4295_s1, 16, %s328_s7, %s318_s24  }
  0xbb   : > { %336 = sbr.rel (%p5023_p8) target bundleno = 2962 (0xb92), region = 44 }
  0xc2   : > { %3961 = dma.done.wait (%p5024_p11), [#allocation5], 768   ;;  %p5025_p9 = pmov %p5024_p11 }
  0xc3   : > { %s342_s8 = sand.u32 1, %s4088_s28   ;;  %s4326_s15 = sand.u32 1, %s3994_s25  }
  0xc4   : > { %3963 = vsyncadd (%p5025_p9), [#allocation5], 4294966528  ;;  %s2839_s10 = sshll.u32 %s4326_s15, 7  ;;  %s343_s16 = scalar_lea.sflag [#allocation8], %s342_s8 }
  0xc5   : > { %s4329_s4 = scalar_lea.vmem [#allocation7], %s2839_s10  ;;  %p5026_p10 = scmp.ne.s32.totalorder %s5000_s30, 0 }
  0xc7   : > { %3965 = dma.done.wait (%p5026_p10), %s343_s16, 4096  }
  0xc8   : > { %3967 = vsyncadd (%p5026_p10), %s343_s16, 4294963200  ;;  %s4335_s9 = scalar_lea.vmem [#allocation9], %s2839_s10  ;;  %s361_s1 = scalar_lea.sflag [#allocation11], %s342_s8 }
  0xc9   : > { %s363_s21 = scalar_lea.vmem [#allocation10], %s4326_s15 }
  0xca   : > { %3969 = dma.done.wait (%p5026_p10), %s361_s1, 16  }
  0xcb   : > { %3971 = vsyncadd (%p5026_p10), %s361_s1, 4294967280  ;;  %p5027_p7 = pmov %p5025_p9 }
  0xcd   : > { %3973 = dma.done.wait (%p5027_p7), [#allocation11], 9216   ;;  %p5028_p1 = pmov %p5027_p7 }
  0xcf   : > { %3975 = vsyncadd (%p5028_p1), [#allocation11], 4294958080  ;;  %p5029_p2 = pmov %p5028_p1 }
  0xd0   : > { %p5030_p13 = pmov %p5028_p1 }
  0xd1   : > { %3977 = dma.done.wait (%p5029_p2), [#allocation14], 256  }
  0xd2   : > { %3979 = vsyncadd (%p5030_p13), [#allocation14], 4294967040  ;;  %v417_v0 = vlaneseq  ;;  %v4014_v2 = vmov 0.0   ;;  %v4357_v4 = vld [vmem:[#allocation13] sm:$0xff]  ;;  %v4359_v5 = vld [vmem:[#allocation13 + $0x8] sm:$0x3] }
  0xd3   : > { %s4361_s30 = scalar_lea.vmem [#allocation16], %s2839_s10  ;;  %p5031_p0 = scmp.ne.s32.totalorder %s4088_s28, 0 }
  0xd4   : > { %v4351_v1 = vand.u32 127, %v417_v0  ;;  %v3566_v6 = vld [vmem:[#allocation12] sm:$0xff] (!%p5031_p0)   ;;  %v4015_v7 = vmov (!%p5031_p0), 0.0   ;;  %v3568_v9 = vld [vmem:[#allocation12 + $0x8] sm:$0xff] (!%p5031_p0)   ;;  %vm4016_vm1 = vmmov (!%p5031_p0), 0   ;;  %v3570_v11 = vld [vmem:[#allocation12 + $0x10] sm:$0xff] (!%p5031_p0)  }
  0xd5   : > { %425 = sbr.rel (%p5031_p0) target bundleno = 479 (0x1df), region = 72  ;;  %3105 = vmatprep.subr.bf16.mxu0 (!%p5031_p0), %v4015_v7  ;;  %690 = vst [vmem:[#allocation3] sm:$0xff] (!%p5031_p0), %v4015_v7  ;;  %691 = vst [vmem:[#allocation3 + $0x8] sm:$0xff] (!%p5031_p0), %v4015_v7  ;;  %3133 = vmatprep.subr.bf16.mxu1 (!%p5031_p0), %v4015_v7  ;;  %v3567_v8 = vld [vmem:[#allocation12 + $0x40] sm:$0xff] (!%p5031_p0)   ;;  %v3569_v10 = vld [vmem:[#allocation12 + $0x48] sm:$0xff] (!%p5031_p0)  }
  0xd6   : > { %vm419_vm0 = vcmp.lt.s32.totalorder %v4351_v1, 32  ;;  %692 = vst [vmem:[#allocation3 + $0x10] sm:$0xff] (!%p5031_p0), %v4015_v7  ;;  %693 = vst [vmem:[#allocation3 + $0x18] sm:$0xff] (!%p5031_p0), %v4015_v7  ;;  %3106 = vmatpush3.bf16.msra.mxu0 (!%p5031_p0), %v3566_v6  ;;  %3121 = vmatprep.mubr.msk.bf16.mxu0 (!%p5031_p0), %vm4016_vm1, %v4015_v7  ;;  %v3571_v12 = vld [vmem:[#allocation12 + $0x50] sm:$0xff] (!%p5031_p0)   ;;  %v3572_v13 = vld [vmem:[#allocation12 + $0x18] sm:$0xff] (!%p5031_p0)  }
  0xd7   : > { %v4355_v3 = vsel %vm419_vm0, 1.0, %v4014_v2  ;;  %694 = vst [vmem:[#allocation3 + $0x20] sm:$0xff] (!%p5031_p0), %v4015_v7  ;;  %695 = vst [vmem:[#allocation3 + $0x28] sm:$0xff] (!%p5031_p0), %v4015_v7  ;;  %3134 = vmatpush3.bf16.msra.mxu1 (!%p5031_p0), %v3567_v8  ;;  %3107 = vmatprep.subr.bf16.mxu0 (!%p5031_p0), %v4015_v7  ;;  %v3573_v14 = vld [vmem:[#allocation12 + $0x58] sm:$0xff] (!%p5031_p0)   ;;  %v3574_v15 = vld [vmem:[#allocation12 + $0x20] sm:$0xff] (!%p5031_p0)  }
  0xd8   : > { %3135 = vmatprep.subr.bf16.mxu1 (!%p5031_p0), %v4015_v7  ;;  %3149 = vmatprep.mubr.msk.bf16.mxu1 (!%p5031_p0), %vm4016_vm1, %v4015_v7  ;;  %v3575_v16 = vld [vmem:[#allocation12 + $0x60] sm:$0xff] (!%p5031_p0)   ;;  %v3576_v17 = vld [vmem:[#allocation12 + $0x28] sm:$0xff] (!%p5031_p0)   ;;  %v3578_v19 = vld [vmem:[#allocation12 + $0x30] sm:$0xff] (!%p5031_p0)  }
  0xd9   : > { %v3577_v18 = vld [vmem:[#allocation12 + $0x68] sm:$0xff] (!%p5031_p0)   ;;  %v3579_v20 = vld [vmem:[#allocation12 + $0x70] sm:$0xff] (!%p5031_p0)   ;;  %v3580_v21 = vld [vmem:[#allocation12 + $0x38] sm:$0xff] (!%p5031_p0)  }
  0xda   : > { %3108 = vmatpush3.bf16.msra.mxu0 (!%p5031_p0), %v3568_v9  ;;  %v426_v22 = vld [vmem:[#allocation4] sm:$0xff] (!%p5031_p0)  ;;  %v427_v23 = vld [vmem:[#allocation4 + $0x8] sm:$0xff] (!%p5031_p0)  ;;  %v428_v26 = vld [vmem:[#allocation4 + $0x10] sm:$0xff] (!%p5031_p0) }
  0xdb   : > { %3136 = vmatpush3.bf16.msra.mxu1 (!%p5031_p0), %v3569_v10  ;;  %3109 = vmatprep.subr.bf16.mxu0 (!%p5031_p0), %v4015_v7  ;;  %v3581_v24 = vld [vmem:[#allocation12 + $0x78] sm:$0xff] (!%p5031_p0)   ;;  %v432_v25 = vpack.c.bf16 (!%p5031_p0), %v427_v23, %v426_v22  ;;  %v429_v27 = vld [vmem:[#allocation4 + $0x18] sm:$0xff] (!%p5031_p0)  ;;  %v430_v29 = vld [vmem:[#allocation4 + $0x20] sm:$0xff] (!%p5031_p0) }
  0xdc   : > { %3137 = vmatprep.subr.bf16.mxu1 %v4015_v7  ;;  %v433_v28 = vpack.c.bf16 %v429_v27, %v428_v26  ;;  %v431_v30 = vld [vmem:[#allocation4 + $0x28] sm:$0xff] }
  0xdd   : > { %v434_v31 = vpack.c.bf16 %v431_v30, %v430_v29 }
  0xde   : > { %3110 = vmatpush3.bf16.msra.mxu0 %v3570_v11 }
  0xdf   : > { %3138 = vmatpush3.bf16.msra.mxu1 %v3571_v12  ;;  %3111 = vmatprep.subr.bf16.mxu0 %v4015_v7 }
  0xe0   : > { %3139 = vmatprep.subr.bf16.mxu1 %v4015_v7 }
  0xe2   : > { %3112 = vmatpush3.bf16.msra.mxu0 %v3572_v13 }
  0xe3   : > { %3140 = vmatpush3.bf16.msra.mxu1 %v3573_v14  ;;  %3113 = vmatprep.subr.bf16.mxu0 %v4015_v7 }
  0xe4   : > { %3141 = vmatprep.subr.bf16.mxu1 %v4015_v7 }
  0xe6   : > { %3114 = vmatpush3.bf16.msra.mxu0 %v3574_v15 }
  0xe7   : > { %3142 = vmatpush3.bf16.msra.mxu1 %v3575_v16  ;;  %3115 = vmatprep.subr.bf16.mxu0 %v4015_v7 }
  0xe8   : > { %3143 = vmatprep.subr.bf16.mxu1 %v4015_v7 }
  0xea   : > { %3116 = vmatpush3.bf16.msra.mxu0 %v3576_v17 }
  0xeb   : > { %3144 = vmatpush3.bf16.msra.mxu1 %v3577_v18  ;;  %3117 = vmatprep.subr.bf16.mxu0 %v4015_v7 }
  0xec   : > { %3145 = vmatprep.subr.bf16.mxu1 %v4015_v7 }
  0xee   : > { %3118 = vmatpush3.bf16.msra.mxu0 %v3578_v19 }
  0xef   : > { %3146 = vmatpush3.bf16.msra.mxu1 %v3579_v20  ;;  %3119 = vmatprep.subr.bf16.mxu0 %v4015_v7 }
  0xf0   : > { %3147 = vmatprep.subr.bf16.mxu1 %v4015_v7 }
  0xf2   : > { %3120 = vmatpush3.bf16.msra.mxu0 %v3580_v21 }
  0xf3   : > { %3148 = vmatpush3.bf16.msra.mxu1 %v3581_v24 }
  0xf5   : > { %3122 = vmatmul.mubr.bf16.vlgmr.msra.gmra.mrb[0].mxu0 %v432_v25 }
  0xf6   : > { %3150 = vmatmul.mubr.bf16.vlgmr.msra.gmra.mrb[0].mxu1 %v432_v25  ;;  %3125 = vmatprep.mubr.msk.bf16.mxu0 %vm4016_vm1, %v4015_v7 }
  0xf7   : > { %3153 = vmatprep.mubr.msk.bf16.mxu1 %vm4016_vm1, %v4015_v7 }
  0xfd   : > { %3126 = vmatmul.mubr.bf16.gmra.mrb[4].mxu0 %v433_v28 }
  0xfe   : > { %3154 = vmatmul.mubr.bf16.gmra.mrb[4].mxu1 %v433_v28  ;;  %3129 = vmatprep.mubr.msk.bf16.mxu0 %vm4016_vm1, %v4015_v7 }
  0xff   : > { %3157 = vmatprep.mubr.msk.bf16.mxu1 %vm4016_vm1, %v4015_v7 }
 0x105   : > { %3130 = vmatmul.mubr.bf16.gmra.mrb[8].mxu0 %v434_v31 }
 0x106   : > { %3158 = vmatmul.mubr.bf16.gmra.mrb[8].mxu1 %v434_v31 }
 0x1c8   : > { %v533_v32 = vpop.f32.mrb[0].mxu0 }
 0x1c9   : > { %v661_v33 = vpop.f32.mrb[0].mxu1  ;;  %v3123_v34 = vpop.f32.mrb[1].mxu0 }
 0x1ca   : > { %v3151_v35 = vpop.f32.mrb[1].mxu1  ;;  %v536_v36 = vpop.f32.mrb[2].mxu0 }
 0x1cb   : > { %v556_v37 = vpack.c.bf16 %v536_v36, %v533_v32  ;;  %v664_v38 = vpop.f32.mrb[2].mxu1  ;;  %v3124_v39 = vpop.f32.mrb[3].mxu0 }
 0x1cc   : > { %v684_v40 = vpack.c.bf16 %v664_v38, %v661_v33  ;;  %v3152_v41 = vpop.f32.mrb[3].mxu1 }
 0x1cd   : > { %559 = vst [vmem:[#allocation2] sm:$0xff] %v556_v37 }
 0x1ce   : > { %687 = vst [vmem:[#allocation2 + $0x18] sm:$0xff] %v684_v40 }
 0x1d0   : > { %v541_v42 = vpop.f32.mrb[4].mxu0 }
 0x1d1   : > { %v669_v43 = vpop.f32.mrb[4].mxu1  ;;  %v3127_v44 = vpop.f32.mrb[5].mxu0 }
 0x1d2   : > { %v3155_v45 = vpop.f32.mrb[5].mxu1  ;;  %v544_v46 = vpop.f32.mrb[6].mxu0 }
 0x1d3   : > { %v557_v47 = vpack.c.bf16 %v544_v46, %v541_v42  ;;  %v672_v48 = vpop.f32.mrb[6].mxu1  ;;  %v3128_v49 = vpop.f32.mrb[7].mxu0 }
 0x1d4   : > { %v685_v50 = vpack.c.bf16 %v672_v48, %v669_v43  ;;  %v3156_v51 = vpop.f32.mrb[7].mxu1 }
 0x1d5   : > { %560 = vst [vmem:[#allocation2 + $0x8] sm:$0xff] %v557_v47 }
 0x1d6   : > { %688 = vst [vmem:[#allocation2 + $0x20] sm:$0xff] %v685_v50 }
 0x1d8   : > { %v549_v52 = vpop.f32.mrb[8].mxu0 }
 0x1d9   : > { %v677_v53 = vpop.f32.mrb[8].mxu1  ;;  %v3131_v54 = vpop.f32.mrb[9].mxu0 }
 0x1da   : > { %v3159_v55 = vpop.f32.mrb[9].mxu1  ;;  %v552_v56 = vpop.f32.mrb[10].mxu0 }
 0x1db   : > { %v558_v57 = vpack.c.bf16 %v552_v56, %v549_v52  ;;  %v680_v58 = vpop.f32.mrb[10].mxu1  ;;  %v3132_v59 = vpop.f32.mrb[11].mxu0 }
 0x1dc   : > { %v686_v60 = vpack.c.bf16 %v680_v58, %v677_v53  ;;  %v3160_v61 = vpop.f32.mrb[11].mxu1 }
 0x1dd   : > { %561 = vst [vmem:[#allocation2 + $0x10] sm:$0xff] %v558_v57 }
 0x1de   : > { %689 = vst [vmem:[#allocation2 + $0x28] sm:$0xff] %v686_v60 }
 0x1df PF: > { %v698_v62 = vld [vmem:[%s4335_s9 + $0x10] sm:$0xff]  ;;  %v696_v63 = vld [vmem:[%s4335_s9] sm:$0xff]  ;;  %v4017_v6 = vmov 1   ;;  %v697_v8 = vld [vmem:[%s4335_s9 + $0x8] sm:$0xff]  ;;  %v4018_v13 = vmov 0   ;;  %vm1088_vm9 = vcmask 785408  }
 0x1e0   : > { %3584 = vset.pattern.permute.xlu0 %v4017_v6  ;;  %3582 = vset.pattern.permute.xlu1 %v4017_v6  ;;  %v702_v7 = vld [vmem:[%s4335_s9 + $0x30] sm:$0xff]  ;;  %v3600_v10 = vld [vmem:[#allocation12 + $0x80] sm:$0xff]   ;;  %v699_v12 = vld [vmem:[%s4335_s9 + $0x18] sm:$0xff]  ;;  %p2923_p5 = scmp.ne.s32.totalorder %s4088_s28, 2 }
 0x1e1   : > { %783 = vperm.xlu0 %3584, %v698_v62   ;;  %777 = vperm.xlu1 %3582, %v696_v63   ;;  %v4406_v9 = vld [vmem:[%s4335_s9 + $0x50] sm:$0xff]  ;;  %v896_v15 = vld [vmem:[%s4329_s4] sm:$0xff]  ;;  %v897_v16 = vld [vmem:[%s4329_s4 + $0x8] sm:$0xff] }
 0x1e2   : > { %v3601_v11 = vld [vmem:[#allocation12 + $0x88] sm:$0xff]   ;;  %3161 = vmatprep.subr.bf16.mxu0 %v3600_v10  ;;  %v3602_v14 = vld [vmem:[#allocation12 + $0x90] sm:$0xff]   ;;  %v3603_v17 = vld [vmem:[#allocation12 + $0x98] sm:$0xff]   ;;  %v918_v18 = vpack.c.bf16 %v897_v16, %v896_v15 }
 0x1e3   : > { %3162 = vmatpush3.bf16.msra.mxu0 %v3600_v10  ;;  %v700_v19 = vld [vmem:[%s4335_s9 + $0x20] sm:$0xff]  ;;  %v3605_v21 = vld [vmem:[#allocation12 + $0xa8] sm:$0xff]   ;;  %v3606_v23 = vld [vmem:[#allocation12 + $0xb0] sm:$0xff]  }
 0x1e4   : > { %3163 = vmatprep.subr.bf16.mxu0 %v3601_v11  ;;  %3177 = vmatprep.mubr.bf16.mxu0 %v918_v18  ;;  %v3604_v20 = vld [vmem:[#allocation12 + $0xa0] sm:$0xff]   ;;  %v3607_v24 = vld [vmem:[#allocation12 + $0xb8] sm:$0xff]   ;;  %v898_v27 = vld [vmem:[%s4329_s4 + $0x10] sm:$0xff] }
 0x1e5   : > { %795 = vperm.xlu0 %3584, %v702_v7   ;;  %780 = vperm.xlu1 %3582, %v697_v8   ;;  %v701_v22 = vld [vmem:[%s4335_s9 + $0x28] sm:$0xff]  ;;  %v703_v26 = vld [vmem:[%s4335_s9 + $0x38] sm:$0xff]  ;;  %v900_v29 = vld [vmem:[%s4329_s4 + $0x20] sm:$0xff] }
 0x1e6   : > { %v705_v25 = vld [vmem:[%s4335_s9 + $0x48] sm:$0xff]  ;;  %v899_v28 = vld [vmem:[%s4329_s4 + $0x18] sm:$0xff]  ;;  %v912_v31 = vld [vmem:[#allocation2] sm:$0xff] }
 0x1e7   : > { %3164 = vmatpush3.bf16.msra.mxu0 %v3601_v11  ;;  %v901_v30 = vld [vmem:[%s4329_s4 + $0x28] sm:$0xff]  ;;  %v919_v32 = vpack.c.bf16 %v899_v28, %v898_v27  ;;  %v913_v34 = vld [vmem:[#allocation2 + $0x8] sm:$0xff]  ;;  %v902_v36 = vld [vmem:[%s4329_s4 + $0x30] sm:$0xff] }
 0x1e8   : > { %3165 = vmatprep.subr.bf16.mxu0 %v3602_v14  ;;  %v920_v33 = vpack.c.bf16 %v901_v30, %v900_v29  ;;  %v709_v35 = vld [vmem:[%s4335_s9 + $0x68] sm:$0xff]  ;;  %v903_v37 = vld [vmem:[%s4329_s4 + $0x38] sm:$0xff]  ;;  %v704_v38 = vld [vmem:[%s4335_s9 + $0x40] sm:$0xff] }
 0x1e9   : > { %807 = vperm.xlu0 %3584, %v4406_v9   ;;  %3583 = vset.pattern.permute.xlu1 %v4018_v13  ;;  %v904_v39 = vld [vmem:[%s4329_s4 + $0x40] sm:$0xff]  ;;  %v905_v40 = vld [vmem:[%s4329_s4 + $0x48] sm:$0xff]  ;;  %v710_v42 = vld [vmem:[%s4335_s9 + $0x70] sm:$0xff]  ;;  %v921_v43 = vpack.c.bf16 %v903_v37, %v902_v36 }
 0x1ea   : > { %722 = vperm.xlu1 %3583, %v699_v12   ;;  %v914_v41 = vld [vmem:[#allocation2 + $0x10] sm:$0xff]  ;;  %v922_v44 = vpack.c.bf16 %v905_v40, %v904_v39  ;;  %v915_v45 = vld [vmem:[#allocation2 + $0x18] sm:$0xff]  ;;  %v906_v46 = vld [vmem:[%s4329_s4 + $0x50] sm:$0xff] }
 0x1eb   : > { %3166 = vmatpush3.bf16.msra.mxu0 %v3602_v14  ;;  %v907_v47 = vld [vmem:[%s4329_s4 + $0x58] sm:$0xff]  ;;  %v908_v48 = vld [vmem:[%s4329_s4 + $0x60] sm:$0xff]  ;;  %v909_v49 = vld [vmem:[%s4329_s4 + $0x68] sm:$0xff] }
 0x1ec   : > { %3167 = vmatprep.subr.bf16.mxu0 %v3603_v17  ;;  %v923_v50 = vpack.c.bf16 %v907_v47, %v906_v46  ;;  %v916_v51 = vld [vmem:[#allocation2 + $0x20] sm:$0xff]  ;;  %v924_v52 = vpack.c.bf16 %v909_v49, %v908_v48  ;;  %v707_v53 = vld [vmem:[%s4335_s9 + $0x58] sm:$0xff]  ;;  %v708_v58 = vld [vmem:[%s4335_s9 + $0x60] sm:$0xff] }
 0x1ed   : > { %3593 = vset.pattern.permute.xlu0 %v4018_v13  ;;  %v917_v54 = vld [vmem:[#allocation2 + $0x28] sm:$0xff]  ;;  %v910_v55 = vld [vmem:[%s4329_s4 + $0x70] sm:$0xff]  ;;  %v3608_v60 = vld [vmem:[#allocation12 + $0xc0] sm:$0xff]  }
 0x1ee   : > { %713 = vperm.xlu0 %3593, %v696_v63   ;;  %3585 = vset.pattern.permute.xlu1 %v4017_v6  ;;  %v911_v56 = vld [vmem:[%s4329_s4 + $0x78] sm:$0xff]  ;;  %v3609_v61 = vld [vmem:[#allocation12 + $0xc8] sm:$0xff]  }
 0x1ef   : > { %786 = vperm.xlu1 %3585, %v699_v12   ;;  %3168 = vmatpush3.bf16.msra.mxu0 %v3603_v17  ;;  %v925_v57 = vpack.c.bf16 %v911_v56, %v910_v55  ;;  %v711_v59 = vld [vmem:[%s4335_s9 + $0x78] sm:$0xff] }
 0x1f0   : > { %3169 = vmatprep.subr.bf16.mxu0 %v3604_v20  ;;  %3221 = vmatprep.subr.bf16.mxu1 %v3608_v60  ;;  %v3611_v63 = vld [vmem:[#allocation12 + $0xd8] sm:$0xff]  }
 0x1f1   : > { %3222 = vmatpush3.bf16.msra.mxu1 %v3608_v60 }
 0x1f2   : > { %716 = vperm.xlu0 %3593, %v697_v8   ;;  %3223 = vmatprep.subr.bf16.mxu1 %v3609_v61  ;;  %v3613_v8 = vld [vmem:[#allocation12 + $0xe8] sm:$0xff]  }
 0x1f3   : > { %3586 = vset.pattern.permute.xlu1 %v4018_v13  ;;  %3170 = vmatpush3.bf16.msra.mxu0 %v3604_v20 }
 0x1f4   : > { %725 = vperm.xlu1 %3586, %v700_v19   ;;  %3171 = vmatprep.subr.bf16.mxu0 %v3605_v21 }
 0x1f5   : > { %3224 = vmatpush3.bf16.msra.mxu1 %v3609_v61 }
 0x1f6   : > { %719 = vperm.xlu0 %3593, %v698_v62   ;;  %v3610_v62 = vld [vmem:[#allocation12 + $0xd0] sm:$0xff]  }
 0x1f7   : > { %3172 = vmatpush3.bf16.msra.mxu0 %v3605_v21  ;;  %3225 = vmatprep.subr.bf16.mxu1 %v3610_v62 }
 0x1f8   : > { %3587 = vset.pattern.permute.xlu1 %v4017_v6  ;;  %3173 = vmatprep.subr.bf16.mxu0 %v3606_v23 }
 0x1f9   : > { %789 = vperm.xlu1 %3587, %v700_v19   ;;  %3226 = vmatpush3.bf16.msra.mxu1 %v3610_v62 }
 0x1fa   : > { %728 = vperm.xlu0 %3593, %v701_v22   ;;  %3227 = vmatprep.subr.bf16.mxu1 %v3611_v63 }
 0x1fb   : > { %3174 = vmatpush3.bf16.msra.mxu0 %v3606_v23 }
 0x1fc   : > { %3175 = vmatprep.subr.bf16.mxu0 %v3607_v24 }
 0x1fd   : > { %792 = vperm.xlu1 %3587, %v701_v22   ;;  %3228 = vmatpush3.bf16.msra.mxu1 %v3611_v63 }
 0x1fe   : > { %731 = vperm.xlu0 %3593, %v702_v7   ;;  %v3612_v7 = vld [vmem:[#allocation12 + $0xe0] sm:$0xff]  }
 0x1ff   : > { %3176 = vmatpush3.bf16.msra.mxu0 %v3607_v24  ;;  %3229 = vmatprep.subr.bf16.mxu1 %v3612_v7 }
 0x200   : > { %3193 = vmatprep.subr.bf16.mxu0 %v912_v31 }
 0x201   : > { %3588 = vset.pattern.permute.xlu1 %v4018_v13  ;;  %3230 = vmatpush3.bf16.msra.mxu1 %v3612_v7  ;;  %v3614_v7 = vld [vmem:[#allocation12 + $0xf0] sm:$0xff]  }
 0x202   : > { %740 = vperm.xlu0 %3593, %v705_v25   ;;  %734 = vperm.xlu1 %3588, %v703_v26  }
 0x203   : > { %3178 = vmatmul.mubr.bf16.vlgmr.msra.gmra.mrb[0].mxu0 %v919_v32  ;;  %3231 = vmatprep.subr.bf16.mxu1 %v3613_v8 }
 0x204   : > { %3181 = vmatprep.mubr.bf16.mxu0 %v920_v33  ;;  %3194 = vmatpush3.bf16.msra.mxu0 %v912_v31 }
 0x205   : > { %3195 = vmatprep.subr.bf16.mxu0 %v913_v34  ;;  %3232 = vmatpush3.bf16.msra.mxu1 %v3613_v8  ;;  %v3615_v8 = vld [vmem:[#allocation12 + $0xf8] sm:$0xff]  }
 0x206   : > { %743 = vperm.xlu0 %3593, %v4406_v9   ;;  %3589 = vset.pattern.permute.xlu1 %v4017_v6 }
 0x207   : > { %798 = vperm.xlu1 %3589, %v703_v26   ;;  %3233 = vmatprep.subr.bf16.mxu1 %v3614_v7 }
 0x208   : > { %3196 = vmatpush3.bf16.msra.mxu0 %v913_v34 }
 0x209   : > { %3197 = vmatprep.subr.bf16.mxu0 %v914_v41  ;;  %3234 = vmatpush3.bf16.msra.mxu1 %v3614_v7 }
 0x20a   : > { %752 = vperm.xlu0 %3593, %v709_v35   ;;  %3235 = vmatprep.subr.bf16.mxu1 %v3615_v8 }
 0x20b   : > { %3590 = vset.pattern.permute.xlu1 %v4018_v13  ;;  %3182 = vmatmul.mubr.bf16.gmra.mrb[4].mxu0 %v921_v43 }
 0x20c   : > { %737 = vperm.xlu1 %3590, %v704_v38   ;;  %3185 = vmatprep.mubr.bf16.mxu0 %v922_v44 }
 0x20d   : > { %3198 = vmatpush3.bf16.msra.mxu0 %v914_v41  ;;  %3236 = vmatpush3.bf16.msra.mxu1 %v3615_v8 }
 0x20e   : > { %755 = vperm.xlu0 %3593, %v710_v42   ;;  %3199 = vmatprep.subr.bf16.mxu0 %v915_v45 }
 0x210   : > { %3591 = vset.pattern.permute.xlu1 %v4017_v6 }
 0x211   : > { %801 = vperm.xlu1 %3591, %v704_v38   ;;  %3200 = vmatpush3.bf16.msra.mxu0 %v915_v45 }
 0x212   : > { %3598 = vset.pattern.permute.xlu0 %v4017_v6  ;;  %3201 = vmatprep.subr.bf16.mxu0 %v916_v51 }
 0x213   : > { %819 = vperm.xlu0 %3598, %v710_v42   ;;  %3186 = vmatmul.mubr.bf16.gmra.mrb[8].mxu0 %v923_v50 }
 0x214   : > { %3189 = vmatprep.mubr.bf16.mxu0 %v924_v52 }
 0x215   : > { %804 = vperm.xlu1 %3591, %v705_v25   ;;  %3202 = vmatpush3.bf16.msra.mxu0 %v916_v51 }
 0x216   : > { %3203 = vmatprep.subr.bf16.mxu0 %v917_v54 }
 0x219   : > { %3592 = vset.pattern.permute.xlu1 %v4018_v13  ;;  %3204 = vmatpush3.bf16.msra.mxu0 %v917_v54 }
 0x21a   : > { %746 = vperm.xlu1 %3592, %v707_v53   ;;  %3285 = vmatprep.subr.bf16.mxu0 %v4014_v2 }
 0x21b   : > { %3190 = vmatmul.mubr.bf16.gmra.mrb[12].mxu0 %v925_v57 }
 0x21e   : > { %3594 = vset.pattern.permute.xlu1 %v4017_v6 }
 0x21f   : > { %810 = vperm.xlu1 %3594, %v707_v53  }
 0x223   : > { %3595 = vset.pattern.permute.xlu1 %v4018_v13 }
 0x224   : > { %749 = vperm.xlu1 %3595, %v708_v58  }
 0x228   : > { %3596 = vset.pattern.permute.xlu1 %v4017_v6 }
 0x229   : > { %813 = vperm.xlu1 %3596, %v708_v58  }
 0x22d   : > { %816 = vperm.xlu1 %3596, %v709_v35  }
 0x231   : > { %3597 = vset.pattern.permute.xlu1 %v4018_v13 }
 0x232   : > { %758 = vperm.xlu1 %3597, %v711_v59  }
 0x236   : > { %3599 = vset.pattern.permute.xlu1 %v4017_v6 }
 0x237   : > { %822 = vperm.xlu1 %3599, %v711_v59  }
 0x260   : > { %v778_v6 = vpop.permute.xlu1 %777  ;;  %v784_v9 = vpop.permute.xlu0 %783 }
 0x261   : > { %vm824_vm3 = vcmp.eq.s32.totalorder %v4351_v1, %v778_v6  ;;  %vm826_vm10 = vcmp.eq.s32.totalorder %v4351_v1, %v784_v9  ;;  %v3616_v6 = vld [vmem:[#allocation12 + $0x100] sm:$0xff]   ;;  %v4514_v9 = vshrl.u32 %v417_v0, 7 }
 0x262   : > { %3253 = vmatprep.subr.bf16.mxu1 %v3616_v6 }
 0x264   : > { %v781_v10 = vpop.permute.xlu1 %780  ;;  %v796_v11 = vpop.permute.xlu0 %795 }
 0x265   : > { %vm825_vm5 = vcmp.eq.s32.totalorder %v4351_v1, %v781_v10 }
 0x268   : > { %v4454_v12 = vpop.permute.xlu0 %807 }
 0x269   : > { %v723_v13 = vpop.permute.xlu1 %722 }
 0x26a   : > { %vm763_vm11 = vcmp.eq.s32.totalorder %v4351_v1, %v723_v13 }
 0x26d   : > { %v714_v14 = vpop.permute.xlu0 %713 }
 0x26e   : > { %vm760_vm2 = vcmp.eq.s32.totalorder %v4351_v1, %v714_v14  ;;  %v787_v15 = vpop.permute.xlu1 %786 }
 0x26f   : > { %vm840_vm4 = vmor %vm760_vm2, %vm824_vm3  ;;  %vm827_vm6 = vcmp.eq.s32.totalorder %v4351_v1, %v787_v15 }
 0x270   : > { %v2862_v18 = vsel %vm840_vm4, 1.0, %v4014_v2  ;;  %vm843_vm12 = vmor %vm763_vm11, %vm827_vm6 }
 0x271   : > { %v717_v16 = vpop.permute.xlu0 %716  ;;  %v2865_v22 = vsel %vm843_vm12, 1.0, %v4014_v2 }
 0x272   : > { %vm761_vm7 = vcmp.eq.s32.totalorder %v4351_v1, %v717_v16 }
 0x273   : > { %vm841_vm8 = vmor %vm761_vm7, %vm825_vm5  ;;  %v726_v17 = vpop.permute.xlu1 %725  ;;  %vm830_vm5 = vcmp.eq.s32.totalorder %v4351_v1, %v796_v11 }
 0x274   : > { %v2863_v19 = vsel %vm841_vm8, 1.0, %v4014_v2  ;;  %vm764_vm0 = vcmp.eq.s32.totalorder %v4351_v1, %v726_v17 }
 0x275   : > { %v888_v20 = vpack.c.bf16 %v2863_v19, %v2862_v18  ;;  %v720_v21 = vpop.permute.xlu0 %719 }
 0x276   : > { %vm762_vm13 = vcmp.eq.s32.totalorder %v4351_v1, %v720_v21 }
 0x277   : > { %vm842_vm14 = vmor %vm762_vm13, %vm826_vm10  ;;  %3205 = vmatprep.mubr.msk.bf16.mxu0 %vm1088_vm9, %v888_v20 }
 0x278   : > { %v2864_v23 = vsel %vm842_vm14, 1.0, %v4014_v2  ;;  %v790_v24 = vpop.permute.xlu1 %789 }
 0x279   : > { %v889_v25 = vpack.c.bf16 %v2865_v22, %v2864_v23  ;;  %vm828_vm15 = vcmp.eq.s32.totalorder %v4351_v1, %v790_v24  ;;  %v729_v26 = vpop.permute.xlu0 %728  ;;  %v3617_v24 = vld [vmem:[#allocation12 + $0x108] sm:$0xff]  }
 0x27a   : > { %vm765_vm1 = vcmp.eq.s32.totalorder %v4351_v1, %v729_v26  ;;  %vm844_vm2 = vmor %vm764_vm0, %vm828_vm15 }
 0x27b   : > { %3206 = vmatmul.mubr.msk.bf16.vlgmr.msra.gmra.mrb[0].mxu0 %vm1088_vm9, %v889_v25  ;;  %v2866_v28 = vsel %vm844_vm2, 1.0, %v4014_v2  ;;  %vm834_vm2 = vcmp.eq.s32.totalorder %v4351_v1, %v4454_v12  ;;  %v3618_v25 = vld [vmem:[#allocation12 + $0x110] sm:$0xff]  }
 0x27c   : > { %v793_v27 = vpop.permute.xlu1 %792 }
 0x27d   : > { %vm829_vm3 = vcmp.eq.s32.totalorder %v4351_v1, %v793_v27  ;;  %v732_v32 = vpop.permute.xlu0 %731  ;;  %v3619_v27 = vld [vmem:[#allocation12 + $0x118] sm:$0xff]  }
 0x27e   : > { %vm845_vm4 = vmor %vm765_vm1, %vm829_vm3  ;;  %vm766_vm6 = vcmp.eq.s32.totalorder %v4351_v1, %v732_v32 }
 0x27f   : > { %v2867_v29 = vsel %vm845_vm4, 1.0, %v4014_v2  ;;  %vm846_vm7 = vmor %vm766_vm6, %vm830_vm5 }
 0x280   : > { %v890_v30 = vpack.c.bf16 %v2867_v29, %v2866_v28  ;;  %v2868_v34 = vsel %vm846_vm7, 1.0, %v4014_v2 }
 0x281   : > { %v735_v31 = vpop.permute.xlu1 %734  ;;  %v741_v39 = vpop.permute.xlu0 %740 }
 0x282   : > { %3209 = vmatprep.mubr.msk.bf16.mxu0 %vm1088_vm9, %v890_v30  ;;  %vm767_vm8 = vcmp.eq.s32.totalorder %v4351_v1, %v735_v31  ;;  %vm769_vm15 = vcmp.eq.s32.totalorder %v4351_v1, %v741_v39 }
 0x285   : > { %v744_v43 = vpop.permute.xlu0 %743 }
 0x286   : > { %v799_v33 = vpop.permute.xlu1 %798  ;;  %vm770_vm3 = vcmp.eq.s32.totalorder %v4351_v1, %v744_v43 }
 0x287   : > { %vm831_vm10 = vcmp.eq.s32.totalorder %v4351_v1, %v799_v33  ;;  %vm850_vm4 = vmor %vm770_vm3, %vm834_vm2 }
 0x288   : > { %vm847_vm11 = vmor %vm767_vm8, %vm831_vm10  ;;  %v2872_v47 = vsel %vm850_vm4, 1.0, %v4014_v2 }
 0x289   : > { %v2869_v35 = vsel %vm847_vm11, 1.0, %v4014_v2  ;;  %v753_v51 = vpop.permute.xlu0 %752 }
 0x28a   : > { %v891_v36 = vpack.c.bf16 %v2869_v35, %v2868_v34  ;;  %v3620_v35 = vld [vmem:[#allocation12 + $0x120] sm:$0xff]  }
 0x28b   : > { %v738_v37 = vpop.permute.xlu1 %737 }
 0x28c   : > { %3210 = vmatmul.mubr.msk.bf16.gmra.mrb[4].mxu0 %vm1088_vm9, %v891_v36  ;;  %vm768_vm13 = vcmp.eq.s32.totalorder %v4351_v1, %v738_v37 }
 0x28d   : > { %v756_v53 = vpop.permute.xlu0 %755 }
 0x290   : > { %v802_v38 = vpop.permute.xlu1 %801 }
 0x291   : > { %vm832_vm12 = vcmp.eq.s32.totalorder %v4351_v1, %v802_v38 }
 0x292   : > { %vm848_vm14 = vmor %vm768_vm13, %vm832_vm12  ;;  %vm773_vm12 = vcmp.eq.s32.totalorder %v4351_v1, %v753_v51  ;;  %v820_v57 = vpop.permute.xlu0 %819 }
 0x293   : > { %v2870_v41 = vsel %vm848_vm14, 1.0, %v4014_v2 }
 0x294   : > { %v805_v40 = vpop.permute.xlu1 %804 }
 0x295   : > { %vm833_vm0 = vcmp.eq.s32.totalorder %v4351_v1, %v805_v40 }
 0x296   : > { %vm849_vm1 = vmor %vm769_vm15, %vm833_vm0  ;;  %vm774_vm15 = vcmp.eq.s32.totalorder %v4351_v1, %v756_v53  ;;  %vm838_vm0 = vcmp.eq.s32.totalorder %v4351_v1, %v820_v57 }
 0x297   : > { %v2871_v42 = vsel %vm849_vm1, 1.0, %v4014_v2  ;;  %vm854_vm1 = vmor %vm774_vm15, %vm838_vm0  ;;  %vm4022_vm15 = vmmov (!%p2923_p5), 0  }
 0x298   : > { %v892_v44 = vpack.c.bf16 %v2871_v42, %v2870_v41  ;;  %v2876_v61 = vsel %vm854_vm1, 1.0, %v4014_v2  ;;  %v3621_v42 = vld [vmem:[#allocation12 + $0x128] sm:$0xff]  }
 0x299   : > { %v747_v45 = vpop.permute.xlu1 %746 }
 0x29a   : > { %3213 = vmatprep.mubr.msk.bf16.mxu0 %vm1088_vm9, %v892_v44  ;;  %vm771_vm5 = vcmp.eq.s32.totalorder %v4351_v1, %v747_v45 }
 0x29e   : > { %v811_v46 = vpop.permute.xlu1 %810 }
 0x29f   : > { %vm835_vm6 = vcmp.eq.s32.totalorder %v4351_v1, %v811_v46 }
 0x2a0   : > { %vm851_vm7 = vmor %vm771_vm5, %vm835_vm6 }
 0x2a1   : > { %v2873_v48 = vsel %vm851_vm7, 1.0, %v4014_v2 }
 0x2a2   : > { %v893_v49 = vpack.c.bf16 %v2873_v48, %v2872_v47 }
 0x2a3   : > { %v750_v50 = vpop.permute.xlu1 %749 }
 0x2a4   : > { %3214 = vmatmul.mubr.msk.bf16.gmra.mrb[8].mxu0 %vm1088_vm9, %v893_v49  ;;  %vm772_vm10 = vcmp.eq.s32.totalorder %v4351_v1, %v750_v50 }
 0x2a8   : > { %v814_v52 = vpop.permute.xlu1 %813 }
 0x2a9   : > { %vm836_vm8 = vcmp.eq.s32.totalorder %v4351_v1, %v814_v52 }
 0x2aa   : > { %vm852_vm11 = vmor %vm772_vm10, %vm836_vm8 }
 0x2ab   : > { %v2874_v55 = vsel %vm852_vm11, 1.0, %v4014_v2 }
 0x2ac   : > { %v817_v54 = vpop.permute.xlu1 %816 }
 0x2ad   : > { %vm837_vm13 = vcmp.eq.s32.totalorder %v4351_v1, %v817_v54 }
 0x2ae   : > { %vm853_vm14 = vmor %vm773_vm12, %vm837_vm13 }
 0x2af   : > { %v2875_v56 = vsel %vm853_vm14, 1.0, %v4014_v2 }
 0x2b0   : > { %v894_v58 = vpack.c.bf16 %v2875_v56, %v2874_v55 }
 0x2b1   : > { %v759_v59 = vpop.permute.xlu1 %758 }
 0x2b2   : > { %3217 = vmatprep.mubr.msk.bf16.mxu0 %vm1088_vm9, %v894_v58  ;;  %vm775_vm2 = vcmp.eq.s32.totalorder %v4351_v1, %v759_v59 }
 0x2b6   : > { %v823_v60 = vpop.permute.xlu1 %822 }
 0x2b7   : > { %vm839_vm3 = vcmp.eq.s32.totalorder %v4351_v1, %v823_v60  ;;  %v1212_v1 = vsub.s32 0, %v4514_v9 }
 0x2b8   : > { %vm855_vm4 = vmor %vm775_vm2, %vm839_vm3 }
 0x2b9   : > { %v2877_v62 = vsel %vm855_vm4, 1.0, %v4014_v2  ;;  %v4520_v10 = vrot.slane %v4357_v4, %v1212_v1 }
 0x2ba   : > { %v895_v63 = vpack.c.bf16 %v2877_v62, %v2876_v61 }
 0x2bc   : > { %3218 = vmatmul.mubr.msk.bf16.gmra.mrb[12].mxu0 %vm1088_vm9, %v895_v63  ;;  %vm4019_vm9 = vmmov 0  }
 0x2bd   : > { %3301 = vmatprep.mubr.msk.bf16.mxu0 %vm4019_vm9, %v4014_v2 }
 0x34e   : > { %v3207_v11 = vpop.f32.mrb[0].mxu0 }
 0x34f   : > { %v1216_v12 = vadd.f32 %v3207_v11, %v4520_v10  ;;  %v1147_v13 = vpop.f32.mrb[1].mxu0 }
 0x350   : > { %v1214_v14 = vadd.f32 %v4520_v10, %v1147_v13  ;;  %v3208_v15 = vpop.f32.mrb[2].mxu0 }
 0x351   : > { %v1217_v16 = vadd.f32 %v3208_v15, %v4520_v10  ;;  %v1150_v17 = vpop.f32.mrb[3].mxu0  ;;  %v1232_v18 = vmax.f32 %v1216_v12, 0.0  ;;  %v3622_v15 = vld [vmem:[#allocation12 + $0x130] sm:$0xff]  }
 0x352   : > { %v1215_v0 = vadd.f32 %v4520_v10, %v1150_v17  ;;  %v1230_v20 = vmax.f32 %v1214_v14, 0.0  ;;  %v1273_v17 = vsub.s32 1, %v4514_v9 }
 0x353   : > { %v1233_v19 = vmax.f32 %v1217_v16, 0.0  ;;  %v3623_v16 = vld [vmem:[#allocation12 + $0x138] sm:$0xff]  }
 0x354   : > { %v1231_v21 = vmax.f32 %v1215_v0, 0.0 }
 0x355   : > { %v1247_v22 = vpack.c.bf16 %v1233_v19, %v1232_v18 }
 0x356   : > { %v1246_v23 = vpack.c.bf16 %v1231_v21, %v1230_v20 }
 0x358   : > { %3237 = vmatprep.mubr.bf16.mxu1 %v1246_v23 }
 0x359   : > { %3238 = vmatmul.mubr.bf16.vlgmr.msra.gmra.mrb[0].mxu1 %v1247_v22 }
 0x35a   : > { %3254 = vmatpush3.bf16.msra.mxu1 %v3616_v6 }
 0x35b   : > { %3255 = vmatprep.subr.bf16.mxu1 %v3617_v24 }
 0x35e   : > { %3256 = vmatpush3.bf16.msra.mxu1 %v3617_v24 }
 0x35f   : > { %v3211_v26 = vpop.f32.mrb[4].mxu0  ;;  %3257 = vmatprep.subr.bf16.mxu1 %v3618_v25 }
 0x360   : > { %v1220_v28 = vadd.f32 %v3211_v26, %v4520_v10  ;;  %v1163_v29 = vpop.f32.mrb[5].mxu0 }
 0x361   : > { %v1218_v30 = vadd.f32 %v4520_v10, %v1163_v29  ;;  %v3212_v31 = vpop.f32.mrb[6].mxu0 }
 0x362   : > { %v1221_v32 = vadd.f32 %v3212_v31, %v4520_v10  ;;  %v1166_v33 = vpop.f32.mrb[7].mxu0  ;;  %3258 = vmatpush3.bf16.msra.mxu1 %v3618_v25  ;;  %v1236_v36 = vmax.f32 %v1220_v28, 0.0 }
 0x363   : > { %v1219_v34 = vadd.f32 %v4520_v10, %v1166_v33  ;;  %3259 = vmatprep.subr.bf16.mxu1 %v3619_v27  ;;  %v1234_v38 = vmax.f32 %v1218_v30, 0.0 }
 0x364   : > { %v1237_v37 = vmax.f32 %v1221_v32, 0.0 }
 0x365   : > { %v1235_v39 = vmax.f32 %v1219_v34, 0.0 }
 0x366   : > { %v1249_v40 = vpack.c.bf16 %v1237_v37, %v1236_v36  ;;  %3260 = vmatpush3.bf16.msra.mxu1 %v3619_v27 }
 0x367   : > { %v1248_v41 = vpack.c.bf16 %v1235_v39, %v1234_v38  ;;  %3261 = vmatprep.subr.bf16.mxu1 %v3620_v35 }
 0x369   : > { %3241 = vmatprep.mubr.bf16.mxu1 %v1248_v41 }
 0x36a   : > { %3242 = vmatmul.mubr.bf16.gmra.mrb[4].mxu1 %v1249_v40 }
 0x36b   : > { %3262 = vmatpush3.bf16.msra.mxu1 %v3620_v35 }
 0x36c   : > { %3263 = vmatprep.subr.bf16.mxu1 %v3621_v42 }
 0x36f   : > { %3264 = vmatpush3.bf16.msra.mxu1 %v3621_v42 }
 0x370   : > { %3265 = vmatprep.subr.bf16.mxu1 %v3622_v15 }
 0x373   : > { %3266 = vmatpush3.bf16.msra.mxu1 %v3622_v15 }
 0x374   : > { %3267 = vmatprep.subr.bf16.mxu1 %v3623_v16 }
 0x377   : > { %v3215_v43 = vpop.f32.mrb[8].mxu0  ;;  %3268 = vmatpush3.bf16.msra.mxu1 %v3623_v16 }
 0x378   : > { %v1224_v44 = vadd.f32 %v3215_v43, %v4520_v10  ;;  %v1179_v45 = vpop.f32.mrb[9].mxu0  ;;  %3425 = vmatprep.subr.bf16.mxu1 %v4014_v2 }
 0x379   : > { %v1222_v46 = vadd.f32 %v4520_v10, %v1179_v45  ;;  %v3216_v47 = vpop.f32.mrb[10].mxu0 }
 0x37a   : > { %v1225_v48 = vadd.f32 %v3216_v47, %v4520_v10  ;;  %v1182_v49 = vpop.f32.mrb[11].mxu0  ;;  %v1240_v51 = vmax.f32 %v1224_v44, 0.0 }
 0x37b   : > { %v1223_v50 = vadd.f32 %v4520_v10, %v1182_v49  ;;  %v1238_v53 = vmax.f32 %v1222_v46, 0.0 }
 0x37c   : > { %v1241_v52 = vmax.f32 %v1225_v48, 0.0 }
 0x37d   : > { %v1239_v54 = vmax.f32 %v1223_v50, 0.0 }
 0x37e   : > { %v1251_v55 = vpack.c.bf16 %v1241_v52, %v1240_v51 }
 0x37f   : > { %v1250_v56 = vpack.c.bf16 %v1239_v54, %v1238_v53 }
 0x381   : > { %3245 = vmatprep.mubr.bf16.mxu1 %v1250_v56 }
 0x382   : > { %3246 = vmatmul.mubr.bf16.gmra.mrb[8].mxu1 %v1251_v55 }
 0x38f   : > { %v3219_v57 = vpop.f32.mrb[12].mxu0 }
 0x390   : > { %v1228_v58 = vadd.f32 %v3219_v57, %v4520_v10  ;;  %v1195_v59 = vpop.f32.mrb[13].mxu0 }
 0x391   : > { %v1226_v60 = vadd.f32 %v4520_v10, %v1195_v59  ;;  %v3220_v61 = vpop.f32.mrb[14].mxu0 }
 0x392   : > { %v1229_v62 = vadd.f32 %v3220_v61, %v4520_v10  ;;  %v1198_v63 = vpop.f32.mrb[15].mxu0  ;;  %v1244_v8 = vmax.f32 %v1228_v58, 0.0 }
 0x393   : > { %v1227_v7 = vadd.f32 %v4520_v10, %v1198_v63  ;;  %v1242_v11 = vmax.f32 %v1226_v60, 0.0  ;;  %v1274_v10 = vrot.slane %v4357_v4, %v1273_v17 }
 0x394   : > { %v1245_v6 = vmax.f32 %v1229_v62, 0.0 }
 0x395   : > { %v1243_v12 = vmax.f32 %v1227_v7, 0.0 }
 0x396   : > { %v1253_v13 = vpack.c.bf16 %v1245_v6, %v1244_v8 }
 0x397   : > { %v1252_v14 = vpack.c.bf16 %v1243_v12, %v1242_v11 }
 0x399   : > { %3249 = vmatprep.mubr.bf16.mxu1 %v1252_v14 }
 0x39a   : > { %3250 = vmatmul.mubr.bf16.gmra.mrb[12].mxu1 %v1253_v13 }
 0x42c   : > { %v3239_v0 = vpop.f32.mrb[0].mxu1 }
 0x42d   : > { %v1366_v18 = vadd.f32 %v3239_v0, %v1274_v10  ;;  %v1357_v19 = vpop.f32.mrb[1].mxu1  ;;  %v1463_v0 = vsub.s32 2, %v4514_v9 }
 0x42e   : > { %v1358_v20 = vadd.f32 %v1357_v19, %v1274_v10  ;;  %v3240_v21 = vpop.f32.mrb[2].mxu1 }
 0x42f   : > { %v1369_v22 = vadd.f32 %v3240_v21, %v1274_v10  ;;  %v1360_v23 = vpop.f32.mrb[3].mxu1  ;;  %v1422_v25 = vmax.f32 %v1366_v18, 0.0  ;;  %v1464_v18 = vrot.slane %v4357_v4, %v1463_v0 }
 0x430   : > { %v1361_v24 = vadd.f32 %v1360_v23, %v1274_v10  ;;  %v1420_v27 = vmax.f32 %v1358_v20, 0.0 }
 0x431   : > { %v1423_v26 = vmax.f32 %v1369_v22, 0.0 }
 0x432   : > { %v1421_v28 = vmax.f32 %v1361_v24, 0.0 }
 0x433   : > { %v1437_v29 = vpack.c.bf16 %v1423_v26, %v1422_v25 }
 0x434   : > { %v1436_v30 = vpack.c.bf16 %v1421_v28, %v1420_v27 }
 0x436   : > { %3269 = vmatprep.mubr.bf16.mxu1 %v1436_v30 }
 0x437   : > { %3270 = vmatmul.mubr.bf16.vlgmr.msra.gmra.mrb[16].mxu1 %v1437_v29 }
 0x43d   : > { %v3243_v31 = vpop.f32.mrb[4].mxu1 }
 0x43e   : > { %v1382_v32 = vadd.f32 %v3243_v31, %v1274_v10  ;;  %v1373_v33 = vpop.f32.mrb[5].mxu1 }
 0x43f   : > { %v1374_v34 = vadd.f32 %v1373_v33, %v1274_v10  ;;  %v3244_v35 = vpop.f32.mrb[6].mxu1 }
 0x440   : > { %v1385_v36 = vadd.f32 %v3244_v35, %v1274_v10  ;;  %v1376_v37 = vpop.f32.mrb[7].mxu1  ;;  %v1426_v39 = vmax.f32 %v1382_v32, 0.0 }
 0x441   : > { %v1377_v38 = vadd.f32 %v1376_v37, %v1274_v10  ;;  %v1424_v41 = vmax.f32 %v1374_v34, 0.0 }
 0x442   : > { %v1427_v40 = vmax.f32 %v1385_v36, 0.0 }
 0x443   : > { %v1425_v42 = vmax.f32 %v1377_v38, 0.0 }
 0x444   : > { %v1439_v43 = vpack.c.bf16 %v1427_v40, %v1426_v39 }
 0x445   : > { %v1438_v44 = vpack.c.bf16 %v1425_v42, %v1424_v41 }
 0x447   : > { %3273 = vmatprep.mubr.bf16.mxu1 %v1438_v44 }
 0x448   : > { %3274 = vmatmul.mubr.bf16.gmra.mrb[20].mxu1 %v1439_v43 }
 0x455   : > { %v3247_v45 = vpop.f32.mrb[8].mxu1 }
 0x456   : > { %v1398_v46 = vadd.f32 %v3247_v45, %v1274_v10  ;;  %v1389_v47 = vpop.f32.mrb[9].mxu1 }
 0x457   : > { %v1390_v48 = vadd.f32 %v1389_v47, %v1274_v10  ;;  %v3248_v49 = vpop.f32.mrb[10].mxu1 }
 0x458   : > { %v1401_v50 = vadd.f32 %v3248_v49, %v1274_v10  ;;  %v1392_v51 = vpop.f32.mrb[11].mxu1  ;;  %v1430_v53 = vmax.f32 %v1398_v46, 0.0 }
 0x459   : > { %v1393_v52 = vadd.f32 %v1392_v51, %v1274_v10  ;;  %v1428_v55 = vmax.f32 %v1390_v48, 0.0 }
 0x45a   : > { %v1431_v54 = vmax.f32 %v1401_v50, 0.0 }
 0x45b   : > { %v1429_v56 = vmax.f32 %v1393_v52, 0.0 }
 0x45c   : > { %v1441_v57 = vpack.c.bf16 %v1431_v54, %v1430_v53 }
 0x45d   : > { %v1440_v58 = vpack.c.bf16 %v1429_v56, %v1428_v55 }
 0x45f   : > { %3277 = vmatprep.mubr.bf16.mxu1 %v1440_v58 }
 0x460   : > { %3278 = vmatmul.mubr.bf16.gmra.mrb[24].mxu1 %v1441_v57 }
 0x46d   : > { %v3251_v59 = vpop.f32.mrb[12].mxu1 }
 0x46e   : > { %v1414_v60 = vadd.f32 %v3251_v59, %v1274_v10  ;;  %v1405_v61 = vpop.f32.mrb[13].mxu1 }
 0x46f   : > { %v1406_v62 = vadd.f32 %v1405_v61, %v1274_v10  ;;  %v3252_v63 = vpop.f32.mrb[14].mxu1 }
 0x470   : > { %v1417_v7 = vadd.f32 %v3252_v63, %v1274_v10  ;;  %v1408_v8 = vpop.f32.mrb[15].mxu1  ;;  %v1434_v11 = vmax.f32 %v1414_v60, 0.0 }
 0x471   : > { %v1409_v6 = vadd.f32 %v1408_v8, %v1274_v10  ;;  %v1432_v13 = vmax.f32 %v1406_v62, 0.0 }
 0x472   : > { %v1435_v12 = vmax.f32 %v1417_v7, 0.0 }
 0x473   : > { %v1433_v14 = vmax.f32 %v1409_v6, 0.0 }
 0x474   : > { %v1443_v15 = vpack.c.bf16 %v1435_v12, %v1434_v11 }
 0x475   : > { %v1442_v16 = vpack.c.bf16 %v1433_v14, %v1432_v13 }
 0x477   : > { %3281 = vmatprep.mubr.bf16.mxu1 %v1442_v16 }
 0x478   : > { %3282 = vmatmul.mubr.bf16.gmra.mrb[28].mxu1 %v1443_v15 }
 0x479   : > { %3305 = vmatprep.mubr.msk.bf16.mxu1 %vm4019_vm9, %v4014_v2 }
 0x50a   : > { %v3271_v19 = vpop.f32.mrb[16].mxu1 }
 0x50b   : > { %v1547_v20 = vpop.f32.mrb[17].mxu1  ;;  %v1556_v25 = vadd.f32 %v3271_v19, %v1464_v18 }
 0x50c   : > { %v1548_v21 = vadd.f32 %v1547_v20, %v1464_v18  ;;  %v3272_v22 = vpop.f32.mrb[18].mxu1 }
 0x50d   : > { %v1550_v23 = vpop.f32.mrb[19].mxu1  ;;  %v1559_v10 = vadd.f32 %v3272_v22, %v1464_v18 }
 0x50e   : > { %v1551_v24 = vadd.f32 %v1550_v23, %v1464_v18  ;;  %1610 = vadd.xlane.f32.xlu1 %v1548_v21 }
 0x510   : > { %1612 = vadd.xlane.f32.xlu0 %v1551_v24 }
 0x512   : > { %1616 = vadd.xlane.f32.xlu1 %v1559_v10 }
 0x514   : > { %1614 = vadd.xlane.f32.xlu0 %v1556_v25 }
 0x51b   : > { %v3275_v26 = vpop.f32.mrb[20].mxu1 }
 0x51c   : > { %v1563_v27 = vpop.f32.mrb[21].mxu1  ;;  %v4550_v32 = vadd.f32 %v3275_v26, %v1464_v18 }
 0x51d   : > { %v4545_v28 = vadd.f32 %v1563_v27, %v1464_v18  ;;  %v3276_v29 = vpop.f32.mrb[22].mxu1 }
 0x51e   : > { %v1566_v30 = vpop.f32.mrb[23].mxu1  ;;  %v4553_v33 = vadd.f32 %v3276_v29, %v1464_v18 }
 0x51f   : > { %v4547_v31 = vadd.f32 %v1566_v30, %v1464_v18  ;;  %1618 = vadd.xlane.f32.xlu0 %v4545_v28 }
 0x521   : > { %1620 = vadd.xlane.f32.xlu1 %v4547_v31 }
 0x523   : > { %1622 = vadd.xlane.f32.xlu0 %v4550_v32 }
 0x525   : > { %1624 = vadd.xlane.f32.xlu1 %v4553_v33 }
 0x533   : > { %v3279_v34 = vpop.f32.mrb[24].mxu1 }
 0x534   : > { %v1579_v35 = vpop.f32.mrb[25].mxu1  ;;  %v4562_v40 = vadd.f32 %v3279_v34, %v1464_v18 }
 0x535   : > { %v4557_v36 = vadd.f32 %v1579_v35, %v1464_v18  ;;  %v3280_v37 = vpop.f32.mrb[26].mxu1 }
 0x536   : > { %v1582_v38 = vpop.f32.mrb[27].mxu1  ;;  %v4565_v41 = vadd.f32 %v3280_v37, %v1464_v18 }
 0x537   : > { %v4559_v39 = vadd.f32 %v1582_v38, %v1464_v18  ;;  %1626 = vadd.xlane.f32.xlu0 %v4557_v36 }
 0x539   : > { %1628 = vadd.xlane.f32.xlu1 %v4559_v39 }
 0x53b   : > { %1630 = vadd.xlane.f32.xlu0 %v4562_v40 }
 0x53d   : > { %1632 = vadd.xlane.f32.xlu1 %v4565_v41 }
 0x54b   : > { %v3283_v42 = vpop.f32.mrb[28].mxu1 }
 0x54c   : > { %v1595_v43 = vpop.f32.mrb[29].mxu1  ;;  %v4574_v48 = vadd.f32 %v3283_v42, %v1464_v18 }
 0x54d   : > { %v4569_v44 = vadd.f32 %v1595_v43, %v1464_v18  ;;  %v3284_v45 = vpop.f32.mrb[30].mxu1 }
 0x54e   : > { %v1598_v46 = vpop.f32.mrb[31].mxu1  ;;  %v4577_v49 = vadd.f32 %v3284_v45, %v1464_v18 }
 0x54f   : > { %v4571_v47 = vadd.f32 %v1598_v46, %v1464_v18  ;;  %1634 = vadd.xlane.f32.xlu0 %v4569_v44 }
 0x551   : > { %1636 = vadd.xlane.f32.xlu1 %v4571_v47 }
 0x553   : > { %1638 = vadd.xlane.f32.xlu0 %v4574_v48 }
 0x555   : > { %1640 = vadd.xlane.f32.xlu1 %v4577_v49 }
 0x59b   : > { %v1611_v50 = vpop.xlane.xlu1 %1610 }
 0x59c   : > { %v1642_v51 = vmul.f32 0.03125, %v1611_v50 }
 0x59d   : > { %v1613_v52 = vpop.xlane.xlu0 %1612 }
 0x59e   : > { %v1658_v53 = vsub.f32 %v1548_v21, %v1642_v51  ;;  %v1643_v54 = vmul.f32 0.03125, %v1613_v52 }
 0x59f   : > { %v1617_v55 = vpop.xlane.xlu1 %1616 }
 0x5a0   : > { %v4582_v56 = vmul.f32 %v4355_v3, %v1658_v53  ;;  %v1659_v57 = vsub.f32 %v1551_v24, %v1643_v54  ;;  %v1645_v58 = vmul.f32 0.03125, %v1617_v55 }
 0x5a1   : > { %v1615_v59 = vpop.xlane.xlu0 %1614 }
 0x5a2   : > { %v4585_v60 = vmul.f32 %v4355_v3, %v1659_v57  ;;  %v1661_v61 = vsub.f32 %v1559_v10, %v1645_v58  ;;  %v1644_v62 = vmul.f32 0.03125, %v1615_v59  ;;  %v1690_v63 = vmul.f32 %v4582_v56, %v4582_v56 }
 0x5a4   : > { %v4590_v7 = vmul.f32 %v4355_v3, %v1661_v61  ;;  %v1660_v8 = vsub.f32 %v1556_v25, %v1644_v62  ;;  %1706 = vadd.xlane.f32.xlu0 %v1690_v63  ;;  %v1691_v6 = vmul.f32 %v4585_v60, %v4585_v60 }
 0x5a6   : > { %v4595_v11 = vmul.f32 %v4355_v3, %v1660_v8  ;;  %1708 = vadd.xlane.f32.xlu1 %v1691_v6  ;;  %v1693_v12 = vmul.f32 %v4590_v7, %v4590_v7 }
 0x5a8   : > { %v1692_v13 = vmul.f32 %v4595_v11, %v4595_v11 }
 0x5aa   : > { %1712 = vadd.xlane.f32.xlu1 %v1693_v12  ;;  %1710 = vadd.xlane.f32.xlu0 %v1692_v13 }
 0x5ac   : > { %v1619_v14 = vpop.xlane.xlu0 %1618 }
 0x5ad   : > { %v1646_v15 = vmul.f32 0.03125, %v1619_v14 }
 0x5ae   : > { %v1621_v16 = vpop.xlane.xlu1 %1620 }
 0x5af   : > { %v1662_v0 = vsub.f32 %v4545_v28, %v1646_v15  ;;  %v1647_v18 = vmul.f32 0.03125, %v1621_v16 }
 0x5b0   : > { %v1623_v19 = vpop.xlane.xlu0 %1622 }
 0x5b1   : > { %v4603_v20 = vmul.f32 %v4355_v3, %v1662_v0  ;;  %v1663_v21 = vsub.f32 %v4547_v31, %v1647_v18  ;;  %v1648_v22 = vmul.f32 0.03125, %v1623_v19 }
 0x5b2   : > { %v1625_v23 = vpop.xlane.xlu1 %1624 }
 0x5b3   : > { %v4607_v24 = vmul.f32 %v4355_v3, %v1663_v21  ;;  %v1664_v10 = vsub.f32 %v4550_v32, %v1648_v22  ;;  %v1649_v25 = vmul.f32 0.03125, %v1625_v23  ;;  %v1694_v26 = vmul.f32 %v4603_v20, %v4603_v20 }
 0x5b5   : > { %v4613_v27 = vmul.f32 %v4355_v3, %v1664_v10  ;;  %v1665_v28 = vsub.f32 %v4553_v33, %v1649_v25  ;;  %1714 = vadd.xlane.f32.xlu0 %v1694_v26  ;;  %v1695_v29 = vmul.f32 %v4607_v24, %v4607_v24 }
 0x5b7   : > { %v4619_v30 = vmul.f32 %v4355_v3, %v1665_v28  ;;  %1716 = vadd.xlane.f32.xlu1 %v1695_v29  ;;  %v1696_v31 = vmul.f32 %v4613_v27, %v4613_v27 }
 0x5b9   : > { %1718 = vadd.xlane.f32.xlu0 %v1696_v31  ;;  %v1697_v32 = vmul.f32 %v4619_v30, %v4619_v30 }
 0x5bb   : > { %1720 = vadd.xlane.f32.xlu1 %v1697_v32 }
 0x5c4   : > { %v1627_v34 = vpop.xlane.xlu0 %1626 }
 0x5c5   : > { %v1650_v35 = vmul.f32 0.03125, %v1627_v34 }
 0x5c6   : > { %v1629_v37 = vpop.xlane.xlu1 %1628 }
 0x5c7   : > { %v1666_v33 = vsub.f32 %v4557_v36, %v1650_v35  ;;  %v1651_v38 = vmul.f32 0.03125, %v1629_v37 }
 0x5c8   : > { %v1631_v42 = vpop.xlane.xlu0 %1630 }
 0x5c9   : > { %v4627_v43 = vmul.f32 %v4355_v3, %v1666_v33  ;;  %v1667_v45 = vsub.f32 %v4559_v39, %v1651_v38  ;;  %v1652_v46 = vmul.f32 0.03125, %v1631_v42  ;;  %v1804_v33 = vsub.s32 3, %v4514_v9 }
 0x5ca   : > { %v1633_v50 = vpop.xlane.xlu1 %1632  ;;  %v1824_v38 = vsub.s32 4, %v4514_v9 }
 0x5cb   : > { %v4631_v51 = vmul.f32 %v4355_v3, %v1667_v45  ;;  %v1668_v52 = vsub.f32 %v4562_v40, %v1652_v46  ;;  %v1653_v53 = vmul.f32 0.03125, %v1633_v50  ;;  %v1698_v54 = vmul.f32 %v4627_v43, %v4627_v43 }
 0x5cc   : > { %v4680_v42 = vrot.slane %v4357_v4, %v1804_v33  ;;  %v4684_v50 = vrot.slane %v4357_v4, %v1824_v38 }
 0x5cd   : > { %v4637_v36 = vmul.f32 %v4355_v3, %v1668_v52  ;;  %v1669_v55 = vsub.f32 %v4565_v41, %v1653_v53  ;;  %1722 = vadd.xlane.f32.xlu0 %v1698_v54  ;;  %v1699_v39 = vmul.f32 %v4631_v51, %v4631_v51 }
 0x5cf   : > { %v4643_v57 = vmul.f32 %v4355_v3, %v1669_v55  ;;  %1724 = vadd.xlane.f32.xlu1 %v1699_v39  ;;  %v1700_v40 = vmul.f32 %v4637_v36, %v4637_v36 }
 0x5d1   : > { %1726 = vadd.xlane.f32.xlu0 %v1700_v40  ;;  %v1701_v58 = vmul.f32 %v4643_v57, %v4643_v57 }
 0x5d3   : > { %1728 = vadd.xlane.f32.xlu1 %v1701_v58 }
 0x5dc   : > { %v1635_v59 = vpop.xlane.xlu0 %1634 }
 0x5dd   : > { %v1654_v61 = vmul.f32 0.03125, %v1635_v59 }
 0x5de   : > { %v1637_v62 = vpop.xlane.xlu1 %1636 }
 0x5df   : > { %v1670_v41 = vsub.f32 %v4569_v44, %v1654_v61  ;;  %v1655_v63 = vmul.f32 0.03125, %v1637_v62 }
 0x5e0   : > { %v1639_v8 = vpop.xlane.xlu0 %1638 }
 0x5e1   : > { %v4651_v6 = vmul.f32 %v4355_v3, %v1670_v41  ;;  %v1671_v12 = vsub.f32 %v4571_v47, %v1655_v63  ;;  %v1656_v13 = vmul.f32 0.03125, %v1639_v8 }
 0x5e2   : > { %v1641_v14 = vpop.xlane.xlu1 %1640 }
 0x5e3   : > { %v4655_v15 = vmul.f32 %v4355_v3, %v1671_v12  ;;  %v1672_v16 = vsub.f32 %v4574_v48, %v1656_v13  ;;  %v1657_v0 = vmul.f32 0.03125, %v1641_v14  ;;  %v1702_v18 = vmul.f32 %v4651_v6, %v4651_v6 }
 0x5e5   : > { %v4661_v44 = vmul.f32 %v4355_v3, %v1672_v16  ;;  %v1673_v19 = vsub.f32 %v4577_v49, %v1657_v0  ;;  %1730 = vadd.xlane.f32.xlu0 %v1702_v18  ;;  %v1703_v47 = vmul.f32 %v4655_v15, %v4655_v15  ;;  %v3656_v0 = vld [vmem:[%s4329_s4] sm:$0xff] }
 0x5e7   : > { %v4667_v21 = vmul.f32 %v4355_v3, %v1673_v19  ;;  %1732 = vadd.xlane.f32.xlu1 %v1703_v47  ;;  %v1704_v48 = vmul.f32 %v4661_v44, %v4661_v44 }
 0x5e9   : > { %1734 = vadd.xlane.f32.xlu0 %v1704_v48  ;;  %v1705_v22 = vmul.f32 %v4667_v21, %v4667_v21 }
 0x5eb   : > { %1736 = vadd.xlane.f32.xlu1 %v1705_v22  ;;  %v3657_v22 = vld [vmem:[%s4329_s4 + $0x8] sm:$0xff] }
 0x631   : > { %v1707_v49 = vpop.xlane.xlu0 %1706 }
 0x632   : > { %v1738_v23 = vmul.f32 0.03125, %v1707_v49 }
 0x633   : > { %v1709_v10 = vpop.xlane.xlu1 %1708 }
 0x634   : > { %v1754_v25 = vadd.f32 1e-05, %v1738_v23  ;;  %v1739_v26 = vmul.f32 0.03125, %v1709_v10 }
 0x636   : > { %3624 = vrsqrt.f32 %v1754_v25  ;;  %v1755_v28 = vadd.f32 1e-05, %v1739_v26  ;;  %v3658_v26 = vld [vmem:[%s4329_s4 + $0x18] sm:$0xff] }
 0x637   : > { %v1713_v29 = vpop.xlane.xlu1 %1712  ;;  %v1711_v31 = vpop.xlane.xlu0 %1710 }
 0x638   : > { %3626 = vrsqrt.f32 %v1755_v28  ;;  %v1741_v32 = vmul.f32 0.03125, %v1713_v29  ;;  %v1740_v34 = vmul.f32 0.03125, %v1711_v31  ;;  %v3659_v29 = vld [vmem:[%s4329_s4 + $0x10] sm:$0xff] }
 0x63a   : > { %v1757_v35 = vadd.f32 1e-05, %v1741_v32  ;;  %v1756_v37 = vadd.f32 1e-05, %v1740_v34 }
 0x63c   : > { %3628 = vrsqrt.f32 %v1757_v35 }
 0x63d   : > { %3630 = vrsqrt.f32 %v1756_v37 }
 0x640   : > { %v3625_v45 = vpop.eup %3624 }
 0x641   : > { %v1786_v46 = vmul.f32 %v3625_v45, %v4582_v56 }
 0x642   : > { %v3627_v52 = vpop.eup %3626  ;;  %v1715_v53 = vpop.xlane.xlu0 %1714 }
 0x643   : > { %v1787_v54 = vmul.f32 %v3627_v52, %v4585_v60  ;;  %v1742_v55 = vmul.f32 0.03125, %v1715_v53  ;;  %v1806_v39 = vmul.f32 %v4680_v42, %v1786_v46 }
 0x644   : > { %v1717_v40 = vpop.xlane.xlu1 %1716 }
 0x645   : > { %v1758_v58 = vadd.f32 1e-05, %v1742_v55  ;;  %v1743_v59 = vmul.f32 0.03125, %v1717_v40  ;;  %v1807_v61 = vmul.f32 %v4680_v42, %v1787_v54  ;;  %v1826_v62 = vadd.f32 %v4684_v50, %v1806_v39  ;;  %v3660_v39 = vld [vmem:[%s4329_s4 + $0x20] sm:$0xff] }
 0x646   : > { %v3629_v41 = vpop.eup %3628  ;;  %v1719_v56 = vpop.xlane.xlu0 %1718 }
 0x647   : > { %v3631_v63 = vpop.eup %3630  ;;  %v1789_v8 = vmul.f32 %v3629_v41, %v4590_v7  ;;  %3632 = vrsqrt.f32 %v1758_v58  ;;  %v1759_v60 = vadd.f32 1e-05, %v1743_v59  ;;  %v1744_v12 = vmul.f32 0.03125, %v1719_v56  ;;  %v3661_v59 = vld [vmem:[%s4329_s4 + $0x28] sm:$0xff] }
 0x648   : > { %v1788_v13 = vmul.f32 %v3631_v63, %v4595_v11  ;;  %v1721_v14 = vpop.xlane.xlu1 %1720  ;;  %v1827_v16 = vadd.f32 %v4684_v50, %v1807_v61  ;;  %v1842_v18 = vadd.f32 %v3656_v0, %v1826_v62 }
 0x649   : > { %3634 = vrsqrt.f32 %v1759_v60  ;;  %v1760_v19 = vadd.f32 1e-05, %v1744_v12  ;;  %v1745_v47 = vmul.f32 0.03125, %v1721_v14  ;;  %v1809_v48 = vmul.f32 %v4680_v42, %v1789_v8  ;;  %v3662_v8 = vld [vmem:[%s4329_s4 + $0x30] sm:$0xff] }
 0x64a   : > { %v1843_v7 = vadd.f32 %v3657_v22, %v1827_v16  ;;  %1858 = vst [vmem:[%s4361_s30] sm:$0xff] %v1842_v18  ;;  %v1808_v49 = vmul.f32 %v4680_v42, %v1788_v13  ;;  %v3663_v16 = vld [vmem:[%s4329_s4 + $0x38] sm:$0xff] }
 0x64b   : > { %3636 = vrsqrt.f32 %v1760_v19  ;;  %v1761_v11 = vadd.f32 1e-05, %v1745_v47  ;;  %v1829_v23 = vadd.f32 %v4684_v50, %v1809_v48 }
 0x64c   : > { %1859 = vst [vmem:[%s4361_s30 + $0x8] sm:$0xff] %v1843_v7  ;;  %v1913_v10 = vpack.c.bf16 %v1843_v7, %v1842_v18  ;;  %v1828_v25 = vadd.f32 %v4684_v50, %v1808_v49 }
 0x64d   : > { %3638 = vrsqrt.f32 %v1761_v11  ;;  %v1845_v28 = vadd.f32 %v3658_v26, %v1829_v23 }
 0x64e   : > { %3286 = vmatpush3.bf16.msra.mxu0 %v1913_v10  ;;  %3433 = vmatpush3.bf16.msra.mxu1 %v1913_v10  ;;  %v1844_v31 = vadd.f32 %v3659_v29, %v1828_v25 }
 0x64f   : > { %3287 = vmatprep.subr.bf16.mxu0 %v4014_v2  ;;  %3426 = vmatprep.subr.bf16.mxu1 %v4014_v2  ;;  %1861 = vst [vmem:[%s4361_s30 + $0x18] sm:$0xff] %v1845_v28 }
 0x650   : > { %1860 = vst [vmem:[%s4361_s30 + $0x10] sm:$0xff] %v1844_v31  ;;  %v1914_v32 = vpack.c.bf16 %v1845_v28, %v1844_v31 }
 0x651   : > { %v3633_v34 = vpop.eup %3632 }
 0x652   : > { %v1790_v35 = vmul.f32 %v3633_v34, %v4603_v20  ;;  %3288 = vmatpush3.bf16.msra.mxu0 %v1914_v32  ;;  %3434 = vmatpush3.bf16.msra.mxu1 %v1914_v32 }
 0x653   : > { %v3635_v37 = vpop.eup %3634  ;;  %3289 = vmatprep.subr.bf16.mxu0 %v4014_v2  ;;  %3427 = vmatprep.subr.bf16.mxu1 %v4014_v2 }
 0x654   : > { %v1791_v33 = vmul.f32 %v3635_v37, %v4607_v24  ;;  %v1810_v38 = vmul.f32 %v4680_v42, %v1790_v35  ;;  %v3664_v37 = vld [vmem:[%s4329_s4 + $0x40] sm:$0xff] }
 0x655   : > { %v3637_v45 = vpop.eup %3636 }
 0x656   : > { %v1792_v46 = vmul.f32 %v3637_v45, %v4613_v27  ;;  %v1811_v52 = vmul.f32 %v4680_v42, %v1791_v33  ;;  %v1830_v20 = vadd.f32 %v4684_v50, %v1810_v38  ;;  %v3665_v45 = vld [vmem:[%s4329_s4 + $0x48] sm:$0xff] }
 0x657   : > { %v3639_v53 = vpop.eup %3638 }
 0x658   : > { %v1793_v54 = vmul.f32 %v3639_v53, %v4619_v30  ;;  %v1831_v55 = vadd.f32 %v4684_v50, %v1811_v52  ;;  %v1846_v40 = vadd.f32 %v3660_v39, %v1830_v20  ;;  %v1812_v24 = vmul.f32 %v4680_v42, %v1792_v46 }
 0x65a   : > { %v1723_v58 = vpop.xlane.xlu0 %1722  ;;  %v1847_v61 = vadd.f32 %v3661_v59, %v1831_v55  ;;  %1862 = vst [vmem:[%s4361_s30 + $0x20] sm:$0xff] %v1846_v40  ;;  %v1813_v27 = vmul.f32 %v4680_v42, %v1793_v54  ;;  %v1832_v62 = vadd.f32 %v4684_v50, %v1812_v24  ;;  %v3666_v55 = vld [vmem:[%s4329_s4 + $0x50] sm:$0xff]  ;;  %v3667_v59 = vld [vmem:[%s4329_s4 + $0x58] sm:$0xff] }
 0x65b   : > { %v1746_v41 = vmul.f32 0.03125, %v1723_v58 }
 0x65c   : > { %v1725_v56 = vpop.xlane.xlu1 %1724  ;;  %1863 = vst [vmem:[%s4361_s30 + $0x28] sm:$0xff] %v1847_v61  ;;  %v1915_v30 = vpack.c.bf16 %v1847_v61, %v1846_v40  ;;  %v1833_v63 = vadd.f32 %v4684_v50, %v1813_v27  ;;  %v1848_v60 = vadd.f32 %v3662_v8, %v1832_v62 }
 0x65d   : > { %v1762_v12 = vadd.f32 1e-05, %v1746_v41  ;;  %v1747_v13 = vmul.f32 0.03125, %v1725_v56 }
 0x65e   : > { %3290 = vmatpush3.bf16.msra.mxu0 %v1915_v30  ;;  %3435 = vmatpush3.bf16.msra.mxu1 %v1915_v30  ;;  %v1727_v14 = vpop.xlane.xlu0 %1726  ;;  %v1849_v0 = vadd.f32 %v3663_v16, %v1833_v63  ;;  %1864 = vst [vmem:[%s4361_s30 + $0x30] sm:$0xff] %v1848_v60 }
 0x65f   : > { %3640 = vrsqrt.f32 %v1762_v12  ;;  %v1763_v18 = vadd.f32 1e-05, %v1747_v13  ;;  %v1748_v19 = vmul.f32 0.03125, %v1727_v14  ;;  %3291 = vmatprep.subr.bf16.mxu0 %v4014_v2  ;;  %3428 = vmatprep.subr.bf16.mxu1 %v4014_v2 }
 0x660   : > { %v1729_v47 = vpop.xlane.xlu1 %1728  ;;  %1865 = vst [vmem:[%s4361_s30 + $0x38] sm:$0xff] %v1849_v0  ;;  %v1916_v48 = vpack.c.bf16 %v1849_v0, %v1848_v60 }
 0x661   : > { %3642 = vrsqrt.f32 %v1763_v18  ;;  %v1764_v22 = vadd.f32 1e-05, %v1748_v19  ;;  %v1749_v7 = vmul.f32 0.03125, %v1729_v47 }
 0x662   : > { %3292 = vmatpush3.bf16.msra.mxu0 %v1916_v48  ;;  %3436 = vmatpush3.bf16.msra.mxu1 %v1916_v48 }
 0x663   : > { %3644 = vrsqrt.f32 %v1764_v22  ;;  %v1765_v49 = vadd.f32 1e-05, %v1749_v7  ;;  %3293 = vmatprep.subr.bf16.mxu0 %v4014_v2  ;;  %3429 = vmatprep.subr.bf16.mxu1 %v4014_v2  ;;  %v3668_v7 = vld [vmem:[%s4329_s4 + $0x60] sm:$0xff] }
 0x665   : > { %3646 = vrsqrt.f32 %v1765_v49 }
 0x669   : > { %v3641_v11 = vpop.eup %3640 }
 0x66a   : > { %v1794_v23 = vmul.f32 %v3641_v11, %v4627_v43  ;;  %v1877_v11 = vadd.s32 16, %v4514_v9 }
 0x66b   : > { %v3643_v10 = vpop.eup %3642 }
 0x66c   : > { %v1795_v25 = vmul.f32 %v3643_v10, %v4631_v51  ;;  %v1814_v26 = vmul.f32 %v4680_v42, %v1794_v23 }
 0x66d   : > { %v3645_v28 = vpop.eup %3644 }
 0x66e   : > { %v1796_v29 = vmul.f32 %v3645_v28, %v4637_v36  ;;  %v1815_v31 = vmul.f32 %v4680_v42, %v1795_v25  ;;  %v1834_v32 = vadd.f32 %v4684_v50, %v1814_v26  ;;  %v2910_v26 = vld [vmem:[%s363_s21] ss:$0 sm:$0xff]  ;;  %v1876_v28 = vadd.s32 8, %v4514_v9 }
 0x66f   : > { %v3647_v34 = vpop.eup %3646  ;;  %vm1888_vm5 = vcmp.eq.s32.totalorder %v2910_v26, %v1877_v11  ;;  %vm1886_vm7 = vcmp.eq.s32.totalorder %v2910_v26, %v4514_v9 }
 0x670   : > { %v1797_v35 = vmul.f32 %v3647_v34, %v4643_v57  ;;  %v1835_v43 = vadd.f32 %v4684_v50, %v1815_v31  ;;  %v1850_v33 = vadd.f32 %v3664_v37, %v1834_v32  ;;  %v1816_v51 = vmul.f32 %v4680_v42, %v1796_v29  ;;  %v3670_v32 = vld [vmem:[%s4329_s4 + $0x70] sm:$0xff] }
 0x671   : > { %vm1887_vm8 = vcmp.eq.s32.totalorder %v2910_v26, %v1876_v28  ;;  %v1880_v37 = vadd.s32 40, %v4514_v9 }
 0x672   : > { %v1731_v38 = vpop.xlane.xlu0 %1730  ;;  %v1851_v46 = vadd.f32 %v3665_v45, %v1835_v43  ;;  %1866 = vst [vmem:[%s4361_s30 + $0x40] sm:$0xff] %v1850_v33  ;;  %v1817_v36 = vmul.f32 %v4680_v42, %v1797_v35  ;;  %v1836_v52 = vadd.f32 %v4684_v50, %v1816_v51  ;;  %v3671_v35 = vld [vmem:[%s4329_s4 + $0x78] sm:$0xff]  ;;  %vm2917_vm11 = vmpackc.low %vm1887_vm8, %vm1886_vm7  ;;  %v1909_v51 = vld [vmem:[#allocation3 + $0x10] sm:$0xff] }
 0x673   : > { %v1750_v20 = vmul.f32 0.03125, %v1731_v38  ;;  %vm1891_vm13 = vcmp.eq.s32.totalorder %v2910_v26, %v1880_v37  ;;  %v1907_v38 = vld [vmem:[#allocation3] sm:$0xff] }
 0x674   : > { %v1733_v53 = vpop.xlane.xlu1 %1732  ;;  %1867 = vst [vmem:[%s4361_s30 + $0x48] sm:$0xff] %v1851_v46  ;;  %v1917_v57 = vpack.c.bf16 %v1851_v46, %v1850_v33  ;;  %v1837_v54 = vadd.f32 %v4684_v50, %v1817_v36  ;;  %v1852_v39 = vadd.f32 %v3666_v55, %v1836_v52  ;;  %v4020_v33 = vmov 1.0|1.0   ;;  %v1910_v46 = vld [vmem:[#allocation3 + $0x18] sm:$0xff]  ;;  %v1908_v52 = vld [vmem:[#allocation3 + $0x8] sm:$0xff] }
 0x675   : > { %v1766_v40 = vadd.f32 1e-05, %v1750_v20  ;;  %v1751_v24 = vmul.f32 0.03125, %v1733_v53 }
 0x676   : > { %3294 = vmatpush3.bf16.msra.mxu0 %v1917_v57  ;;  %3437 = vmatpush3.bf16.msra.mxu1 %v1917_v57  ;;  %v1735_v58 = vpop.xlane.xlu0 %1734  ;;  %v1853_v61 = vadd.f32 %v3667_v59, %v1837_v54  ;;  %1868 = vst [vmem:[%s4361_s30 + $0x50] sm:$0xff] %v1852_v39  ;;  %v1911_v59 = vld [vmem:[#allocation3 + $0x20] sm:$0xff] }
 0x677   : > { %3648 = vrsqrt.f32 %v1766_v40  ;;  %v1767_v27 = vadd.f32 1e-05, %v1751_v24  ;;  %v1752_v62 = vmul.f32 0.03125, %v1735_v58  ;;  %3295 = vmatprep.subr.bf16.mxu0 %v4014_v2  ;;  %3430 = vmatprep.subr.bf16.mxu1 %v4014_v2 }
 0x678   : > { %v1737_v41 = vpop.xlane.xlu1 %1736  ;;  %1869 = vst [vmem:[%s4361_s30 + $0x58] sm:$0xff] %v1853_v61  ;;  %v1918_v56 = vpack.c.bf16 %v1853_v61, %v1852_v39 }
 0x679   : > { %3650 = vrsqrt.f32 %v1767_v27  ;;  %v1768_v30 = vadd.f32 1e-05, %v1752_v62  ;;  %v1753_v63 = vmul.f32 0.03125, %v1737_v41  ;;  %v1912_v27 = vld [vmem:[#allocation3 + $0x28] sm:$0xff] }
 0x67a   : > { %3296 = vmatpush3.bf16.msra.mxu0 %v1918_v56  ;;  %3438 = vmatpush3.bf16.msra.mxu1 %v1918_v56 }
 0x67b   : > { %3652 = vrsqrt.f32 %v1768_v30  ;;  %v1769_v8 = vadd.f32 1e-05, %v1753_v63  ;;  %3297 = vmatprep.subr.bf16.mxu0 %v4014_v2  ;;  %3431 = vmatprep.subr.bf16.mxu1 %v4014_v2 }
 0x67d   : > { %3654 = vrsqrt.f32 %v1769_v8  ;;  %v3672_v8 = vld [vmem:[#allocation12 + $0x180] sm:$0xff] (!%p2923_p5)  }
 0x681   : > { %v3649_v60 = vpop.eup %3648 }
 0x682   : > { %v1798_v12 = vmul.f32 %v3649_v60, %v4651_v6  ;;  %v4021_v60 = vmov (!%p2923_p5), 0.0  }
 0x683   : > { %v3651_v13 = vpop.eup %3650 }
 0x684   : > { %v1799_v14 = vmul.f32 %v3651_v13, %v4655_v15  ;;  %v1818_v16 = vmul.f32 %v4680_v42, %v1798_v12  ;;  %v3673_v12 = vld [vmem:[#allocation12 + $0x140] sm:$0xff] (!%p2923_p5)   ;;  %v3674_v13 = vld [vmem:[#allocation12 + $0x188] sm:$0xff] (!%p2923_p5)  }
 0x685   : > { %v3653_v0 = vpop.eup %3652 }
 0x686   : > { %v1800_v18 = vmul.f32 %v3653_v0, %v4661_v44  ;;  %v1819_v19 = vmul.f32 %v4680_v42, %v1799_v14  ;;  %v1838_v47 = vadd.f32 %v4684_v50, %v1818_v16  ;;  %v3669_v44 = vld [vmem:[%s4329_s4 + $0x68] sm:$0xff]  ;;  %v3676_v16 = vld [vmem:[#allocation12 + $0x190] sm:$0xff] (!%p2923_p5)  }
 0x687   : > { %v3655_v48 = vpop.eup %3654  ;;  %v3675_v14 = vld [vmem:[#allocation12 + $0x148] sm:$0xff] (!%p2923_p5)   ;;  %v3677_v0 = vld [vmem:[#allocation12 + $0x150] sm:$0xff] (!%p2923_p5)  }
 0x688   : > { %v1801_v22 = vmul.f32 %v3655_v48, %v4667_v21  ;;  %v1839_v6 = vadd.f32 %v4684_v50, %v1819_v19  ;;  %v1854_v49 = vadd.f32 %v3668_v7, %v1838_v47  ;;  %v1820_v15 = vmul.f32 %v4680_v42, %v1800_v18  ;;  %v3678_v18 = vld [vmem:[#allocation12 + $0x198] sm:$0xff] (!%p2923_p5)   ;;  %v3680_v47 = vld [vmem:[#allocation12 + $0x1a0] sm:$0xff] (!%p2923_p5)   ;;  %v3684_v7 = vld [vmem:[#allocation12 + $0x1b0] sm:$0xff] (!%p2923_p5)  }
 0x689   : > { %v1878_v21 = vadd.s32 24, %v4514_v9  ;;  %v3679_v19 = vld [vmem:[#allocation12 + $0x158] sm:$0xff] (!%p2923_p5)   ;;  %v3681_v48 = vld [vmem:[#allocation12 + $0x160] sm:$0xff] (!%p2923_p5)  }
 0x68a   : > { %v1855_v23 = vadd.f32 %v3669_v44, %v1839_v6  ;;  %1870 = vst [vmem:[%s4361_s30 + $0x60] sm:$0xff] %v1854_v49  ;;  %v1821_v10 = vmul.f32 %v4680_v42, %v1801_v22  ;;  %v1840_v25 = vadd.f32 %v4684_v50, %v1820_v15  ;;  %v3682_v22 = vld [vmem:[#allocation12 + $0x1a8] sm:$0xff] (!%p2923_p5)   ;;  %v3686_v15 = vld [vmem:[#allocation12 + $0x1b8] sm:$0xff] (!%p2923_p5)  }
 0x68b   : > { %vm1889_vm6 = vcmp.eq.s32.totalorder %v2910_v26, %v1878_v21  ;;  %v3683_v6 = vld [vmem:[#allocation12 + $0x168] sm:$0xff] (!%p2923_p5)  }
 0x68c   : > { %1871 = vst [vmem:[%s4361_s30 + $0x68] sm:$0xff] %v1855_v23  ;;  %v1919_v29 = vpack.c.bf16 %v1855_v23, %v1854_v49  ;;  %v1841_v31 = vadd.f32 %v4684_v50, %v1821_v10  ;;  %v1856_v34 = vadd.f32 %v3670_v32, %v1840_v25  ;;  %vm2919_vm10 = vmpackc.low %vm1889_vm6, %vm1888_vm5  ;;  %v1879_v50 = vadd.s32 32, %v4514_v9  ;;  %v3685_v49 = vld [vmem:[#allocation12 + $0x170] sm:$0xff] (!%p2923_p5)   ;;  %v3687_v23 = vld [vmem:[#allocation12 + $0x178] sm:$0xff] (!%p2923_p5)  }
 0x68d   : > { %v4808_v10 = vld [vmem:[#allocation4] sm:$0xff] (!%p2923_p5)  ;;  %v4810_v25 = vld [vmem:[#allocation4 + $0x8] sm:$0xff] (!%p2923_p5)  ;;  %v4822_v32 = vld [vmem:[#allocation4 + $0x10] sm:$0xff] (!%p2923_p5) }
 0x68e   : > { %3298 = vmatpush3.bf16.msra.mxu0 %v1919_v29  ;;  %3439 = vmatpush3.bf16.msra.mxu1 %v1919_v29  ;;  %v1857_v43 = vadd.f32 %v3671_v35, %v1841_v31  ;;  %1872 = vst [vmem:[%s4361_s30 + $0x70] sm:$0xff] %v1856_v34  ;;  %vm1890_vm12 = vcmp.eq.s32.totalorder %v2910_v26, %v1879_v50  ;;  %v3688_v26 = vld [vmem:[#allocation12 + $0x1c0] sm:$0xff] (!%p2923_p5)   ;;  %v3689_v35 = vld [vmem:[#allocation12 + $0x1c8] sm:$0xff] (!%p2923_p5)   ;;  %v3690_v50 = vld [vmem:[#allocation12 + $0x1d0] sm:$0xff] (!%p2923_p5)  }
 0x68f   : > { %3299 = vmatprep.subr.bf16.mxu0 %v4014_v2  ;;  %3432 = vmatprep.subr.bf16.mxu1 %v4014_v2  ;;  %vm2921_vm14 = vmpackc.low %vm1891_vm13, %vm1890_vm12  ;;  %v2000_v28 = vpack.c.bf16 (!%p2923_p5), %v4810_v25, %v4808_v10 }
 0x690   : > { %1873 = vst [vmem:[%s4361_s30 + $0x78] sm:$0xff] %v1857_v43  ;;  %v1920_v42 = vpack.c.bf16 %v1857_v43, %v1856_v34  ;;  %v4824_v34 = vld [vmem:[#allocation4 + $0x18] sm:$0xff] (!%p2923_p5) }
 0x692   : > { %3300 = vmatpush3.bf16.msra.mxu0 %v1920_v42  ;;  %3440 = vmatpush3.bf16.msra.mxu1 %v1920_v42  ;;  %v2001_v42 = vpack.c.bf16 (!%p2923_p5), %v4824_v34, %v4822_v32 }
 0x693   : > { %3313 = vmatprep.subr.bf16.mxu0 (!%p2923_p5), %v4021_v60  ;;  %3341 = vmatprep.subr.bf16.mxu1 (!%p2923_p5), %v4021_v60 }
 0x695   : > { %3306 = vmatmul.mubr.msk.bf16.vlgmr.msra.gmra.mrb[32].mxu1 %vm2919_vm10, %v4020_v33  ;;  %3302 = vmatmul.mubr.msk.bf16.vlgmr.msra.gmra.mrb[16].mxu0 %vm2917_vm11, %v4020_v33 }
 0x696   : > { %3309 = vmatprep.mubr.msk.bf16.mxu1 %vm4019_vm9, %v4014_v2  ;;  %3314 = vmatpush3.bf16.msra.mxu0 (!%p2923_p5), %v3672_v8 }
 0x697   : > { %3329 = vmatprep.mubr.msk.bf16.mxu0 (!%p2923_p5), %vm4022_vm15, %v4021_v60  ;;  %3342 = vmatpush3.bf16.msra.mxu1 (!%p2923_p5), %v3673_v12 }
 0x698   : > { %3315 = vmatprep.subr.bf16.mxu0 (!%p2923_p5), %v4021_v60  ;;  %3343 = vmatprep.subr.bf16.mxu1 (!%p2923_p5), %v4021_v60 }
 0x69a   : > { %3316 = vmatpush3.bf16.msra.mxu0 (!%p2923_p5), %v3674_v13 }
 0x69b   : > { %3344 = vmatpush3.bf16.msra.mxu1 (!%p2923_p5), %v3675_v14  ;;  %3317 = vmatprep.subr.bf16.mxu0 (!%p2923_p5), %v4021_v60 }
 0x69c   : > { %3345 = vmatprep.subr.bf16.mxu1 (!%p2923_p5), %v4021_v60 }
 0x69d   : > { %3310 = vmatmul.mubr.msk.bf16.gmra.mrb[36].mxu1 %vm2921_vm14, %v4020_v33 }
 0x69e   : > { %3357 = vmatprep.mubr.msk.bf16.mxu1 (!%p2923_p5), %vm4022_vm15, %v4021_v60  ;;  %3318 = vmatpush3.bf16.msra.mxu0 (!%p2923_p5), %v3676_v16 }
 0x69f   : > { %3346 = vmatpush3.bf16.msra.mxu1 (!%p2923_p5), %v3677_v0  ;;  %3319 = vmatprep.subr.bf16.mxu0 (!%p2923_p5), %v4021_v60 }
 0x6a0   : > { %3347 = vmatprep.subr.bf16.mxu1 (!%p2923_p5), %v4021_v60 }
 0x6a2   : > { %3320 = vmatpush3.bf16.msra.mxu0 (!%p2923_p5), %v3678_v18 }
 0x6a3   : > { %3348 = vmatpush3.bf16.msra.mxu1 (!%p2923_p5), %v3679_v19  ;;  %3321 = vmatprep.subr.bf16.mxu0 (!%p2923_p5), %v4021_v60 }
 0x6a4   : > { %3349 = vmatprep.subr.bf16.mxu1 (!%p2923_p5), %v4021_v60 }
 0x6a6   : > { %3322 = vmatpush3.bf16.msra.mxu0 (!%p2923_p5), %v3680_v47 }
 0x6a7   : > { %3350 = vmatpush3.bf16.msra.mxu1 (!%p2923_p5), %v3681_v48  ;;  %3323 = vmatprep.subr.bf16.mxu0 (!%p2923_p5), %v4021_v60 }
 0x6a8   : > { %3351 = vmatprep.subr.bf16.mxu1 (!%p2923_p5), %v4021_v60 }
 0x6aa   : > { %3324 = vmatpush3.bf16.msra.mxu0 (!%p2923_p5), %v3682_v22 }
 0x6ab   : > { %3352 = vmatpush3.bf16.msra.mxu1 (!%p2923_p5), %v3683_v6  ;;  %3325 = vmatprep.subr.bf16.mxu0 (!%p2923_p5), %v4021_v60 }
 0x6ac   : > { %3353 = vmatprep.subr.bf16.mxu1 (!%p2923_p5), %v4021_v60 }
 0x6ae   : > { %3326 = vmatpush3.bf16.msra.mxu0 (!%p2923_p5), %v3684_v7 }
 0x6af   : > { %3354 = vmatpush3.bf16.msra.mxu1 (!%p2923_p5), %v3685_v49  ;;  %3327 = vmatprep.subr.bf16.mxu0 (!%p2923_p5), %v4021_v60 }
 0x6b0   : > { %3355 = vmatprep.subr.bf16.mxu1 (!%p2923_p5), %v4021_v60 }
 0x6b2   : > { %3328 = vmatpush3.bf16.msra.mxu0 (!%p2923_p5), %v3686_v15 }
 0x6b3   : > { %3356 = vmatpush3.bf16.msra.mxu1 (!%p2923_p5), %v3687_v23  ;;  %3369 = vmatprep.subr.bf16.mxu0 (!%p2923_p5), %v4021_v60 }
 0x6b4   : > { %3397 = vmatprep.subr.bf16.mxu1 (!%p2923_p5), %v4021_v60 }
 0x6b6   : > { %3358 = vmatmul.mubr.bf16.vlgmr.msra.gmra.mrb[0].mxu1 (!%p2923_p5), %v2000_v28 }
 0x6b7   : > { %3361 = vmatprep.mubr.msk.bf16.mxu1 (!%p2923_p5), %vm4022_vm15, %v4021_v60 }
 0x6be   : > { %3362 = vmatmul.mubr.bf16.gmra.mrb[4].mxu1 (!%p2923_p5), %v2001_v42 }
 0x6bf   : > { %3365 = vmatprep.mubr.msk.bf16.mxu1 (!%p2923_p5), %vm4022_vm15, %v4021_v60 }
 0x768   : > { %v1963_v45 = vpop.f32.mrb[32].mxu1  ;;  %v1955_v36 = vpop.f32.mrb[16].mxu0 }
 0x769   : > { %v1980_v20 = vadd.f32 %v1963_v45, %v1909_v51  ;;  %v3307_v53 = vpop.f32.mrb[33].mxu1  ;;  %v1978_v57 = vadd.f32 %v1955_v36, %v1907_v38  ;;  %v3303_v54 = vpop.f32.mrb[17].mxu0  ;;  %v4834_v51 = vld [vmem:[#allocation4 + $0x20] sm:$0xff] (!%p2923_p5)  ;;  %v4836_v38 = vld [vmem:[#allocation4 + $0x28] sm:$0xff] (!%p2923_p5) }
 0x76a   : > { %v1966_v55 = vpop.f32.mrb[34].mxu1  ;;  %v1958_v39 = vpop.f32.mrb[18].mxu0  ;;  %v3691_v45 = vld [vmem:[#allocation12 + $0x1d8] sm:$0xff] (!%p2923_p5)   ;;  %v2002_v36 = vpack.c.bf16 (!%p2923_p5), %v4836_v38, %v4834_v51  ;;  %v3694_v53 = vld [vmem:[#allocation12 + $0x1f0] sm:$0xff] (!%p2923_p5)   ;;  %v3696_v54 = vld [vmem:[#allocation12 + $0x200] sm:$0xff] (!%p2923_p5)  }
 0x76b   : > { %1986 = vst [vmem:[#allocation3 + $0x10] sm:$0xff] %v1980_v20  ;;  %v1981_v40 = vadd.f32 %v1966_v55, %v1910_v46  ;;  %v3308_v24 = vpop.f32.mrb[35].mxu1  ;;  %1984 = vst [vmem:[#allocation3] sm:$0xff] %v1978_v57  ;;  %v1979_v2 = vadd.f32 %v1958_v39, %v1908_v52  ;;  %v3304_v58 = vpop.f32.mrb[19].mxu0  ;;  %v3692_v52 = vld [vmem:[#allocation12 + $0x1e0] sm:$0xff] (!%p2923_p5)   ;;  %v3693_v20 = vld [vmem:[#allocation12 + $0x1e8] sm:$0xff] (!%p2923_p5)   ;;  %3398 = vmatpush3.bf16.msra.mxu1 (!%p2923_p5), %v3696_v54 }
 0x76c   : > { %3366 = vmatmul.mubr.bf16.gmra.mrb[8].mxu1 (!%p2923_p5), %v2002_v36  ;;  %v3695_v57 = vld [vmem:[#allocation12 + $0x1f8] sm:$0xff] (!%p2923_p5)   ;;  %v3697_v55 = vld [vmem:[#allocation12 + $0x208] sm:$0xff] (!%p2923_p5)   ;;  %3399 = vmatprep.subr.bf16.mxu1 (!%p2923_p5), %v4021_v60  ;;  %v3698_v39 = vld [vmem:[#allocation12 + $0x210] sm:$0xff] (!%p2923_p5)   ;;  %v2258_v58 = vsub.s32 (!%p2923_p5), 5, %v4514_v9 }
 0x76d   : > { %1987 = vst [vmem:[#allocation3 + $0x18] sm:$0xff] %v1981_v40  ;;  %1985 = vst [vmem:[#allocation3 + $0x8] sm:$0xff] %v1979_v2  ;;  %3413 = vmatprep.mubr.msk.bf16.mxu1 (!%p2923_p5), %vm4022_vm15, %v4021_v60  ;;  %v3699_v40 = vld [vmem:[#allocation12 + $0x218] sm:$0xff] (!%p2923_p5)   ;;  %v3700_v24 = vld [vmem:[#allocation12 + $0x220] sm:$0xff] (!%p2923_p5)  }
 0x76e   : > { %v3701_v2 = vld [vmem:[#allocation12 + $0x228] sm:$0xff] (!%p2923_p5)  }
 0x76f   : > { %1993 = sbr.rel (%p2923_p5) target bundleno = 2901 (0xb55), region = 76  ;;  %3400 = vmatpush3.bf16.msra.mxu1 (!%p2923_p5), %v3697_v55 }
 0x770   : > { %v1971_v61 = vpop.f32.mrb[36].mxu1  ;;  %3401 = vmatprep.subr.bf16.mxu1 (!%p2923_p5), %v4021_v60 }
 0x771   : > { %v1982_v62 = vadd.f32 %v1971_v61, %v1911_v59  ;;  %v3311_v41 = vpop.f32.mrb[37].mxu1  ;;  %v2259_v61 = vrot.slane (!%p2923_p5), %v4357_v4, %v2258_v58 }
 0x772   : > { %v1974_v56 = vpop.f32.mrb[38].mxu1  ;;  %v2020_v11 = vld [vmem:[#allocation3] sm:$0xff] (!%p2923_p5)  ;;  %v2022_v29 = vld [vmem:[#allocation3 + $0x10] sm:$0xff] (!%p2923_p5) }
 0x773   : > { %1988 = vst [vmem:[#allocation3 + $0x20] sm:$0xff] %v1982_v62  ;;  %v1983_v30 = vadd.f32 %v1974_v56, %v1912_v27  ;;  %v3312_v63 = vpop.f32.mrb[39].mxu1  ;;  %3402 = vmatpush3.bf16.msra.mxu1 (!%p2923_p5), %v3698_v39  ;;  %v3702_v39 = vld [vmem:[#allocation12 + $0x230] sm:$0xff] (!%p2923_p5)  }
 0x774   : > { %v2021_v44 = vld [vmem:[#allocation3 + $0x8] sm:$0xff] (!%p2923_p5)  ;;  %v2023_v31 = vld [vmem:[#allocation3 + $0x18] sm:$0xff] (!%p2923_p5)  ;;  %3403 = vmatprep.subr.bf16.mxu1 (!%p2923_p5), %v4021_v60 }
 0x775   : > { %1989 = vst [vmem:[#allocation3 + $0x28] sm:$0xff] %v1983_v30  ;;  %v2026_v21 = vpack.c.bf16 (!%p2923_p5), %v2021_v44, %v2020_v11  ;;  %v2027_v43 = vpack.c.bf16 (!%p2923_p5), %v2023_v31, %v2022_v29 }
 0x777   : > { %3330 = vmatmul.mubr.bf16.vlgmr.msra.gmra.mrb[0].mxu0 %v2026_v21  ;;  %3404 = vmatpush3.bf16.msra.mxu1 %v3699_v40  ;;  %v3703_v40 = vld [vmem:[#allocation12 + $0x238] sm:$0xff]  }
 0x778   : > { %3333 = vmatprep.mubr.msk.bf16.mxu0 %vm4022_vm15, %v4021_v60  ;;  %3370 = vmatpush3.bf16.msra.mxu0 %v3688_v26 }
 0x779   : > { %3371 = vmatprep.subr.bf16.mxu0 %v4021_v60  ;;  %3405 = vmatprep.subr.bf16.mxu1 %v4021_v60 }
 0x77a   : > { %v2024_v37 = vld [vmem:[#allocation3 + $0x20] sm:$0xff] }
 0x77b   : > { %3406 = vmatpush3.bf16.msra.mxu1 %v3700_v24  ;;  %v2294_v24 = vsub.s32 6, %v4514_v9 }
 0x77c   : > { %3372 = vmatpush3.bf16.msra.mxu0 %v3689_v35  ;;  %v2025_v33 = vld [vmem:[#allocation3 + $0x28] sm:$0xff]  ;;  %3407 = vmatprep.subr.bf16.mxu1 %v4021_v60 }
 0x77d   : > { %3373 = vmatprep.subr.bf16.mxu0 %v4021_v60  ;;  %v2028_v46 = vpack.c.bf16 %v2025_v33, %v2024_v37 }
 0x77f   : > { %3334 = vmatmul.mubr.bf16.gmra.mrb[4].mxu0 %v2027_v43  ;;  %3408 = vmatpush3.bf16.msra.mxu1 %v3701_v2  ;;  %v2295_v2 = vrot.slane %v4357_v4, %v2294_v24 }
 0x780   : > { %3337 = vmatprep.mubr.msk.bf16.mxu0 %vm4022_vm15, %v4021_v60  ;;  %3374 = vmatpush3.bf16.msra.mxu0 %v3690_v50 }
 0x781   : > { %3375 = vmatprep.subr.bf16.mxu0 %v4021_v60  ;;  %3409 = vmatprep.subr.bf16.mxu1 %v4021_v60 }
 0x783   : > { %3410 = vmatpush3.bf16.msra.mxu1 %v3702_v39 }
 0x784   : > { %3376 = vmatpush3.bf16.msra.mxu0 %v3691_v45  ;;  %3411 = vmatprep.subr.bf16.mxu1 %v4021_v60 }
 0x785   : > { %3377 = vmatprep.subr.bf16.mxu0 %v4021_v60 }
 0x787   : > { %3338 = vmatmul.mubr.bf16.gmra.mrb[8].mxu0 %v2028_v46  ;;  %3412 = vmatpush3.bf16.msra.mxu1 %v3703_v40 }
 0x788   : > { %3385 = vmatprep.mubr.msk.bf16.mxu0 %vm4022_vm15, %v4021_v60  ;;  %3378 = vmatpush3.bf16.msra.mxu0 %v3692_v52 }
 0x789   : > { %3379 = vmatprep.subr.bf16.mxu0 %v4021_v60  ;;  %v2233_v27 = vpop.f32.mrb[0].mxu1 }
 0x78a   : > { %v3359_v56 = vpop.f32.mrb[1].mxu1 }
 0x78b   : > { %v2236_v63 = vpop.f32.mrb[2].mxu1 }
 0x78c   : > { %3380 = vmatpush3.bf16.msra.mxu0 %v3693_v20  ;;  %v3360_v14 = vpop.f32.mrb[3].mxu1 }
 0x78d   : > { %3381 = vmatprep.subr.bf16.mxu0 %v4021_v60 }
 0x790   : > { %3382 = vmatpush3.bf16.msra.mxu0 %v3694_v53 }
 0x791   : > { %3383 = vmatprep.subr.bf16.mxu0 %v4021_v60  ;;  %v2241_v47 = vpop.f32.mrb[4].mxu1 }
 0x792   : > { %v3363_v7 = vpop.f32.mrb[5].mxu1 }
 0x793   : > { %v2244_v15 = vpop.f32.mrb[6].mxu1 }
 0x794   : > { %3384 = vmatpush3.bf16.msra.mxu0 %v3695_v57  ;;  %v3364_v21 = vpop.f32.mrb[7].mxu1 }
 0x795   : > { %v2429_v21 = vsub.s32 7, %v4514_v9 }
 0x83f   : > { %v2249_v35 = vpop.f32.mrb[8].mxu1 }
 0x840   : > { %v3367_v50 = vpop.f32.mrb[9].mxu1 }
 0x841   : > { %v2252_v45 = vpop.f32.mrb[10].mxu1 }
 0x842   : > { %v3368_v20 = vpop.f32.mrb[11].mxu1 }
 0x84a   : > { %v2128_v59 = vpop.f32.mrb[0].mxu0 }
 0x84b   : > { %v3331_v62 = vpop.f32.mrb[1].mxu0  ;;  %v2234_v41 = vadd.f32 %v2233_v27, %v2128_v59 }
 0x84c   : > { %v2131_v30 = vpop.f32.mrb[2].mxu0 }
 0x84d   : > { %v3332_v8 = vpop.f32.mrb[3].mxu0  ;;  %v2260_v12 = vadd.f32 %v2259_v61, %v2234_v41  ;;  %v2237_v13 = vadd.f32 %v2236_v63, %v2131_v30 }
 0x84f   : > { %v2261_v16 = vadd.f32 %v2259_v61, %v2237_v13  ;;  %v2266_v0 = vmax.f32 %v2260_v12, 0.0 }
 0x851   : > { %v2267_v18 = vmax.f32 %v2261_v16, 0.0 }
 0x852   : > { %v2136_v19 = vpop.f32.mrb[4].mxu0 }
 0x853   : > { %v3335_v48 = vpop.f32.mrb[5].mxu0  ;;  %v2272_v22 = vpack.c.bf16 %v2267_v18, %v2266_v0  ;;  %v2242_v6 = vadd.f32 %v2241_v47, %v2136_v19 }
 0x854   : > { %v2139_v49 = vpop.f32.mrb[6].mxu0 }
 0x855   : > { %v3336_v11 = vpop.f32.mrb[7].mxu0  ;;  %v2262_v44 = vadd.f32 %v2259_v61, %v2242_v6  ;;  %v2245_v23 = vadd.f32 %v2244_v15, %v2139_v49  ;;  %3386 = vmatmul.mubr.bf16.vlgmr.msra.gmra.mrb[12].mxu0 %v2272_v22 }
 0x856   : > { %3389 = vmatprep.mubr.msk.bf16.mxu0 %vm4022_vm15, %v4021_v60 }
 0x857   : > { %v2263_v26 = vadd.f32 %v2259_v61, %v2245_v23  ;;  %v2268_v28 = vmax.f32 %v2262_v44, 0.0 }
 0x859   : > { %v2269_v29 = vmax.f32 %v2263_v26, 0.0  ;;  %v2430_v26 = vrot.slane %v4357_v4, %v2429_v21 }
 0x85a   : > { %v2144_v31 = vpop.f32.mrb[8].mxu0 }
 0x85b   : > { %v3339_v43 = vpop.f32.mrb[9].mxu0  ;;  %v2250_v42 = vadd.f32 %v2249_v35, %v2144_v31  ;;  %v2273_v33 = vpack.c.bf16 %v2269_v29, %v2268_v28 }
 0x85c   : > { %v2147_v37 = vpop.f32.mrb[10].mxu0 }
 0x85d   : > { %v3340_v46 = vpop.f32.mrb[11].mxu0  ;;  %v2264_v36 = vadd.f32 %v2259_v61, %v2250_v42  ;;  %v2253_v52 = vadd.f32 %v2252_v45, %v2147_v37  ;;  %3390 = vmatmul.mubr.bf16.gmra.mrb[16].mxu0 %v2273_v33 }
 0x85e   : > { %3393 = vmatprep.mubr.msk.bf16.mxu0 %vm4022_vm15, %v4021_v60 }
 0x85f   : > { %v2265_v53 = vadd.f32 %v2259_v61, %v2253_v52  ;;  %v2270_v57 = vmax.f32 %v2264_v36, 0.0 }
 0x861   : > { %v2271_v54 = vmax.f32 %v2265_v53, 0.0 }
 0x863   : > { %v2274_v55 = vpack.c.bf16 %v2271_v54, %v2270_v57 }
 0x865   : > { %3394 = vmatmul.mubr.bf16.gmra.mrb[20].mxu0 %v2274_v55 }
 0x928   : > { %v2378_v58 = vpop.f32.mrb[12].mxu0 }
 0x929   : > { %v2379_v59 = vadd.f32 %v2378_v58, %v2295_v2  ;;  %v3387_v27 = vpop.f32.mrb[13].mxu0 }
 0x92a   : > { %v2381_v62 = vpop.f32.mrb[14].mxu0 }
 0x92b   : > { %v2382_v41 = vadd.f32 %v2381_v62, %v2295_v2  ;;  %v3388_v61 = vpop.f32.mrb[15].mxu0  ;;  %v2401_v56 = vmax.f32 %v2379_v59, 0.0 }
 0x92d   : > { %v2402_v30 = vmax.f32 %v2382_v41, 0.0 }
 0x92f   : > { %v2407_v63 = vpack.c.bf16 %v2402_v30, %v2401_v56 }
 0x930   : > { %v2386_v8 = vpop.f32.mrb[16].mxu0 }
 0x931   : > { %v2387_v12 = vadd.f32 %v2386_v8, %v2295_v2  ;;  %v3391_v13 = vpop.f32.mrb[17].mxu0  ;;  %3414 = vmatmul.mubr.bf16.vlgmr.msra.gmra.mrb[12].mxu1 %v2407_v63 }
 0x932   : > { %v2389_v14 = vpop.f32.mrb[18].mxu0  ;;  %3417 = vmatprep.mubr.msk.bf16.mxu1 %vm4022_vm15, %v4021_v60 }
 0x933   : > { %v2390_v16 = vadd.f32 %v2389_v14, %v2295_v2  ;;  %v3392_v0 = vpop.f32.mrb[19].mxu0  ;;  %v2403_v18 = vmax.f32 %v2387_v12, 0.0 }
 0x935   : > { %v2404_v19 = vmax.f32 %v2390_v16, 0.0 }
 0x937   : > { %v2408_v47 = vpack.c.bf16 %v2404_v19, %v2403_v18 }
 0x938   : > { %v2394_v48 = vpop.f32.mrb[20].mxu0 }
 0x939   : > { %v2395_v22 = vadd.f32 %v2394_v48, %v2295_v2  ;;  %v3395_v6 = vpop.f32.mrb[21].mxu0  ;;  %3418 = vmatmul.mubr.bf16.gmra.mrb[16].mxu1 %v2408_v47 }
 0x93a   : > { %v2397_v7 = vpop.f32.mrb[22].mxu0  ;;  %3421 = vmatprep.mubr.msk.bf16.mxu1 %vm4022_vm15, %v4021_v60 }
 0x93b   : > { %v2398_v49 = vadd.f32 %v2397_v7, %v2295_v2  ;;  %v3396_v15 = vpop.f32.mrb[23].mxu0  ;;  %v2405_v11 = vmax.f32 %v2395_v22, 0.0 }
 0x93d   : > { %v2406_v44 = vmax.f32 %v2398_v49, 0.0 }
 0x93f   : > { %v2409_v23 = vpack.c.bf16 %v2406_v44, %v2405_v11 }
 0x941   : > { %3422 = vmatmul.mubr.bf16.gmra.mrb[20].mxu1 %v2409_v23 }
 0xa04   : > { %v2513_v28 = vpop.f32.mrb[12].mxu1 }
 0xa05   : > { %v2514_v29 = vadd.f32 %v2513_v28, %v2430_v26  ;;  %v3415_v31 = vpop.f32.mrb[13].mxu1 }
 0xa06   : > { %v2516_v35 = vpop.f32.mrb[14].mxu1 }
 0xa07   : > { %2536 = vadd.xlane.f32.xlu0 %v2514_v29  ;;  %v3416_v43 = vpop.f32.mrb[15].mxu1  ;;  %v2517_v42 = vadd.f32 %v2516_v35, %v2430_v26 }
 0xa0b   : > { %2538 = vadd.xlane.f32.xlu0 %v2517_v42 }
 0xa0c   : > { %v2521_v50 = vpop.f32.mrb[16].mxu1 }
 0xa0d   : > { %v2522_v60 = vadd.f32 %v2521_v50, %v2430_v26  ;;  %v3419_v37 = vpop.f32.mrb[17].mxu1 }
 0xa0e   : > { %v2524_v33 = vpop.f32.mrb[18].mxu1  ;;  %v2621_v37 = vrot.slane %v4359_v5, %v1273_v17 }
 0xa0f   : > { %2540 = vadd.xlane.f32.xlu1 %v2522_v60  ;;  %v3420_v45 = vpop.f32.mrb[19].mxu1  ;;  %v2525_v46 = vadd.f32 %v2524_v33, %v2430_v26 }
 0xa13   : > { %2542 = vadd.xlane.f32.xlu1 %v2525_v46 }
 0xa14   : > { %v2529_v36 = vpop.f32.mrb[20].mxu1 }
 0xa15   : > { %v2530_v52 = vadd.f32 %v2529_v36, %v2430_v26  ;;  %v3423_v20 = vpop.f32.mrb[21].mxu1 }
 0xa16   : > { %v2532_v4 = vpop.f32.mrb[22].mxu1 }
 0xa17   : > { %v2533_v53 = vadd.f32 %v2532_v4, %v2430_v26  ;;  %2544 = vadd.xlane.f32.xlu0 %v2530_v52  ;;  %v3424_v57 = vpop.f32.mrb[23].mxu1 }
 0xa19   : > { %2546 = vadd.xlane.f32.xlu1 %v2533_v53 }
 0xa94   : > { %v2537_v54 = vpop.xlane.xlu0 %2536 }
 0xa95   : > { %v2548_v55 = vmul.f32 0.03125, %v2537_v54 }
 0xa97   : > { %v2554_v39 = vsub.f32 %v2514_v29, %v2548_v55 }
 0xa98   : > { %v2539_v40 = vpop.xlane.xlu0 %2538 }
 0xa99   : > { %v2560_v24 = vmul.f32 %v4355_v3, %v2554_v39  ;;  %v2549_v2 = vmul.f32 0.03125, %v2539_v40 }
 0xa9b   : > { %v2555_v58 = vsub.f32 %v2517_v42, %v2549_v2  ;;  %v2566_v59 = vmul.f32 %v2560_v24, %v2560_v24 }
 0xa9c   : > { %v2541_v27 = vpop.xlane.xlu1 %2540 }
 0xa9d   : > { %v2561_v62 = vmul.f32 %v4355_v3, %v2555_v58  ;;  %v2550_v41 = vmul.f32 0.03125, %v2541_v27  ;;  %2572 = vadd.xlane.f32.xlu0 %v2566_v59 }
 0xa9f   : > { %v2556_v61 = vsub.f32 %v2522_v60, %v2550_v41  ;;  %v2567_v56 = vmul.f32 %v2561_v62, %v2561_v62 }
 0xaa0   : > { %v2543_v30 = vpop.xlane.xlu1 %2542 }
 0xaa1   : > { %v2562_v63 = vmul.f32 %v4355_v3, %v2556_v61  ;;  %v2551_v8 = vmul.f32 0.03125, %v2543_v30  ;;  %2574 = vadd.xlane.f32.xlu1 %v2567_v56 }
 0xaa3   : > { %v2557_v12 = vsub.f32 %v2525_v46, %v2551_v8  ;;  %v2568_v13 = vmul.f32 %v2562_v63, %v2562_v63 }
 0xaa4   : > { %v2545_v14 = vpop.xlane.xlu0 %2544 }
 0xaa5   : > { %v2563_v16 = vmul.f32 %v4355_v3, %v2557_v12  ;;  %v2552_v0 = vmul.f32 0.03125, %v2545_v14  ;;  %2576 = vadd.xlane.f32.xlu0 %v2568_v13 }
 0xaa6   : > { %v2547_v18 = vpop.xlane.xlu1 %2546 }
 0xaa7   : > { %v2558_v19 = vsub.f32 %v2530_v52, %v2552_v0  ;;  %v2553_v47 = vmul.f32 0.03125, %v2547_v18  ;;  %v2569_v48 = vmul.f32 %v2563_v16, %v2563_v16 }
 0xaa9   : > { %v2564_v22 = vmul.f32 %v4355_v3, %v2558_v19  ;;  %v2559_v6 = vsub.f32 %v2533_v53, %v2553_v47  ;;  %2578 = vadd.xlane.f32.xlu1 %v2569_v48 }
 0xaab   : > { %v2565_v7 = vmul.f32 %v4355_v3, %v2559_v6  ;;  %v2570_v49 = vmul.f32 %v2564_v22, %v2564_v22  ;;  %v2611_v3 = vrot.slane %v4359_v5, %v1212_v1 }
 0xaad   : > { %2580 = vadd.xlane.f32.xlu0 %v2570_v49  ;;  %v2571_v15 = vmul.f32 %v2565_v7, %v2565_v7 }
 0xaaf   : > { %2582 = vadd.xlane.f32.xlu1 %v2571_v15 }
 0xb2a   : > { %v2573_v11 = vpop.xlane.xlu0 %2572 }
 0xb2b   : > { %v2584_v44 = vmul.f32 0.03125, %v2573_v11 }
 0xb2d   : > { %v2590_v23 = vadd.f32 1e-05, %v2584_v44 }
 0xb2e   : > { %v2575_v21 = vpop.xlane.xlu1 %2574 }
 0xb2f   : > { %3704 = vrsqrt.f32 %v2590_v23  ;;  %v2585_v26 = vmul.f32 0.03125, %v2575_v21 }
 0xb31   : > { %v2591_v28 = vadd.f32 1e-05, %v2585_v26 }
 0xb32   : > { %v2577_v29 = vpop.xlane.xlu0 %2576 }
 0xb33   : > { %3706 = vrsqrt.f32 %v2591_v28  ;;  %v2586_v31 = vmul.f32 0.03125, %v2577_v29 }
 0xb35   : > { %v2592_v35 = vadd.f32 1e-05, %v2586_v31 }
 0xb36   : > { %v2579_v43 = vpop.xlane.xlu1 %2578 }
 0xb37   : > { %3708 = vrsqrt.f32 %v2592_v35  ;;  %v2587_v42 = vmul.f32 0.03125, %v2579_v43 }
 0xb39   : > { %v3705_v50 = vpop.eup %3704  ;;  %v2593_v60 = vadd.f32 1e-05, %v2587_v42 }
 0xb3a   : > { %v2602_v33 = vmul.f32 %v3705_v50, %v2560_v24  ;;  %v2581_v45 = vpop.xlane.xlu0 %2580 }
 0xb3b   : > { %3710 = vrsqrt.f32 %v2593_v60  ;;  %v2588_v46 = vmul.f32 0.03125, %v2581_v45 }
 0xb3c   : > { %v2612_v36 = vmul.f32 %v2611_v3, %v2602_v33  ;;  %v2583_v52 = vpop.xlane.xlu1 %2582 }
 0xb3d   : > { %v3707_v20 = vpop.eup %3706  ;;  %v2594_v4 = vadd.f32 1e-05, %v2588_v46  ;;  %v2589_v53 = vmul.f32 0.03125, %v2583_v52 }
 0xb3e   : > { %v2622_v57 = vadd.f32 %v2621_v37, %v2612_v36  ;;  %v2603_v54 = vmul.f32 %v3707_v20, %v2561_v62 }
 0xb3f   : > { %3712 = vrsqrt.f32 %v2594_v4  ;;  %v2595_v55 = vadd.f32 1e-05, %v2589_v53 }
 0xb40   : > { %v2628_v1 = vadd.f32 %v2622_v57, %v4808_v10  ;;  %v2613_v39 = vmul.f32 %v2611_v3, %v2603_v54 }
 0xb41   : > { %v3709_v40 = vpop.eup %3708  ;;  %3714 = vrsqrt.f32 %v2595_v55 }
 0xb42   : > { %2634 = vst [vmem:[#allocation15] sm:$0xff] %v2628_v1  ;;  %v2623_v5 = vadd.f32 %v2621_v37, %v2613_v39  ;;  %v2604_v9 = vmul.f32 %v3709_v40, %v2562_v63 }
 0xb44   : > { %v2629_v17 = vadd.f32 %v2623_v5, %v4810_v25  ;;  %v2614_v24 = vmul.f32 %v2611_v3, %v2604_v9 }
 0xb45   : > { %v3711_v2 = vpop.eup %3710 }
 0xb46   : > { %2635 = vst [vmem:[#allocation15 + $0x8] sm:$0xff] %v2629_v17  ;;  %v2624_v58 = vadd.f32 %v2621_v37, %v2614_v24  ;;  %v2605_v59 = vmul.f32 %v3711_v2, %v2563_v16 }
 0xb48   : > { %v2630_v27 = vadd.f32 %v2624_v58, %v4822_v32  ;;  %v2615_v62 = vmul.f32 %v2611_v3, %v2605_v59 }
 0xb49   : > { %v3713_v41 = vpop.eup %3712 }
 0xb4a   : > { %2636 = vst [vmem:[#allocation15 + $0x10] sm:$0xff] %v2630_v27  ;;  %v2625_v61 = vadd.f32 %v2621_v37, %v2615_v62  ;;  %v2606_v10 = vmul.f32 %v3713_v41, %v2564_v22 }
 0xb4b   : > { %v3715_v56 = vpop.eup %3714 }
 0xb4c   : > { %v2631_v30 = vadd.f32 %v2625_v61, %v4824_v34  ;;  %v2616_v8 = vmul.f32 %v2611_v3, %v2606_v10  ;;  %v2607_v12 = vmul.f32 %v3715_v56, %v2565_v7 }
 0xb4e   : > { %2637 = vst [vmem:[#allocation15 + $0x18] sm:$0xff] %v2631_v30  ;;  %v2626_v63 = vadd.f32 %v2621_v37, %v2616_v8  ;;  %v2617_v25 = vmul.f32 %v2611_v3, %v2607_v12 }
 0xb50   : > { %v2632_v13 = vadd.f32 %v2626_v63, %v4834_v51  ;;  %v2627_v14 = vadd.f32 %v2621_v37, %v2617_v25 }
 0xb52   : > { %2638 = vst [vmem:[#allocation15 + $0x20] sm:$0xff] %v2632_v13  ;;  %v2633_v16 = vadd.f32 %v2627_v14, %v4836_v38 }
 0xb54   : > { %2639 = vst [vmem:[#allocation15 + $0x28] sm:$0xff] %v2633_v16 }
 0xb55 PF: > { %s4023_s6 = smov [#allocation15]   ;;  %p5032_p6 = scmp.eq.s32.totalorder %s4088_s28, 2 }
 0xb56   : > { %s2651_s7 = sshll.u32 %s4023_s6, 4  ;;  %s2652_s7 = int_to_ptr.vmem [resolvable:$true] %s2651_s7 }
 0xb57   : > { %s3890_s12 = scalar_lea.vmem %s2652_s7, 768  ;;  %p3897_p8 = scmp.lt.s32.totalorder %s2652_s7, %s2652_s7 }
 0xb58   : > { %p3891_p4 = scmp.ne.s32.totalorder %s2652_s7, %s3890_s12  ;;  %p3898_p11 = scmp.lt.s32.totalorder %s3890_s12, %s3890_s12 }
 0xb5a   : > { %p3892_p3 = pnand %p3891_p4, %p5032_p6  ;;  %p3899_p9 = por %p3898_p11, %p3897_p8 }
 0xb5c   : > { %p3893_p12 = pneg %p3892_p3 }
 0xb5e   : > { %p3900_p10 = pnand %p3899_p9, %p3893_p12 }
 0xb60   : > { %3903 = shalt.err (!%p3900_p10)
}
 0xb61   : > { %s5033_s19 = sld [smem:[#allocation32_spill]]  ;;  %p5034_p1 = pmov %p5032_p6 }
 0xb67   : > { %s3904_s22 = scalar_lea.hbm %s5033_s19, 768 }
 0xb68   : > { %p3905_p7 = scmp.ne.s32.totalorder %s5033_s19, %s3904_s22  ;;  %p3910_p0 = scmp.lt.u32.totalorder %s3904_s22, %s5033_s19 }
 0xb6a   : > { %p3906_p2 = pnand %p3905_p7, %p5034_p1 }
 0xb6c   : > { %p3907_p13 = pneg %p3906_p2 }
 0xb6e   : > { %p3912_p5 = pnand %p3910_p0, %p3907_p13 }
 0xb70   : > { %3915 = shalt.err (!%p3912_p5)
}
 0xb71   : > { %s4024_s17 = smov 128   ;;  %s5035_s23 = sld [smem:[#allocation29_spill]] }
 0xb72   : > { %s4025_s18 = smov 8   ;;  %p5036_p4 = pmov %p5034_p1 }
 0xb73   : > { %s2965_s16 = sshll.u32 %s4088_s28, 11  ;;  %s2667_s4 = sshll.u32 %s4361_s30, 4  ;;  %s4916_s4 = int_to_ptr.vmem [resolvable:$true] %s2667_s4 }
 0xb74   : > { %3476 = dma.vmem_to_hbm [thread:$0]  (%p5036_p4), %s2652_s7, 768, %s5033_s19, [#allocation6], %s4024_s17, %s4024_s17, %s4025_s18  }
 0xb75   : > { %s5037_s21 = sld [smem:[#allocation33_spill]]  ;;  %s2641_s12 = scalar_lea.sflag [#allocation17], %s4326_s15 }
 0xb76   : > { %s3916_s24 = scalar_lea.vmem %s4916_s4, 2048  ;;  %s4026_s20 = smov [#allocation16]  }
 0xb77   : > { %p3917_p6 = scmp.ne.s32.totalorder %s4916_s4, %s3916_s24  ;;  %p5038_p3 = scmp.ne.s32.totalorder %s5035_s23, 0 }
 0xb78   : > { %s3920_s7 = sshll.u32 %s4026_s20, 4  ;;  %s3921_s7 = int_to_ptr.vmem [resolvable:$false] %s3920_s7 }
 0xb79   : > { %p3918_p12 = pnand %p3917_p6, %p5038_p3  ;;  %s3922_s30 = scalar_lea.vmem %s3921_s7, 4096 }
 0xb7a   : > { %p3923_p11 = scmp.lt.s32.totalorder %s4916_s4, %s3921_s7  ;;  %p3924_p9 = scmp.lt.s32.totalorder %s3922_s30, %s3916_s24 }
 0xb7b   : > { %s4914_s6 = scalar_lea.hbm %s5037_s21, %s2965_s16  ;;  %p3919_p8 = pneg %p3918_p12 }
 0xb7c   : > { %p3925_p10 = por %p3924_p9, %p3923_p11 }
 0xb7e   : > { %p3926_p7 = pnand %p3925_p10, %p3919_p8 }
 0xb80   : > { %3929 = shalt.err (!%p3926_p7)
}
 0xb81   : > { %s3930_s22 = scalar_lea.hbm %s4914_s6, 2048  ;;  %s3934_s29 = scalar_lea.hbm %s5037_s21, 6144 }
 0xb82   : > { %p3931_p1 = scmp.ne.s32.totalorder %s4914_s6, %s3930_s22  ;;  %p3935_p0 = scmp.lt.u32.totalorder %s4914_s6, %s5037_s21 }
 0xb83   : > { %p3936_p5 = scmp.lt.u32.totalorder %s3934_s29, %s3930_s22  ;;  %p3938_p6 = scmp.lt.u32.totalorder %s3930_s22, %s4914_s6 }
 0xb84   : > { %p3932_p2 = pnand %p3931_p1, %p5038_p3 }
 0xb85   : > { %p3937_p4 = por %p3936_p5, %p3935_p0 }
 0xb86   : > { %p3933_p13 = pneg %p3932_p2 }
 0xb87   : > { %p3939_p12 = por %p3938_p6, %p3937_p4 }
 0xb89   : > { %p3940_p8 = pnand %p3939_p12, %p3933_p13 }
 0xb8b   : > { %3943 = shalt.err (!%p3940_p8)
}
 0xb8c   : > { %3477 = dma.vmem_to_hbm [thread:$0]  (%p5038_p3), %s4916_s4, 2048, %s4914_s6, %s2641_s12, %s4024_s17, %s4024_s17, %s4025_s18  }
 0xb8d   : > { %p5039_p11 = scmp.eq.s32.totalorder %s4088_s28, 2 }
 0xb8f   : > { %3981 = dma.done.wait (%p5039_p11), [#allocation6], 768   ;;  %p5040_p9 = pmov %p5039_p11 }
 0xb91   : > { %3983 = vsyncadd (%p5040_p9), [#allocation6], 4294966528 }
 0xb92 PF: > { %s5041_s10 = sld [smem:[#allocation25_spill]]  ;;  %s5042_s16 = sld [smem:[#allocation26_spill]] }
 0xb93   : > { %p3514_p10 = scmp.ge.s32.totalorder %s4002_s27, 2 }
 0xb98   : > { %s2686_s23 = sand.u32 1, %s5041_s10   ;;  %p5043_p7 = scmp.ne.s32.totalorder %s5042_s16, 0 }
 0xb99   : > { %s2687_s9 = scalar_lea.sflag [#allocation17], %s2686_s23 }
 0xb9a   : > { %p3502_p1 = pnand %p3514_p10, %p5043_p7 }
 0xb9c   : > { %3985 = dma.done.wait (!%p3502_p1), %s2687_s9, 2048  }
 0xb9d   : > { %3987 = vsyncadd (!%p3502_p1), %s2687_s9, 4294965248  ;;  %s5044_s27 = sld [smem:[#allocation27_spill]]  ;;  %s5045_s15 = sld [smem:[#allocation28_spill]] }
 0xb9e   : > { %s5046_s24 = smov %s3994_s25  ;;  %s5047_s25 = smov %s3998_s26 }
 0xba3   : > { %p27_p3 = scmp.ge.s32.totalorder %s5044_s27, 5   ;;  %s5048_s26 = smov %s5045_s15 }
 0xba5   :  { %29 = sbr.rel (!%p27_p3) target bundleno = 15 (0xf), region = 151 }
 0xbac   :  { %2692 = vsyncpa [#allocation5], 1 }
 0xbad   :  { %2694 = vsyncpa [#allocation5 + $0x1], 1 }
 0xbae   :  { %2695 = vsyncpa [#allocation8], 1 }
 0xbaf   :  { %2697 = vsyncpa [#allocation8 + $0x1], 1 }
 0xbb0   :  { %2698 = vsyncpa [#allocation11], 1 }
 0xbb1   :  { %2700 = vsyncpa [#allocation11 + $0x1], 1 }
 0xbb2   :  { %2701 = vsyncpa [#allocation14], 1 }
 0xbb3   :  { %2702 = vsyncpa [#allocation6], 1 }
 0xbb4   :  { %2704 = vsyncpa [#allocation6 + $0x1], 1 }
 0xbb5   :  { %2705 = vsyncpa [#allocation17], 1 }
 0xbb6   :  { %2707 = vsyncpa [#allocation17 + $0x1], 1 }

</bundles_post_ra>
